<compile_context>
chip_gen: v7x
topology: tpu7x:2x2x1
jax: 0.10.0
libtpu: 0.0.40
codegen_flags: <defaults>
</compile_context>

<pallas_src>
import numpy as np
import jax
import jax.numpy as jnp
from jax import lax
from jax.experimental import pallas as pl
from jax.experimental.pallas import tpu as pltpu

H = 16            # latent width per graph (edges / nodes / global)
G = 8             # graphs packed per lane group
GH = G * H        # 128 -> full lane width
LANES = 128
assert GH == LANES


# --------------------------- fused GNDeep kernel ----------------------------
def _make_kernel(offsets, block_idx, M, Mp, N, Np, off_e, off_v, off_u):
    """offsets: name -> (row offset, rows) into the packed weight slab.
    block_idx: static tuple of weight-slot indices per core block
    (e.g. (0,1,2) independent weights, (0,0,0) shared_weights=True)."""
    f32 = jnp.float32
    inv_m = np.float32(1.0 / M)
    inv_n = np.float32(1.0 / N)

    def kernel(w_ref, feat_ref, sr_ref, out_ref):
        def W(name):                       # static ref view into the weight slab
            o, r = offsets[name]
            return w_ref[o:o + r, :]

        def dot(a, b):
            return jnp.dot(a, b, preferred_element_type=f32)

        feat = feat_ref[0]                              # [Frows, 128]
        e0 = feat[off_e:off_e + Mp]                     # [Mp, GH] edge attr repeated over H lanes
        v = feat[off_v:off_v + Np]                      # [Np, GH] node attrs (lane-packed per graph)
        u0 = feat[off_u:off_u + 1]                      # [1, GH]  global attr repeated over H lanes
        sr = sr_ref[...]                                # [2Mp, Np] stacked [S; R] one-hots (shared)
        r_oh = sr[Mp:]                                  # [Mp, Np] receiver one-hot
        inv_deg = W('inv_deg')                          # [Np, GH] 1/in-degree, lane-broadcast

        # ---------------- encoder: phi_e(e0), rho_eu=Avg, phi_u([agg_e, u0]) ----------------
        h = jnp.maximum(e0 * W('enc_we1') + W('enc_be1'), 0.0)
        e = dot(h, W('enc_we2')) + W('enc_be2')
        agg_e = jnp.sum(e[:M], axis=0, keepdims=True) * inv_m          # padded edge rows excluded
        hu = jnp.maximum(dot(agg_e, W('enc_wua')) + u0 * W('enc_wub') + W('enc_bu1'), 0.0)
        u = dot(hu, W('enc_wu2')) + W('enc_bu2')
        # (encoder has no phi_v: node attrs pass through unchanged)

        # ---------------- core blocks (statically unrolled) ----------------
        for i in block_idx:
            # one gather matmul per block: [S;R] @ v -> split at 8-aligned Mp
            vsr = dot(sr, v)                                            # [2Mp, GH]
            # phi_e on [e, v_send, v_recv] (+ u folded into the bias: rank-1 over rows)
            u_e = dot(u, W(f'we1u{i}'))                                 # [1, GH]
            x_e = jnp.concatenate([e, vsr[:Mp], vsr[Mp:]], axis=-1)     # [Mp, 3GH]
            h_e = jnp.maximum(dot(x_e, W(f'we1c{i}')) + u_e + W(f'be1{i}'), 0.0)
            e = dot(h_e, W(f'we2{i}')) + W(f'be2{i}')

            # rho_ev = Avg over incoming edges per receiver: (R^T @ e) * inv_deg
            agg_ev = lax.dot_general(r_oh, e, (((0,), (0,)), ((), ())),
                                     preferred_element_type=f32) * inv_deg   # [Np, GH]

            # phi_v on [agg_ev, v] (+ u folded into the bias)
            u_v = dot(u, W(f'wv1u{i}'))
            x_v = jnp.concatenate([agg_ev, v], axis=-1)                 # [Np, 2GH]
            h_v = jnp.maximum(dot(x_v, W(f'wv1c{i}')) + u_v + W(f'bv1{i}'), 0.0)
            v = dot(h_v, W(f'wv2{i}')) + W(f'bv2{i}')

            # rho_eu / rho_vu = Avg ; phi_u on [agg_eu, agg_vu] (+ u folded into the bias)
            agg_eu = jnp.sum(e[:M], axis=0, keepdims=True) * inv_m
            agg_vu = jnp.sum(v[:N], axis=0, keepdims=True) * inv_n
            u_u = dot(u, W(f'wu1u{i}'))
            x_u = jnp.concatenate([agg_eu, agg_vu], axis=-1)            # [1, 2GH]
            h_u = jnp.maximum(dot(x_u, W(f'wu1c{i}')) + u_u + W(f'bu1{i}'), 0.0)
            u = dot(h_u, W(f'wu2{i}')) + W(f'bu2{i}')

        # ---------------- decoder: per-graph scalar, lane-dense store ----------------
        hd = jnp.maximum(dot(u, W('dec_w1')) + W('dec_b1'), 0.0)
        out_ref[0] = dot(hd, W('dec_proj')) + W('dec_b2')               # [1,128], lanes 0..G-1 valid

    return kernel


def gndeep_forward(weights_slab, offsets, block_idx, feat, sr, dims):
    """feat: [n_groups, Frows, 128] (G lane-packed graphs per group)."""
    M, Mp, N, Np, off_e, off_v, off_u = dims
    n_groups, frows, lanes = feat.shape
    rp = weights_slab.shape[0]
    kernel = _make_kernel(offsets, block_idx, M, Mp, N, Np, off_e, off_v, off_u)

    # VMEM budget from the actual footprint (weights resident + double-buffered
    # feature block + structure), capped at 48 MiB for v7x headroom.
    footprint = (weights_slab.size * 4 + 2 * frows * lanes * 4 + sr.size * 4
                 + 8 * 1024 * 1024)
    vmem_limit = int(min(max(footprint, 16 * 1024 * 1024), 48 * 1024 * 1024))

    out = pl.pallas_call(
        kernel,
        out_shape=jax.ShapeDtypeStruct((n_groups, 1, lanes), jnp.float32),
        grid=(n_groups,),
        in_specs=[
            pl.BlockSpec((rp, lanes), lambda b: (0, 0)),           # weight slab: fetched once, resident
            pl.BlockSpec((1, frows, lanes), lambda b: (b, 0, 0)),  # per-group features (pipelined)
            pl.BlockSpec((2 * Mp, Np), lambda b: (0, 0)),          # shared structure ([S;R])
        ],
        out_specs=pl.BlockSpec((1, 1, lanes), lambda b: (b, 0, 0)),
        compiler_params=pltpu.CompilerParams(
            dimension_semantics=("parallel",),      # v7x: 2 TensorCores split the group axis
            vmem_limit_bytes=vmem_limit),
    )(weights_slab, feat, sr)
    return out[:, 0, :G].reshape(-1)                 # one rank prediction per graph


# ---------------------- graph / edge-mode preprocessing ---------------------
def build_graph_structure(senders, receivers, num_nodes, edge_mode):
    """Host-side equivalent of GNDeep.{default,bi_directional,no_edges,all_edges}.
    All graphs in a batch share this topology."""
    assert edge_mode in ('default', 'bi_directional', 'no_edges', 'all_edges')
    base = list(zip(senders, receivers))

    if edge_mode == 'no_edges':
        edges, src = [], []
    elif edge_mode == 'all_edges':
        base_idx = {}
        for i, ed in enumerate(base):
            base_idx.setdefault(ed, i)
        edges = [(i, j) for i in range(num_nodes) for j in range(num_nodes) if i != j]
        src = [base_idx.get(ed, -1) for ed in edges]
    elif edge_mode == 'bi_directional':
        edges, src, seen = [], [], {}
        for i, ed in enumerate(base):
            if ed not in seen:
                seen[ed] = i; edges.append(ed); src.append(i)
        for i, (s_, r_) in enumerate(base):
            rev = (r_, s_)
            if rev not in seen:                      # reversed edge keeps original attr
                seen[rev] = i; edges.append(rev); src.append(i)
    else:  # 'default'
        edges, src, seen = [], [], {}
        for i, ed in enumerate(base):
            if ed not in seen:
                seen[ed] = i; edges.append(ed); src.append(i)

    present = set(edges)
    for i in range(num_nodes):                        # ensure reflexive edges (synthetic attr 0.0)
        if (i, i) not in present:
            edges.append((i, i)); src.append(-1)

    M = len(edges)
    Mp = -(-M // 8) * 8                               # pad edges to a sublane-tile multiple
    Np = max(-(-num_nodes // 8) * 8, 8)
    s_oh = np.zeros((Mp, Np), np.float32)
    r_oh = np.zeros((Mp, Np), np.float32)
    for k, (s_, r_) in enumerate(edges):
        s_oh[k, s_] = 1.0
        r_oh[k, r_] = 1.0
    deg = r_oh.sum(axis=0)
    inv_deg = np.where(deg > 0, 1.0 / np.maximum(deg, 1.0), 0.0).astype(np.float32)
    return edges, np.asarray(src, np.int64), s_oh, r_oh, inv_deg, M, Mp, Np


def pack_feature_groups(e0_edge, v0_batch, u0_batch, Mp, Np, n_groups):
    """Lane-pack G graphs per group: feat [n_groups, Mp+Np+8, 128]."""
    B, M = e0_edge.shape
    N = v0_batch.shape[1]
    off_e, off_v, off_u = 0, Mp, Mp + Np
    frows = Mp + Np + 8
    feat = np.zeros((n_groups, frows, LANES), np.float32)
    for b in range(n_groups):
        for g in range(G):
            i = b * G + g
            lo = g * H
            feat[b, off_e:off_e + M, lo:lo + H] = e0_edge[i][:, None]   # edge attr repeated over H
            feat[b, off_v:off_v + N, lo:lo + H] = v0_batch[i]
            feat[b, off_u, lo:lo + H] = u0_batch[i]
    return feat, (off_e, off_v, off_u, frows)


# ------------------------------ parameters ---------------------------------
def init_gndeep_raw_params(key, num_core_blocks, shared_weights=False, h=H, de0=1, du0=1):
    keys = iter(jax.random.split(key, 128))

    def lin(shape, fan_in):
        return np.asarray(jax.random.normal(next(keys), shape, jnp.float32)) / np.sqrt(fan_in)

    def bias(*shape):
        return np.asarray(jax.random.normal(next(keys), shape, jnp.float32)) * 0.1

    n_unique = 1 if (shared_weights and num_core_blocks > 0) else num_core_blocks
    block_idx = tuple(0 if shared_weights else i for i in range(num_core_blocks))
    core = []
    for _ in range(n_unique):
        core.append(dict(
            we1=lin((4 * h, h), 4 * h), be1=bias(h), we2=lin((h, h), h), be2=bias(h),
            wv1=lin((3 * h, h), 3 * h), bv1=bias(h), wv2=lin((h, h), h), bv2=bias(h),
            wu1=lin((3 * h, h), 3 * h), bu1=bias(h), wu2=lin((h, h), h), bu2=bias(h)))
    return dict(
        block_idx=block_idx,
        enc_we1=lin((de0, h), de0), enc_be1=bias(h),
        enc_we2=lin((h, h), h),     enc_be2=bias(h),
        enc_wua=lin((h, h), h + du0), enc_wub=lin((du0, h), h + du0), enc_bu1=bias(h),
        enc_wu2=lin((h, h), h),       enc_bu2=bias(h),
        dec_w1=lin((h, h), h), dec_b1=bias(h),
        dec_w2=lin((h,), h),   dec_b2=bias()[()],
        core=core)


def pack_params(raw, inv_deg, Np):
    """Pack every lane-tiled / block-diagonal weight into ONE [R,128] f32 slab."""
    chunks, offsets = [], {}
    n = 0

    def add(name, arr):
        nonlocal n
        arr = np.asarray(arr, np.float32)
        if arr.ndim == 1:
            arr = arr[None, :]
        r, c = arr.shape
        rp = -(-r // 8) * 8
        buf = np.zeros((rp, LANES), np.float32)
        buf[:r, :c] = arr
        offsets[name] = (n, r)
        chunks.append(buf)
        n += rp

    def kron_eye(w):                  # [H,H] -> block-diagonal [GH,GH]
        return np.kron(np.eye(G, dtype=np.float32), np.asarray(w, np.float32))

    def tile_row(b):                  # [H] -> [1,GH]
        return np.tile(np.asarray(b, np.float32).reshape(1, H), (1, G))

    def cat_block(w, parts):          # [parts*H,H] -> [parts*GH,GH], matching lane-concat order
        out = np.zeros((parts * GH, GH), np.float32)
        for c in range(parts):
            for g in range(G):
                out[c * GH + g * H:c * GH + (g + 1) * H, g * H:(g + 1) * H] = w[c * H:(c + 1) * H]
        return out

    add('inv_deg', np.tile(np.asarray(inv_deg, np.float32).reshape(Np, 1), (1, GH)))
    add('enc_we1', tile_row(raw['enc_we1'][0])); add('enc_be1', tile_row(raw['enc_be1']))
    add('enc_we2', kron_eye(raw['enc_we2']));    add('enc_be2', tile_row(raw['enc_be2']))
    add('enc_wua', kron_eye(raw['enc_wua']))
    add('enc_wub', tile_row(raw['enc_wub'][0])); add('enc_bu1', tile_row(raw['enc_bu1']))
    add('enc_wu2', kron_eye(raw['enc_wu2']));    add('enc_bu2', tile_row(raw['enc_bu2']))
    for i, c in enumerate(raw['core']):
        add(f'we1c{i}', cat_block(c['we1'][:3 * H], 3))   # [e, v_send, v_recv] part
        add(f'we1u{i}', kron_eye(c['we1'][3 * H:]))       # u part (folded into bias)
        add(f'be1{i}',  tile_row(c['be1']))
        add(f'we2{i}',  kron_eye(c['we2'])); add(f'be2{i}', tile_row(c['be2']))
        add(f'wv1c{i}', cat_block(c['wv1'][:2 * H], 2))   # [agg_ev, v] part
        add(f'wv1u{i}', kron_eye(c['wv1'][2 * H:]))
        add(f'bv1{i}',  tile_row(c['bv1']))
        add(f'wv2{i}',  kron_eye(c['wv2'])); add(f'bv2{i}', tile_row(c['bv2']))
        add(f'wu1c{i}', cat_block(c['wu1'][:2 * H], 2))   # [agg_eu, agg_vu] part
        add(f'wu1u{i}', kron_eye(c['wu1'][2 * H:]))
        add(f'bu1{i}',  tile_row(c['bu1']))
        add(f'wu2{i}',  kron_eye(c['wu2'])); add(f'bu2{i}', tile_row(c['bu2']))
    add('dec_w1', kron_eye(raw['dec_w1'])); add('dec_b1', tile_row(raw['dec_b1']))
    proj = np.zeros((GH, LANES), np.float32)
    for g in range(G):
        proj[g * H:(g + 1) * H, g] = raw['dec_w2']        # dw2 folded into the lane-group reduction
    add('dec_proj', proj)
    b2 = np.zeros((1, LANES), np.float32); b2[0, :G] = raw['dec_b2']
    add('dec_b2', b2)
    return np.concatenate(chunks, axis=0), offsets


# -------------------------- per-graph NumPy reference -----------------------
def reference_forward(raw, e0_edge, v0, u0, s_oh, r_oh, inv_deg, M, N):
    relu = lambda x: np.maximum(x, 0.0)
    S = s_oh[:M, :N].astype(np.float64)
    R = r_oh[:M, :N].astype(np.float64)
    ideg = inv_deg[:N].astype(np.float64)
    e = relu(e0_edge.astype(np.float64)[:, None] @ raw['enc_we1'] + raw['enc_be1'][None, :])
    e = e @ raw['enc_we2'] + raw['enc_be2'][None, :]
    v = v0.astype(np.float64)
    hu = relu(e.mean(0, keepdims=True) @ raw['enc_wua'] + u0 * raw['enc_wub'] + raw['enc_bu1'][None, :])
    u = hu @ raw['enc_wu2'] + raw['enc_bu2'][None, :]
    for i in raw['block_idx']:
        c = raw['core'][i]
        v_s, v_r = S @ v, R @ v
        x_e = np.concatenate([e, v_s, v_r, np.broadcast_to(u, (M, H))], axis=-1)
        e = relu(x_e @ c['we1'] + c['be1'][None, :]) @ c['we2'] + c['be2'][None, :]
        agg_ev = (R.T @ e) * ideg[:, None]
        x_v = np.concatenate([agg_ev, v, np.broadcast_to(u, (N, H))], axis=-1)
        v = relu(x_v @ c['wv1'] + c['bv1'][None, :]) @ c['wv2'] + c['bv2'][None, :]
        x_u = np.concatenate([e.mean(0, keepdims=True), v.mean(0, keepdims=True), u], axis=-1)
        u = relu(x_u @ c['wu1'] + c['bu1'][None, :]) @ c['wu2'] + c['bu2'][None, :]
    hd = relu(u @ raw['dec_w1'] + raw['dec_b1'][None, :])
    return float((hd @ raw['dec_w2'])[0] + raw['dec_b2'])


if __name__ == "__main__":
    key = jax.random.PRNGKey(0)
    k_e, k_v, k_u, k_p = jax.random.split(key, 4)

    # demo topology (shared across the batch): 8 nodes, 10 directed edges
    num_nodes = 8
    senders   = [0, 1, 2, 3, 4, 5, 6, 7, 0, 2]
    receivers = [1, 2, 3, 4, 5, 6, 7, 0, 4, 6]

    # GNDeep(drop_p=0.5, num_core_blocks=3, edge_mode='default', shared_weights=False)
    num_core_blocks, shared_weights, edge_mode = 3, False, 'default'

    edges, attr_src, s_oh, r_oh, inv_deg, M, Mp, Np = build_graph_structure(
        senders, receivers, num_nodes, edge_mode)          # M=18 -> Mp=24, Np=8

    n_groups = 2                      # grid axis ("parallel"); total batch = 16 graphs
    B = n_groups * G

    attrs_base = np.asarray(jax.random.normal(k_e, (B, len(senders)), jnp.float32))
    v0_batch = np.asarray(jax.random.normal(k_v, (B, num_nodes, H), jnp.float32))
    u0_batch = np.asarray(jax.random.normal(k_u, (B,), jnp.float32))

    # map base edge attrs onto the final (reflexive-completed) edge list
    e0_edge = np.zeros((B, M), np.float32)
    for k, s in enumerate(attr_src):
        if s >= 0:
            e0_edge[:, k] = attrs_base[:, s]

    feat, (off_e, off_v, off_u, frows) = pack_feature_groups(
        e0_edge, v0_batch, u0_batch, Mp, Np, n_groups)

    raw = init_gndeep_raw_params(k_p, num_core_blocks, shared_weights)
    weights_slab, offsets = pack_params(raw, inv_deg, Np)
    sr = np.concatenate([s_oh, r_oh], axis=0)               # [2Mp, Np] stacked one-hots

    out = gndeep_forward(jnp.asarray(weights_slab), offsets, raw['block_idx'],
                         jnp.asarray(feat), jnp.asarray(sr),
                         (M, Mp, num_nodes, Np, off_e, off_v, off_u))
    jax.block_until_ready(out)

    ref = np.array([reference_forward(raw, e0_edge[i], v0_batch[i], float(u0_batch[i]),
                                      s_oh, r_oh, inv_deg, M, num_nodes)
                    for i in range(B)], np.float32)
    np.testing.assert_allclose(np.asarray(out), ref, rtol=0.15, atol=0.15)

    assert out.shape == (B,) and bool(jnp.isfinite(out).all())
    print("KERNEL_OK")
</pallas_src>

<mosaic_0001>
module attributes {stable_mosaic.version = 11 : i64} {
  func.func @kernel(%arg0: i32, %arg1: memref<5848x128xf32, #tpu.memory_space<vmem>>, %arg2: memref<1x40x128xf32, #tpu.memory_space<vmem>>, %arg3: memref<48x8xf32, #tpu.memory_space<vmem>>, %arg4: memref<1x1x128xf32, #tpu.memory_space<vmem>>) attributes {dimension_semantics = [#tpu.dimension_semantics<parallel>], iteration_bounds = array<i64: 2>, scalar_prefetch = 0 : i64, scratch_operands = 0 : i64, tpu.core_type = #tpu.core_type<tc>, window_params = [{pipeline_mode = #tpu.pipeline_mode<synchronous>, transform_indices = @transform_0, window_bounds = array<i64: 5848, 128>}, {transform_indices = @transform_1, window_bounds = array<i64: 1, 40, 128>}, {pipeline_mode = #tpu.pipeline_mode<synchronous>, transform_indices = @transform_2, window_bounds = array<i64: 48, 8>}, {transform_indices = @transform_3, window_bounds = array<i64: 1, 1, 128>}]} {
    %c0 = arith.constant 0 : index
    %c0_0 = arith.constant 0 : index
    %c0_1 = arith.constant 0 : index
    %0 = vector.load %arg2[%c0, %c0_0, %c0_1] : memref<1x40x128xf32, #tpu.memory_space<vmem>>, vector<1x40x128xf32>
    %1 = vector.shape_cast %0 : vector<1x40x128xf32> to vector<40x128xf32>
    %2 = vector.extract_strided_slice %1 {offsets = [0, 0], sizes = [24, 128], strides = [1, 1]} : vector<40x128xf32> to vector<24x128xf32>
    %3 = vector.extract_strided_slice %1 {offsets = [24, 0], sizes = [8, 128], strides = [1, 1]} : vector<40x128xf32> to vector<8x128xf32>
    %4 = vector.extract_strided_slice %1 {offsets = [32, 0], sizes = [1, 128], strides = [1, 1]} : vector<40x128xf32> to vector<1x128xf32>
    %c0_2 = arith.constant 0 : index
    %c0_3 = arith.constant 0 : index
    %5 = vector.load %arg3[%c0_2, %c0_3] : memref<48x8xf32, #tpu.memory_space<vmem>>, vector<48x8xf32>
    %6 = vector.extract_strided_slice %5 {offsets = [24, 0], sizes = [24, 8], strides = [1, 1]} : vector<48x8xf32> to vector<24x8xf32>
    %c0_4 = arith.constant 0 : index
    %c0_5 = arith.constant 0 : index
    %7 = vector.load %arg1[%c0_4, %c0_5] : memref<5848x128xf32, #tpu.memory_space<vmem>>, vector<8x128xf32>
    %c8 = arith.constant 8 : index
    %c0_6 = arith.constant 0 : index
    %8 = vector.load %arg1[%c8, %c0_6] : memref<5848x128xf32, #tpu.memory_space<vmem>>, vector<1x128xf32>
    %9 = vector.broadcast %8 : vector<1x128xf32> to vector<24x128xf32>
    %10 = arith.mulf %2, %9 : vector<24x128xf32>
    %c16 = arith.constant 16 : index
    %c0_7 = arith.constant 0 : index
    %11 = vector.load %arg1[%c16, %c0_7] : memref<5848x128xf32, #tpu.memory_space<vmem>>, vector<1x128xf32>
    %12 = vector.broadcast %11 : vector<1x128xf32> to vector<24x128xf32>
    %13 = arith.addf %10, %12 : vector<24x128xf32>
    %cst = arith.constant 0.000000e+00 : f32
    %14 = vector.broadcast %cst : f32 to vector<24x128xf32>
    %15 = arith.maximumf %13, %14 : vector<24x128xf32>
    %c24 = arith.constant 24 : index
    %c0_8 = arith.constant 0 : index
    %16 = vector.load %arg1[%c24, %c0_8] : memref<5848x128xf32, #tpu.memory_space<vmem>>, vector<128x128xf32>
    %cst_9 = arith.constant dense<0.000000e+00> : vector<24x128xf32>
    %17 = tpu.matmul %15, %16, %cst_9 {dimension_numbers = #tpu.dot_dimension_numbers<[1], [0], [0], [1], [0, 0, 1, 1], [], []>} : vector<24x128xf32>, vector<128x128xf32>, vector<24x128xf32> -> vector<24x128xf32>
    %c152 = arith.constant 152 : index
    %c0_10 = arith.constant 0 : index
    %18 = vector.load %arg1[%c152, %c0_10] : memref<5848x128xf32, #tpu.memory_space<vmem>>, vector<1x128xf32>
    %19 = vector.broadcast %18 : vector<1x128xf32> to vector<24x128xf32>
    %20 = arith.addf %17, %19 : vector<24x128xf32>
    %21 = vector.extract_strided_slice %20 {offsets = [0, 0], sizes = [18, 128], strides = [1, 1]} : vector<24x128xf32> to vector<18x128xf32>
    %cst_11 = arith.constant dense<0.000000e+00> : vector<128xf32>
    %22 = vector.multi_reduction <add>, %21, %cst_11 [0] : vector<18x128xf32> to vector<128xf32>
    %23 = vector.shape_cast %22 : vector<128xf32> to vector<1x128xf32>
    %cst_12 = arith.constant 0.055555556 : f32
    %24 = vector.broadcast %cst_12 : f32 to vector<1x128xf32>
    %25 = arith.mulf %23, %24 : vector<1x128xf32>
    %c160 = arith.constant 160 : index
    %c0_13 = arith.constant 0 : index
    %26 = vector.load %arg1[%c160, %c0_13] : memref<5848x128xf32, #tpu.memory_space<vmem>>, vector<128x128xf32>
    %cst_14 = arith.constant dense<0.000000e+00> : vector<1x128xf32>
    %27 = tpu.matmul %25, %26, %cst_14 {dimension_numbers = #tpu.dot_dimension_numbers<[1], [0], [0], [1], [0, 0, 1, 1], [], []>} : vector<1x128xf32>, vector<128x128xf32>, vector<1x128xf32> -> vector<1x128xf32>
    %c288 = arith.constant 288 : index
    %c0_15 = arith.constant 0 : index
    %28 = vector.load %arg1[%c288, %c0_15] : memref<5848x128xf32, #tpu.memory_space<vmem>>, vector<1x128xf32>
    %29 = arith.mulf %4, %28 : vector<1x128xf32>
    %30 = arith.addf %27, %29 : vector<1x128xf32>
    %c296 = arith.constant 296 : index
    %c0_16 = arith.constant 0 : index
    %31 = vector.load %arg1[%c296, %c0_16] : memref<5848x128xf32, #tpu.memory_space<vmem>>, vector<1x128xf32>
    %32 = arith.addf %30, %31 : vector<1x128xf32>
    %cst_17 = arith.constant 0.000000e+00 : f32
    %33 = vector.broadcast %cst_17 : f32 to vector<1x128xf32>
    %34 = arith.maximumf %32, %33 : vector<1x128xf32>
    %c304 = arith.constant 304 : index
    %c0_18 = arith.constant 0 : index
    %35 = vector.load %arg1[%c304, %c0_18] : memref<5848x128xf32, #tpu.memory_space<vmem>>, vector<128x128xf32>
    %cst_19 = arith.constant dense<0.000000e+00> : vector<1x128xf32>
    %36 = tpu.matmul %34, %35, %cst_19 {dimension_numbers = #tpu.dot_dimension_numbers<[1], [0], [0], [1], [0, 0, 1, 1], [], []>} : vector<1x128xf32>, vector<128x128xf32>, vector<1x128xf32> -> vector<1x128xf32>
    %c432 = arith.constant 432 : index
    %c0_20 = arith.constant 0 : index
    %37 = vector.load %arg1[%c432, %c0_20] : memref<5848x128xf32, #tpu.memory_space<vmem>>, vector<1x128xf32>
    %38 = arith.addf %36, %37 : vector<1x128xf32>
    %cst_21 = arith.constant dense<0.000000e+00> : vector<48x128xf32>
    %39 = tpu.matmul %5, %3, %cst_21 {dimension_numbers = #tpu.dot_dimension_numbers<[1], [0], [0], [1], [0, 0, 1, 1], [], []>} : vector<48x8xf32>, vector<8x128xf32>, vector<48x128xf32> -> vector<48x128xf32>
    %c824 = arith.constant 824 : index
    %c0_22 = arith.constant 0 : index
    %40 = vector.load %arg1[%c824, %c0_22] : memref<5848x128xf32, #tpu.memory_space<vmem>>, vector<128x128xf32>
    %cst_23 = arith.constant dense<0.000000e+00> : vector<1x128xf32>
    %41 = tpu.matmul %38, %40, %cst_23 {dimension_numbers = #tpu.dot_dimension_numbers<[1], [0], [0], [1], [0, 0, 1, 1], [], []>} : vector<1x128xf32>, vector<128x128xf32>, vector<1x128xf32> -> vector<1x128xf32>
    %42 = vector.extract_strided_slice %39 {offsets = [0, 0], sizes = [24, 128], strides = [1, 1]} : vector<48x128xf32> to vector<24x128xf32>
    %43 = vector.extract_strided_slice %39 {offsets = [24, 0], sizes = [24, 128], strides = [1, 1]} : vector<48x128xf32> to vector<24x128xf32>
    %44 = tpu.concatenate %20, %42, %43 in 1 : vector<24x128xf32>, vector<24x128xf32>, vector<24x128xf32> -> vector<24x384xf32>
    %c440 = arith.constant 440 : index
    %c0_24 = arith.constant 0 : index
    %45 = vector.load %arg1[%c440, %c0_24] : memref<5848x128xf32, #tpu.memory_space<vmem>>, vector<384x128xf32>
    %cst_25 = arith.constant dense<0.000000e+00> : vector<24x128xf32>
    %46 = tpu.matmul %44, %45, %cst_25 {dimension_numbers = #tpu.dot_dimension_numbers<[1], [0], [0], [1], [0, 0, 1, 1], [], []>} : vector<24x384xf32>, vector<384x128xf32>, vector<24x128xf32> -> vector<24x128xf32>
    %47 = vector.broadcast %41 : vector<1x128xf32> to vector<24x128xf32>
    %48 = arith.addf %46, %47 : vector<24x128xf32>
    %c952 = arith.constant 952 : index
    %c0_26 = arith.constant 0 : index
    %49 = vector.load %arg1[%c952, %c0_26] : memref<5848x128xf32, #tpu.memory_space<vmem>>, vector<1x128xf32>
    %50 = vector.broadcast %49 : vector<1x128xf32> to vector<24x128xf32>
    %51 = arith.addf %48, %50 : vector<24x128xf32>
    %cst_27 = arith.constant 0.000000e+00 : f32
    %52 = vector.broadcast %cst_27 : f32 to vector<24x128xf32>
    %53 = arith.maximumf %51, %52 : vector<24x128xf32>
    %c960 = arith.constant 960 : index
    %c0_28 = arith.constant 0 : index
    %54 = vector.load %arg1[%c960, %c0_28] : memref<5848x128xf32, #tpu.memory_space<vmem>>, vector<128x128xf32>
    %cst_29 = arith.constant dense<0.000000e+00> : vector<24x128xf32>
    %55 = tpu.matmul %53, %54, %cst_29 {dimension_numbers = #tpu.dot_dimension_numbers<[1], [0], [0], [1], [0, 0, 1, 1], [], []>} : vector<24x128xf32>, vector<128x128xf32>, vector<24x128xf32> -> vector<24x128xf32>
    %c1088 = arith.constant 1088 : index
    %c0_30 = arith.constant 0 : index
    %56 = vector.load %arg1[%c1088, %c0_30] : memref<5848x128xf32, #tpu.memory_space<vmem>>, vector<1x128xf32>
    %57 = vector.broadcast %56 : vector<1x128xf32> to vector<24x128xf32>
    %58 = arith.addf %55, %57 : vector<24x128xf32>
    %cst_31 = arith.constant dense<0.000000e+00> : vector<8x128xf32>
    %59 = tpu.matmul %6, %58, %cst_31 {dimension_numbers = #tpu.dot_dimension_numbers<[0], [0], [1], [1], [0, 1, 1, 1], [], []>} : vector<24x8xf32>, vector<24x128xf32>, vector<8x128xf32> -> vector<8x128xf32>
    %60 = arith.mulf %59, %7 : vector<8x128xf32>
    %c1352 = arith.constant 1352 : index
    %c0_32 = arith.constant 0 : index
    %61 = vector.load %arg1[%c1352, %c0_32] : memref<5848x128xf32, #tpu.memory_space<vmem>>, vector<128x128xf32>
    %cst_33 = arith.constant dense<0.000000e+00> : vector<1x128xf32>
    %62 = tpu.matmul %38, %61, %cst_33 {dimension_numbers = #tpu.dot_dimension_numbers<[1], [0], [0], [1], [0, 0, 1, 1], [], []>} : vector<1x128xf32>, vector<128x128xf32>, vector<1x128xf32> -> vector<1x128xf32>
    %63 = tpu.concatenate %60, %3 in 1 : vector<8x128xf32>, vector<8x128xf32> -> vector<8x256xf32>
    %c1096 = arith.constant 1096 : index
    %c0_34 = arith.constant 0 : index
    %64 = vector.load %arg1[%c1096, %c0_34] : memref<5848x128xf32, #tpu.memory_space<vmem>>, vector<256x128xf32>
    %cst_35 = arith.constant dense<0.000000e+00> : vector<8x128xf32>
    %65 = tpu.matmul %63, %64, %cst_35 {dimension_numbers = #tpu.dot_dimension_numbers<[1], [0], [0], [1], [0, 0, 1, 1], [], []>} : vector<8x256xf32>, vector<256x128xf32>, vector<8x128xf32> -> vector<8x128xf32>
    %66 = vector.broadcast %62 : vector<1x128xf32> to vector<8x128xf32>
    %67 = arith.addf %65, %66 : vector<8x128xf32>
    %c1480 = arith.constant 1480 : index
    %c0_36 = arith.constant 0 : index
    %68 = vector.load %arg1[%c1480, %c0_36] : memref<5848x128xf32, #tpu.memory_space<vmem>>, vector<1x128xf32>
    %69 = vector.broadcast %68 : vector<1x128xf32> to vector<8x128xf32>
    %70 = arith.addf %67, %69 : vector<8x128xf32>
    %cst_37 = arith.constant 0.000000e+00 : f32
    %71 = vector.broadcast %cst_37 : f32 to vector<8x128xf32>
    %72 = arith.maximumf %70, %71 : vector<8x128xf32>
    %c1488 = arith.constant 1488 : index
    %c0_38 = arith.constant 0 : index
    %73 = vector.load %arg1[%c1488, %c0_38] : memref<5848x128xf32, #tpu.memory_space<vmem>>, vector<128x128xf32>
    %cst_39 = arith.constant dense<0.000000e+00> : vector<8x128xf32>
    %74 = tpu.matmul %72, %73, %cst_39 {dimension_numbers = #tpu.dot_dimension_numbers<[1], [0], [0], [1], [0, 0, 1, 1], [], []>} : vector<8x128xf32>, vector<128x128xf32>, vector<8x128xf32> -> vector<8x128xf32>
    %c1616 = arith.constant 1616 : index
    %c0_40 = arith.constant 0 : index
    %75 = vector.load %arg1[%c1616, %c0_40] : memref<5848x128xf32, #tpu.memory_space<vmem>>, vector<1x128xf32>
    %76 = vector.broadcast %75 : vector<1x128xf32> to vector<8x128xf32>
    %77 = arith.addf %74, %76 : vector<8x128xf32>
    %78 = vector.extract_strided_slice %58 {offsets = [0, 0], sizes = [18, 128], strides = [1, 1]} : vector<24x128xf32> to vector<18x128xf32>
    %cst_41 = arith.constant dense<0.000000e+00> : vector<128xf32>
    %79 = vector.multi_reduction <add>, %78, %cst_41 [0] : vector<18x128xf32> to vector<128xf32>
    %80 = vector.shape_cast %79 : vector<128xf32> to vector<1x128xf32>
    %cst_42 = arith.constant 0.055555556 : f32
    %81 = vector.broadcast %cst_42 : f32 to vector<1x128xf32>
    %82 = arith.mulf %80, %81 : vector<1x128xf32>
    %cst_43 = arith.constant dense<0.000000e+00> : vector<128xf32>
    %83 = vector.multi_reduction <add>, %77, %cst_43 [0] : vector<8x128xf32> to vector<128xf32>
    %84 = vector.shape_cast %83 : vector<128xf32> to vector<1x128xf32>
    %cst_44 = arith.constant 1.250000e-01 : f32
    %85 = vector.broadcast %cst_44 : f32 to vector<1x128xf32>
    %86 = arith.mulf %84, %85 : vector<1x128xf32>
    %c1880 = arith.constant 1880 : index
    %c0_45 = arith.constant 0 : index
    %87 = vector.load %arg1[%c1880, %c0_45] : memref<5848x128xf32, #tpu.memory_space<vmem>>, vector<128x128xf32>
    %cst_46 = arith.constant dense<0.000000e+00> : vector<1x128xf32>
    %88 = tpu.matmul %38, %87, %cst_46 {dimension_numbers = #tpu.dot_dimension_numbers<[1], [0], [0], [1], [0, 0, 1, 1], [], []>} : vector<1x128xf32>, vector<128x128xf32>, vector<1x128xf32> -> vector<1x128xf32>
    %89 = tpu.concatenate %82, %86 in 1 : vector<1x128xf32>, vector<1x128xf32> -> vector<1x256xf32>
    %c1624 = arith.constant 1624 : index
    %c0_47 = arith.constant 0 : index
    %90 = vector.load %arg1[%c1624, %c0_47] : memref<5848x128xf32, #tpu.memory_space<vmem>>, vector<256x128xf32>
    %cst_48 = arith.constant dense<0.000000e+00> : vector<1x128xf32>
    %91 = tpu.matmul %89, %90, %cst_48 {dimension_numbers = #tpu.dot_dimension_numbers<[1], [0], [0], [1], [0, 0, 1, 1], [], []>} : vector<1x256xf32>, vector<256x128xf32>, vector<1x128xf32> -> vector<1x128xf32>
    %92 = arith.addf %91, %88 : vector<1x128xf32>
    %c2008 = arith.constant 2008 : index
    %c0_49 = arith.constant 0 : index
    %93 = vector.load %arg1[%c2008, %c0_49] : memref<5848x128xf32, #tpu.memory_space<vmem>>, vector<1x128xf32>
    %94 = arith.addf %92, %93 : vector<1x128xf32>
    %cst_50 = arith.constant 0.000000e+00 : f32
    %95 = vector.broadcast %cst_50 : f32 to vector<1x128xf32>
    %96 = arith.maximumf %94, %95 : vector<1x128xf32>
    %c2016 = arith.constant 2016 : index
    %c0_51 = arith.constant 0 : index
    %97 = vector.load %arg1[%c2016, %c0_51] : memref<5848x128xf32, #tpu.memory_space<vmem>>, vector<128x128xf32>
    %cst_52 = arith.constant dense<0.000000e+00> : vector<1x128xf32>
    %98 = tpu.matmul %96, %97, %cst_52 {dimension_numbers = #tpu.dot_dimension_numbers<[1], [0], [0], [1], [0, 0, 1, 1], [], []>} : vector<1x128xf32>, vector<128x128xf32>, vector<1x128xf32> -> vector<1x128xf32>
    %c2144 = arith.constant 2144 : index
    %c0_53 = arith.constant 0 : index
    %99 = vector.load %arg1[%c2144, %c0_53] : memref<5848x128xf32, #tpu.memory_space<vmem>>, vector<1x128xf32>
    %100 = arith.addf %98, %99 : vector<1x128xf32>
    %cst_54 = arith.constant dense<0.000000e+00> : vector<48x128xf32>
    %101 = tpu.matmul %5, %77, %cst_54 {dimension_numbers = #tpu.dot_dimension_numbers<[1], [0], [0], [1], [0, 0, 1, 1], [], []>} : vector<48x8xf32>, vector<8x128xf32>, vector<48x128xf32> -> vector<48x128xf32>
    %c2536 = arith.constant 2536 : index
    %c0_55 = arith.constant 0 : index
    %102 = vector.load %arg1[%c2536, %c0_55] : memref<5848x128xf32, #tpu.memory_space<vmem>>, vector<128x128xf32>
    %cst_56 = arith.constant dense<0.000000e+00> : vector<1x128xf32>
    %103 = tpu.matmul %100, %102, %cst_56 {dimension_numbers = #tpu.dot_dimension_numbers<[1], [0], [0], [1], [0, 0, 1, 1], [], []>} : vector<1x128xf32>, vector<128x128xf32>, vector<1x128xf32> -> vector<1x128xf32>
    %104 = vector.extract_strided_slice %101 {offsets = [0, 0], sizes = [24, 128], strides = [1, 1]} : vector<48x128xf32> to vector<24x128xf32>
    %105 = vector.extract_strided_slice %101 {offsets = [24, 0], sizes = [24, 128], strides = [1, 1]} : vector<48x128xf32> to vector<24x128xf32>
    %106 = tpu.concatenate %58, %104, %105 in 1 : vector<24x128xf32>, vector<24x128xf32>, vector<24x128xf32> -> vector<24x384xf32>
    %c2152 = arith.constant 2152 : index
    %c0_57 = arith.constant 0 : index
    %107 = vector.load %arg1[%c2152, %c0_57] : memref<5848x128xf32, #tpu.memory_space<vmem>>, vector<384x128xf32>
    %cst_58 = arith.constant dense<0.000000e+00> : vector<24x128xf32>
    %108 = tpu.matmul %106, %107, %cst_58 {dimension_numbers = #tpu.dot_dimension_numbers<[1], [0], [0], [1], [0, 0, 1, 1], [], []>} : vector<24x384xf32>, vector<384x128xf32>, vector<24x128xf32> -> vector<24x128xf32>
    %109 = vector.broadcast %103 : vector<1x128xf32> to vector<24x128xf32>
    %110 = arith.addf %108, %109 : vector<24x128xf32>
    %c2664 = arith.constant 2664 : index
    %c0_59 = arith.constant 0 : index
    %111 = vector.load %arg1[%c2664, %c0_59] : memref<5848x128xf32, #tpu.memory_space<vmem>>, vector<1x128xf32>
    %112 = vector.broadcast %111 : vector<1x128xf32> to vector<24x128xf32>
    %113 = arith.addf %110, %112 : vector<24x128xf32>
    %cst_60 = arith.constant 0.000000e+00 : f32
    %114 = vector.broadcast %cst_60 : f32 to vector<24x128xf32>
    %115 = arith.maximumf %113, %114 : vector<24x128xf32>
    %c2672 = arith.constant 2672 : index
    %c0_61 = arith.constant 0 : index
    %116 = vector.load %arg1[%c2672, %c0_61] : memref<5848x128xf32, #tpu.memory_space<vmem>>, vector<128x128xf32>
    %cst_62 = arith.constant dense<0.000000e+00> : vector<24x128xf32>
    %117 = tpu.matmul %115, %116, %cst_62 {dimension_numbers = #tpu.dot_dimension_numbers<[1], [0], [0], [1], [0, 0, 1, 1], [], []>} : vector<24x128xf32>, vector<128x128xf32>, vector<24x128xf32> -> vector<24x128xf32>
    %c2800 = arith.constant 2800 : index
    %c0_63 = arith.constant 0 : index
    %118 = vector.load %arg1[%c2800, %c0_63] : memref<5848x128xf32, #tpu.memory_space<vmem>>, vector<1x128xf32>
    %119 = vector.broadcast %118 : vector<1x128xf32> to vector<24x128xf32>
    %120 = arith.addf %117, %119 : vector<24x128xf32>
    %cst_64 = arith.constant dense<0.000000e+00> : vector<8x128xf32>
    %121 = tpu.matmul %6, %120, %cst_64 {dimension_numbers = #tpu.dot_dimension_numbers<[0], [0], [1], [1], [0, 1, 1, 1], [], []>} : vector<24x8xf32>, vector<24x128xf32>, vector<8x128xf32> -> vector<8x128xf32>
    %122 = arith.mulf %121, %7 : vector<8x128xf32>
    %c3064 = arith.constant 3064 : index
    %c0_65 = arith.constant 0 : index
    %123 = vector.load %arg1[%c3064, %c0_65] : memref<5848x128xf32, #tpu.memory_space<vmem>>, vector<128x128xf32>
    %cst_66 = arith.constant dense<0.000000e+00> : vector<1x128xf32>
    %124 = tpu.matmul %100, %123, %cst_66 {dimension_numbers = #tpu.dot_dimension_numbers<[1], [0], [0], [1], [0, 0, 1, 1], [], []>} : vector<1x128xf32>, vector<128x128xf32>, vector<1x128xf32> -> vector<1x128xf32>
    %125 = tpu.concatenate %122, %77 in 1 : vector<8x128xf32>, vector<8x128xf32> -> vector<8x256xf32>
    %c2808 = arith.constant 2808 : index
    %c0_67 = arith.constant 0 : index
    %126 = vector.load %arg1[%c2808, %c0_67] : memref<5848x128xf32, #tpu.memory_space<vmem>>, vector<256x128xf32>
    %cst_68 = arith.constant dense<0.000000e+00> : vector<8x128xf32>
    %127 = tpu.matmul %125, %126, %cst_68 {dimension_numbers = #tpu.dot_dimension_numbers<[1], [0], [0], [1], [0, 0, 1, 1], [], []>} : vector<8x256xf32>, vector<256x128xf32>, vector<8x128xf32> -> vector<8x128xf32>
    %128 = vector.broadcast %124 : vector<1x128xf32> to vector<8x128xf32>
    %129 = arith.addf %127, %128 : vector<8x128xf32>
    %c3192 = arith.constant 3192 : index
    %c0_69 = arith.constant 0 : index
    %130 = vector.load %arg1[%c3192, %c0_69] : memref<5848x128xf32, #tpu.memory_space<vmem>>, vector<1x128xf32>
    %131 = vector.broadcast %130 : vector<1x128xf32> to vector<8x128xf32>
    %132 = arith.addf %129, %131 : vector<8x128xf32>
    %cst_70 = arith.constant 0.000000e+00 : f32
    %133 = vector.broadcast %cst_70 : f32 to vector<8x128xf32>
    %134 = arith.maximumf %132, %133 : vector<8x128xf32>
    %c3200 = arith.constant 3200 : index
    %c0_71 = arith.constant 0 : index
    %135 = vector.load %arg1[%c3200, %c0_71] : memref<5848x128xf32, #tpu.memory_space<vmem>>, vector<128x128xf32>
    %cst_72 = arith.constant dense<0.000000e+00> : vector<8x128xf32>
    %136 = tpu.matmul %134, %135, %cst_72 {dimension_numbers = #tpu.dot_dimension_numbers<[1], [0], [0], [1], [0, 0, 1, 1], [], []>} : vector<8x128xf32>, vector<128x128xf32>, vector<8x128xf32> -> vector<8x128xf32>
    %c3328 = arith.constant 3328 : index
    %c0_73 = arith.constant 0 : index
    %137 = vector.load %arg1[%c3328, %c0_73] : memref<5848x128xf32, #tpu.memory_space<vmem>>, vector<1x128xf32>
    %138 = vector.broadcast %137 : vector<1x128xf32> to vector<8x128xf32>
    %139 = arith.addf %136, %138 : vector<8x128xf32>
    %140 = vector.extract_strided_slice %120 {offsets = [0, 0], sizes = [18, 128], strides = [1, 1]} : vector<24x128xf32> to vector<18x128xf32>
    %cst_74 = arith.constant dense<0.000000e+00> : vector<128xf32>
    %141 = vector.multi_reduction <add>, %140, %cst_74 [0] : vector<18x128xf32> to vector<128xf32>
    %142 = vector.shape_cast %141 : vector<128xf32> to vector<1x128xf32>
    %cst_75 = arith.constant 0.055555556 : f32
    %143 = vector.broadcast %cst_75 : f32 to vector<1x128xf32>
    %144 = arith.mulf %142, %143 : vector<1x128xf32>
    %cst_76 = arith.constant dense<0.000000e+00> : vector<128xf32>
    %145 = vector.multi_reduction <add>, %139, %cst_76 [0] : vector<8x128xf32> to vector<128xf32>
    %146 = vector.shape_cast %145 : vector<128xf32> to vector<1x128xf32>
    %cst_77 = arith.constant 1.250000e-01 : f32
    %147 = vector.broadcast %cst_77 : f32 to vector<1x128xf32>
    %148 = arith.mulf %146, %147 : vector<1x128xf32>
    %c3592 = arith.constant 3592 : index
    %c0_78 = arith.constant 0 : index
    %149 = vector.load %arg1[%c3592, %c0_78] : memref<5848x128xf32, #tpu.memory_space<vmem>>, vector<128x128xf32>
    %cst_79 = arith.constant dense<0.000000e+00> : vector<1x128xf32>
    %150 = tpu.matmul %100, %149, %cst_79 {dimension_numbers = #tpu.dot_dimension_numbers<[1], [0], [0], [1], [0, 0, 1, 1], [], []>} : vector<1x128xf32>, vector<128x128xf32>, vector<1x128xf32> -> vector<1x128xf32>
    %151 = tpu.concatenate %144, %148 in 1 : vector<1x128xf32>, vector<1x128xf32> -> vector<1x256xf32>
    %c3336 = arith.constant 3336 : index
    %c0_80 = arith.constant 0 : index
    %152 = vector.load %arg1[%c3336, %c0_80] : memref<5848x128xf32, #tpu.memory_space<vmem>>, vector<256x128xf32>
    %cst_81 = arith.constant dense<0.000000e+00> : vector<1x128xf32>
    %153 = tpu.matmul %151, %152, %cst_81 {dimension_numbers = #tpu.dot_dimension_numbers<[1], [0], [0], [1], [0, 0, 1, 1], [], []>} : vector<1x256xf32>, vector<256x128xf32>, vector<1x128xf32> -> vector<1x128xf32>
    %154 = arith.addf %153, %150 : vector<1x128xf32>
    %c3720 = arith.constant 3720 : index
    %c0_82 = arith.constant 0 : index
    %155 = vector.load %arg1[%c3720, %c0_82] : memref<5848x128xf32, #tpu.memory_space<vmem>>, vector<1x128xf32>
    %156 = arith.addf %154, %155 : vector<1x128xf32>
    %cst_83 = arith.constant 0.000000e+00 : f32
    %157 = vector.broadcast %cst_83 : f32 to vector<1x128xf32>
    %158 = arith.maximumf %156, %157 : vector<1x128xf32>
    %c3728 = arith.constant 3728 : index
    %c0_84 = arith.constant 0 : index
    %159 = vector.load %arg1[%c3728, %c0_84] : memref<5848x128xf32, #tpu.memory_space<vmem>>, vector<128x128xf32>
    %cst_85 = arith.constant dense<0.000000e+00> : vector<1x128xf32>
    %160 = tpu.matmul %158, %159, %cst_85 {dimension_numbers = #tpu.dot_dimension_numbers<[1], [0], [0], [1], [0, 0, 1, 1], [], []>} : vector<1x128xf32>, vector<128x128xf32>, vector<1x128xf32> -> vector<1x128xf32>
    %c3856 = arith.constant 3856 : index
    %c0_86 = arith.constant 0 : index
    %161 = vector.load %arg1[%c3856, %c0_86] : memref<5848x128xf32, #tpu.memory_space<vmem>>, vector<1x128xf32>
    %162 = arith.addf %160, %161 : vector<1x128xf32>
    %cst_87 = arith.constant dense<0.000000e+00> : vector<48x128xf32>
    %163 = tpu.matmul %5, %139, %cst_87 {dimension_numbers = #tpu.dot_dimension_numbers<[1], [0], [0], [1], [0, 0, 1, 1], [], []>} : vector<48x8xf32>, vector<8x128xf32>, vector<48x128xf32> -> vector<48x128xf32>
    %c4248 = arith.constant 4248 : index
    %c0_88 = arith.constant 0 : index
    %164 = vector.load %arg1[%c4248, %c0_88] : memref<5848x128xf32, #tpu.memory_space<vmem>>, vector<128x128xf32>
    %cst_89 = arith.constant dense<0.000000e+00> : vector<1x128xf32>
    %165 = tpu.matmul %162, %164, %cst_89 {dimension_numbers = #tpu.dot_dimension_numbers<[1], [0], [0], [1], [0, 0, 1, 1], [], []>} : vector<1x128xf32>, vector<128x128xf32>, vector<1x128xf32> -> vector<1x128xf32>
    %166 = vector.extract_strided_slice %163 {offsets = [0, 0], sizes = [24, 128], strides = [1, 1]} : vector<48x128xf32> to vector<24x128xf32>
    %167 = vector.extract_strided_slice %163 {offsets = [24, 0], sizes = [24, 128], strides = [1, 1]} : vector<48x128xf32> to vector<24x128xf32>
    %168 = tpu.concatenate %120, %166, %167 in 1 : vector<24x128xf32>, vector<24x128xf32>, vector<24x128xf32> -> vector<24x384xf32>
    %c3864 = arith.constant 3864 : index
    %c0_90 = arith.constant 0 : index
    %169 = vector.load %arg1[%c3864, %c0_90] : memref<5848x128xf32, #tpu.memory_space<vmem>>, vector<384x128xf32>
    %cst_91 = arith.constant dense<0.000000e+00> : vector<24x128xf32>
    %170 = tpu.matmul %168, %169, %cst_91 {dimension_numbers = #tpu.dot_dimension_numbers<[1], [0], [0], [1], [0, 0, 1, 1], [], []>} : vector<24x384xf32>, vector<384x128xf32>, vector<24x128xf32> -> vector<24x128xf32>
    %171 = vector.broadcast %165 : vector<1x128xf32> to vector<24x128xf32>
    %172 = arith.addf %170, %171 : vector<24x128xf32>
    %c4376 = arith.constant 4376 : index
    %c0_92 = arith.constant 0 : index
    %173 = vector.load %arg1[%c4376, %c0_92] : memref<5848x128xf32, #tpu.memory_space<vmem>>, vector<1x128xf32>
    %174 = vector.broadcast %173 : vector<1x128xf32> to vector<24x128xf32>
    %175 = arith.addf %172, %174 : vector<24x128xf32>
    %cst_93 = arith.constant 0.000000e+00 : f32
    %176 = vector.broadcast %cst_93 : f32 to vector<24x128xf32>
    %177 = arith.maximumf %175, %176 : vector<24x128xf32>
    %c4384 = arith.constant 4384 : index
    %c0_94 = arith.constant 0 : index
    %178 = vector.load %arg1[%c4384, %c0_94] : memref<5848x128xf32, #tpu.memory_space<vmem>>, vector<128x128xf32>
    %cst_95 = arith.constant dense<0.000000e+00> : vector<24x128xf32>
    %179 = tpu.matmul %177, %178, %cst_95 {dimension_numbers = #tpu.dot_dimension_numbers<[1], [0], [0], [1], [0, 0, 1, 1], [], []>} : vector<24x128xf32>, vector<128x128xf32>, vector<24x128xf32> -> vector<24x128xf32>
    %c4512 = arith.constant 4512 : index
    %c0_96 = arith.constant 0 : index
    %180 = vector.load %arg1[%c4512, %c0_96] : memref<5848x128xf32, #tpu.memory_space<vmem>>, vector<1x128xf32>
    %181 = vector.broadcast %180 : vector<1x128xf32> to vector<24x128xf32>
    %182 = arith.addf %179, %181 : vector<24x128xf32>
    %cst_97 = arith.constant dense<0.000000e+00> : vector<8x128xf32>
    %183 = tpu.matmul %6, %182, %cst_97 {dimension_numbers = #tpu.dot_dimension_numbers<[0], [0], [1], [1], [0, 1, 1, 1], [], []>} : vector<24x8xf32>, vector<24x128xf32>, vector<8x128xf32> -> vector<8x128xf32>
    %184 = arith.mulf %183, %7 : vector<8x128xf32>
    %c4776 = arith.constant 4776 : index
    %c0_98 = arith.constant 0 : index
    %185 = vector.load %arg1[%c4776, %c0_98] : memref<5848x128xf32, #tpu.memory_space<vmem>>, vector<128x128xf32>
    %cst_99 = arith.constant dense<0.000000e+00> : vector<1x128xf32>
    %186 = tpu.matmul %162, %185, %cst_99 {dimension_numbers = #tpu.dot_dimension_numbers<[1], [0], [0], [1], [0, 0, 1, 1], [], []>} : vector<1x128xf32>, vector<128x128xf32>, vector<1x128xf32> -> vector<1x128xf32>
    %187 = tpu.concatenate %184, %139 in 1 : vector<8x128xf32>, vector<8x128xf32> -> vector<8x256xf32>
    %c4520 = arith.constant 4520 : index
    %c0_100 = arith.constant 0 : index
    %188 = vector.load %arg1[%c4520, %c0_100] : memref<5848x128xf32, #tpu.memory_space<vmem>>, vector<256x128xf32>
    %cst_101 = arith.constant dense<0.000000e+00> : vector<8x128xf32>
    %189 = tpu.matmul %187, %188, %cst_101 {dimension_numbers = #tpu.dot_dimension_numbers<[1], [0], [0], [1], [0, 0, 1, 1], [], []>} : vector<8x256xf32>, vector<256x128xf32>, vector<8x128xf32> -> vector<8x128xf32>
    %190 = vector.broadcast %186 : vector<1x128xf32> to vector<8x128xf32>
    %191 = arith.addf %189, %190 : vector<8x128xf32>
    %c4904 = arith.constant 4904 : index
    %c0_102 = arith.constant 0 : index
    %192 = vector.load %arg1[%c4904, %c0_102] : memref<5848x128xf32, #tpu.memory_space<vmem>>, vector<1x128xf32>
    %193 = vector.broadcast %192 : vector<1x128xf32> to vector<8x128xf32>
    %194 = arith.addf %191, %193 : vector<8x128xf32>
    %cst_103 = arith.constant 0.000000e+00 : f32
    %195 = vector.broadcast %cst_103 : f32 to vector<8x128xf32>
    %196 = arith.maximumf %194, %195 : vector<8x128xf32>
    %c4912 = arith.constant 4912 : index
    %c0_104 = arith.constant 0 : index
    %197 = vector.load %arg1[%c4912, %c0_104] : memref<5848x128xf32, #tpu.memory_space<vmem>>, vector<128x128xf32>
    %cst_105 = arith.constant dense<0.000000e+00> : vector<8x128xf32>
    %198 = tpu.matmul %196, %197, %cst_105 {dimension_numbers = #tpu.dot_dimension_numbers<[1], [0], [0], [1], [0, 0, 1, 1], [], []>} : vector<8x128xf32>, vector<128x128xf32>, vector<8x128xf32> -> vector<8x128xf32>
    %c5040 = arith.constant 5040 : index
    %c0_106 = arith.constant 0 : index
    %199 = vector.load %arg1[%c5040, %c0_106] : memref<5848x128xf32, #tpu.memory_space<vmem>>, vector<1x128xf32>
    %200 = vector.broadcast %199 : vector<1x128xf32> to vector<8x128xf32>
    %201 = arith.addf %198, %200 : vector<8x128xf32>
    %202 = vector.extract_strided_slice %182 {offsets = [0, 0], sizes = [18, 128], strides = [1, 1]} : vector<24x128xf32> to vector<18x128xf32>
    %cst_107 = arith.constant dense<0.000000e+00> : vector<128xf32>
    %203 = vector.multi_reduction <add>, %202, %cst_107 [0] : vector<18x128xf32> to vector<128xf32>
    %204 = vector.shape_cast %203 : vector<128xf32> to vector<1x128xf32>
    %cst_108 = arith.constant 0.055555556 : f32
    %205 = vector.broadcast %cst_108 : f32 to vector<1x128xf32>
    %206 = arith.mulf %204, %205 : vector<1x128xf32>
    %cst_109 = arith.constant dense<0.000000e+00> : vector<128xf32>
    %207 = vector.multi_reduction <add>, %201, %cst_109 [0] : vector<8x128xf32> to vector<128xf32>
    %208 = vector.shape_cast %207 : vector<128xf32> to vector<1x128xf32>
    %cst_110 = arith.constant 1.250000e-01 : f32
    %209 = vector.broadcast %cst_110 : f32 to vector<1x128xf32>
    %210 = arith.mulf %208, %209 : vector<1x128xf32>
    %c5304 = arith.constant 5304 : index
    %c0_111 = arith.constant 0 : index
    %211 = vector.load %arg1[%c5304, %c0_111] : memref<5848x128xf32, #tpu.memory_space<vmem>>, vector<128x128xf32>
    %cst_112 = arith.constant dense<0.000000e+00> : vector<1x128xf32>
    %212 = tpu.matmul %162, %211, %cst_112 {dimension_numbers = #tpu.dot_dimension_numbers<[1], [0], [0], [1], [0, 0, 1, 1], [], []>} : vector<1x128xf32>, vector<128x128xf32>, vector<1x128xf32> -> vector<1x128xf32>
    %213 = tpu.concatenate %206, %210 in 1 : vector<1x128xf32>, vector<1x128xf32> -> vector<1x256xf32>
    %c5048 = arith.constant 5048 : index
    %c0_113 = arith.constant 0 : index
    %214 = vector.load %arg1[%c5048, %c0_113] : memref<5848x128xf32, #tpu.memory_space<vmem>>, vector<256x128xf32>
    %cst_114 = arith.constant dense<0.000000e+00> : vector<1x128xf32>
    %215 = tpu.matmul %213, %214, %cst_114 {dimension_numbers = #tpu.dot_dimension_numbers<[1], [0], [0], [1], [0, 0, 1, 1], [], []>} : vector<1x256xf32>, vector<256x128xf32>, vector<1x128xf32> -> vector<1x128xf32>
    %216 = arith.addf %215, %212 : vector<1x128xf32>
    %c5432 = arith.constant 5432 : index
    %c0_115 = arith.constant 0 : index
    %217 = vector.load %arg1[%c5432, %c0_115] : memref<5848x128xf32, #tpu.memory_space<vmem>>, vector<1x128xf32>
    %218 = arith.addf %216, %217 : vector<1x128xf32>
    %cst_116 = arith.constant 0.000000e+00 : f32
    %219 = vector.broadcast %cst_116 : f32 to vector<1x128xf32>
    %220 = arith.maximumf %218, %219 : vector<1x128xf32>
    %c5440 = arith.constant 5440 : index
    %c0_117 = arith.constant 0 : index
    %221 = vector.load %arg1[%c5440, %c0_117] : memref<5848x128xf32, #tpu.memory_space<vmem>>, vector<128x128xf32>
    %cst_118 = arith.constant dense<0.000000e+00> : vector<1x128xf32>
    %222 = tpu.matmul %220, %221, %cst_118 {dimension_numbers = #tpu.dot_dimension_numbers<[1], [0], [0], [1], [0, 0, 1, 1], [], []>} : vector<1x128xf32>, vector<128x128xf32>, vector<1x128xf32> -> vector<1x128xf32>
    %c5568 = arith.constant 5568 : index
    %c0_119 = arith.constant 0 : index
    %223 = vector.load %arg1[%c5568, %c0_119] : memref<5848x128xf32, #tpu.memory_space<vmem>>, vector<1x128xf32>
    %224 = arith.addf %222, %223 : vector<1x128xf32>
    %c5576 = arith.constant 5576 : index
    %c0_120 = arith.constant 0 : index
    %225 = vector.load %arg1[%c5576, %c0_120] : memref<5848x128xf32, #tpu.memory_space<vmem>>, vector<128x128xf32>
    %cst_121 = arith.constant dense<0.000000e+00> : vector<1x128xf32>
    %226 = tpu.matmul %224, %225, %cst_121 {dimension_numbers = #tpu.dot_dimension_numbers<[1], [0], [0], [1], [0, 0, 1, 1], [], []>} : vector<1x128xf32>, vector<128x128xf32>, vector<1x128xf32> -> vector<1x128xf32>
    %c5704 = arith.constant 5704 : index
    %c0_122 = arith.constant 0 : index
    %227 = vector.load %arg1[%c5704, %c0_122] : memref<5848x128xf32, #tpu.memory_space<vmem>>, vector<1x128xf32>
    %228 = arith.addf %226, %227 : vector<1x128xf32>
    %cst_123 = arith.constant 0.000000e+00 : f32
    %229 = vector.broadcast %cst_123 : f32 to vector<1x128xf32>
    %230 = arith.maximumf %228, %229 : vector<1x128xf32>
    %c5712 = arith.constant 5712 : index
    %c0_124 = arith.constant 0 : index
    %231 = vector.load %arg1[%c5712, %c0_124] : memref<5848x128xf32, #tpu.memory_space<vmem>>, vector<128x128xf32>
    %cst_125 = arith.constant dense<0.000000e+00> : vector<1x128xf32>
    %232 = tpu.matmul %230, %231, %cst_125 {dimension_numbers = #tpu.dot_dimension_numbers<[1], [0], [0], [1], [0, 0, 1, 1], [], []>} : vector<1x128xf32>, vector<128x128xf32>, vector<1x128xf32> -> vector<1x128xf32>
    %c5840 = arith.constant 5840 : index
    %c0_126 = arith.constant 0 : index
    %233 = vector.load %arg1[%c5840, %c0_126] : memref<5848x128xf32, #tpu.memory_space<vmem>>, vector<1x128xf32>
    %234 = arith.addf %232, %233 : vector<1x128xf32>
    %c0_127 = arith.constant 0 : index
    %c0_128 = arith.constant 0 : index
    %c0_129 = arith.constant 0 : index
    %235 = vector.load %arg4[%c0_127, %c0_128, %c0_129] : memref<1x1x128xf32, #tpu.memory_space<vmem>>, vector<1x1x128xf32>
    %236 = vector.shape_cast %235 : vector<1x1x128xf32> to vector<1x128xf32>
    %237 = vector.shape_cast %234 : vector<1x128xf32> to vector<1x1x128xf32>
    tpu.vector_store %arg4[%c0_127, %c0_128, %c0_129], %237 {strides = array<i32>} : memref<1x1x128xf32, #tpu.memory_space<vmem>>, vector<1x1x128xf32>,
    return
  }
  func.func @transform_0(%arg0: i32) -> (i32, i32) {
    %c0_i32 = arith.constant 0 : i32
    %c0_i32_0 = arith.constant 0 : i32
    %c0_i32_1 = arith.constant 0 : i32
    return %c0_i32, %c0_i32_0 : i32, i32
  }
  func.func @transform_1(%arg0: i32) -> (i32, i32, i32) {
    %c0_i32 = arith.constant 0 : i32
    %c0_i32_0 = arith.constant 0 : i32
    %c0_i32_1 = arith.constant 0 : i32
    return %arg0, %c0_i32, %c0_i32_0 : i32, i32, i32
  }
  func.func @transform_2(%arg0: i32) -> (i32, i32) {
    %c0_i32 = arith.constant 0 : i32
    %c0_i32_0 = arith.constant 0 : i32
    %c0_i32_1 = arith.constant 0 : i32
    return %c0_i32, %c0_i32_0 : i32, i32
  }
  func.func @transform_3(%arg0: i32) -> (i32, i32, i32) {
    %c0_i32 = arith.constant 0 : i32
    %c0_i32_0 = arith.constant 0 : i32
    %c0_i32_1 = arith.constant 0 : i32
    return %arg0, %c0_i32, %c0_i32_0 : i32, i32, i32
  }
}

</mosaic_0001>

<bundles_post_ra>
// kernel: tpu_custom_call.1
= control target key start
LH: loop header
LB: loop body
LE: loop exit
PB: predicated region body
PF: predicated region fallthrough
CT: control target
= control target key end

     0   :  { %8 = vsyncpa [#allocation3], 0  ;;  %s8103_s0 = inlined_call_operand.hbm [shape: f32[5848,128], index: 0, kind: input, shape index: {}]   ;;  %s8104_s1 = inlined_call_operand.hbm [shape: f32[2,40,128], index: 1, kind: input, shape index: {}]   ;;  %s8105_s2 = inlined_call_operand.vmem [shape: f32[48,8], index: 2, kind: input, shape index: {}]   ;;  %s8106_s3 = inlined_call_operand.hbm [shape: f32[2,1,128], index: 3, kind: output, shape index: {}]  }
   0x1   :  { %9 = vsyncpa [#allocation6], 0 }
   0x2   :  { %11 = vsyncpa [#allocation6 + $0x1], 0 }
   0x3   :  { %12 = vsyncpa [#allocation4], 0 }
   0x4   :  { %14 = vsyncpa [#allocation4 + $0x1], 0  ;;  %s7367_s12 = smov 0   ;;  %s7369_s13 = smov 0  }
   0x5   :  { %s7371_s14 = smov 0   ;;  %s7373_s15 = smov 0  }
   0x6 LB: > { %s7388_s16 = sadd.s32 4294967295, %s7337_s15   ;;  %s4329_s17 = sadd.s32 4294967294, %s7337_s15   ;;  %s7337_s15 = sphi %s7373_s15, %s8126_s15   ;;  %s7333_s14 = sphi %s7371_s14, %s8125_s14   ;;  %s7329_s13 = sphi %s7369_s13, %s8124_s13   ;;  %s7325_s12 = sphi %s7367_s12, %s8123_s12  }
   0x7   : > { %p61_p0 = scmp.ne.s32.totalorder %s7329_s13, %s7325_s12  ;;  %p8107_p1 = scmp.eq.s32.totalorder %s7388_s16, 0 }
   0x8   : > { %p112_p3 = scmp.eq.s32.totalorder %s4329_s17, 1  ;;  %p4330_p5 = scmp.ge.s32.totalorder %s7337_s15, 1 }
   0x9   : > { %p7397_p4 = por %p8107_p1, %p61_p0  ;;  %p119_p7 = scmp.lt.s32.totalorder %s7337_s15, 3 }
   0xa   : > { %p7402_p6 = por %p112_p3, %p61_p0  ;;  %s7339_s21 = smov [#allocation2]  }
   0xb   : > { %s8110_s18 = scalar_select %p7397_p4, 1, 0 }
   0xc   : > { %s8111_s19 = scalar_select %p7402_p6, 1, 0 }
   0xd   : > { %p7407_p8 = pnand %p4330_p5, %p119_p7  ;;  %s131_s22 = sshll.u32 %s7339_s21, 4  ;;  %s7411_s22 = int_to_ptr.vmem [resolvable:$true] %s131_s22 }
   0xe   : > { %s7423_s24 = sadd.s32 1, %s7337_s15   ;;  %s48_s25 = sadd.s32 1, %s7333_s14 }
   0xf   : > { %s8112_s20 = scalar_select %p7407_p8, 1, 0 }
  0x10   : > { %p7141_p9 = pneg %p7407_p8  ;;  %s45_s26 = ssub.s32 %s7337_s15, %s7423_s24 }
  0x11   : > { %s7209_s29 = scalar_lea.hbm %s8103_s0, 93568 }
  0x12   : > { %p7418_p11 = pnand %p7141_p9, %p8107_p1  ;;  %p7210_p12 = scmp.ne.s32.totalorder %s8103_s0, %s7209_s29 }
  0x13   : > { %p7216_p5 = scmp.lt.u32.totalorder %s7209_s29, %s8103_s0 }
  0x14   : > { %p7211_p13 = pneg %p7418_p11 }
  0x16   : > { %p7212_p0 = pnand %p7211_p13, %p7210_p12 }
  0x18   : > { %p7213_p3 = pneg %p7212_p0 }
  0x1a   : > { %p7218_p7 = pnand %p7216_p5, %p7213_p3 }
  0x1c   : > { %7221 = shalt.err (!%p7218_p7)
}
  0x1d   : > { %s7222_s7 = scalar_lea.vmem %s7411_s22, 93568  ;;  %p7230_p2 = scmp.lt.s32.totalorder %s7411_s22, %s7411_s22 }
  0x1e   : > { %p7223_p9 = scmp.ne.s32.totalorder %s7411_s22, %s7222_s7  ;;  %p7231_p6 = scmp.lt.s32.totalorder %s7222_s7, %s7222_s7 }
  0x20   : > { %p7225_p10 = pnand %p7223_p9, %p7211_p13  ;;  %p7232_p4 = por %p7231_p6, %p7230_p2 }
  0x22   : > { %p7226_p1 = pneg %p7225_p10 }
  0x24   : > { %p7233_p8 = pnand %p7232_p4, %p7226_p1 }
  0x26   : > { %7236 = shalt.err (!%p7233_p8)
}
  0x27   : > { %s7340_s8 = smov 128   ;;  %s7341_s9 = smov 8  }
  0x28   : > { %7144 = dma.hbm_to_vmem [thread:$0]  (!%p7418_p11), %s8103_s0, 93568, %s7411_s22, [#allocation3], %s7340_s8, %s7340_s8, %s7341_s9  }
  0x29   : > { %p46_p1 = scmp.eq.s32.totalorder %s45_s26, 0  ;;  %p55_p2 = scmp.ne.s32.totalorder %s7333_s14, %s7329_s13 }
  0x2a   : > { %p56_p4 = scmp.eq.s32.totalorder %s7337_s15, 0  ;;  %p7154_p6 = scmp.lt.s32.totalorder %s7337_s15, 2 }
  0x2b   : > { %s7457_s17 = scalar_select %p46_p1, %s7333_s14, %s48_s25  }
  0x2c   : > { %p57_p8 = por %p56_p4, %p55_p2  ;;  %p8114_p10 = scmp.eq.s32.totalorder %s7388_s16, 1 }
  0x2d   : > { %s148_s23 = sand.u32 1, %s7333_s14   ;;  %s7131_s27 = smul.u32 640, %s7337_s15 }
  0x2e   : > { %p7461_p12 = por %p8114_p10, %p55_p2  ;;  %s7130_s28 = smul.u32 40, %s148_s23 }
  0x2f   : > { %p7467_p13 = pnand %p7154_p6, %p57_p8  ;;  %s7474_s25 = scalar_lea.hbm %s8104_s1, %s7131_s27 }
  0x30   : > { %s152_s30 = scalar_lea.vmem [#allocation5], %s7130_s28  ;;  %s7478_s5 = scalar_lea.sflag [#allocation6], %s148_s23 }
  0x31   : > { %s159_s4 = sshll.u32 %s152_s30, 4  ;;  %s7237_s6 = scalar_lea.hbm %s7474_s25, 640  ;;  %s7476_s4 = int_to_ptr.vmem [resolvable:$true] %s159_s4 }
  0x32   : > { %p7238_p11 = scmp.ne.s32.totalorder %s7474_s25, %s7237_s6  ;;  %p7239_p0 = pneg %p7467_p13 }
  0x33   : > { %s7242_s11 = scalar_lea.hbm %s8104_s1, 1280  ;;  %p7243_p7 = scmp.lt.u32.totalorder %s7474_s25, %s8104_s1 }
  0x34   : > { %p7240_p3 = pnand %p7239_p0, %p7238_p11  ;;  %p7244_p9 = scmp.lt.u32.totalorder %s7242_s11, %s7237_s6 }
  0x35   : > { %p7246_p2 = scmp.lt.u32.totalorder %s7237_s6, %s7474_s25 }
  0x36   : > { %p7241_p5 = pneg %p7240_p3  ;;  %p7245_p1 = por %p7244_p9, %p7243_p7 }
  0x38   : > { %p7247_p4 = por %p7246_p2, %p7245_p1 }
  0x3a   : > { %p7248_p6 = pnand %p7247_p4, %p7241_p5 }
  0x3c   : > { %7251 = shalt.err (!%p7248_p6)
}
  0x3d   : > { %s7252_s23 = scalar_lea.vmem %s7476_s4, 640  ;;  %s7342_s28 = smov [#allocation5]  }
  0x3e   : > { %p7253_p8 = scmp.ne.s32.totalorder %s7476_s4, %s7252_s23  ;;  %s7257_s26 = sshll.u32 %s7342_s28, 4  ;;  %s7258_s26 = int_to_ptr.vmem [resolvable:$false] %s7257_s26 }
  0x3f   : > { %s7259_s30 = scalar_lea.vmem %s7258_s26, 1280  ;;  %p7260_p3 = scmp.lt.s32.totalorder %s7476_s4, %s7258_s26 }
  0x40   : > { %p7255_p10 = pnand %p7253_p8, %p7239_p0  ;;  %p7261_p7 = scmp.lt.s32.totalorder %s7259_s30, %s7252_s23 }
  0x42   : > { %p7256_p11 = pneg %p7255_p10  ;;  %p7262_p9 = por %p7261_p7, %p7260_p3 }
  0x44   : > { %p7263_p1 = pnand %p7262_p9, %p7256_p11 }
  0x46   : > { %7266 = shalt.err (!%p7263_p1)
}
  0x47   : > { %7148 = dma.hbm_to_vmem [thread:$0]  (!%p7467_p13), %s7474_s25, 640, %s7476_s4, %s7478_s5, %s7340_s8, %s7340_s8, %s7341_s9  }
  0x48   : > { %p8117_p0 = scmp.ne.s32.totalorder %s8112_s20, 0 }
  0x49   : > { %p8118_p5 = scmp.eq.s32.totalorder (!%p8117_p0), %s7388_s16, 0 }
  0x4a   : > { %171 = sbr.rel (%p8117_p0) target bundleno = 5958 (0x1746), region = 32 }
  0x51   : > { %7312 = dma.done.wait (%p8118_p5), [#allocation3], 93568   ;;  %p8119_p2 = pmov %p8118_p5 }
  0x52   : > { %s7516_s6 = sand.u32 1, %s7329_s13   ;;  %p8120_p13 = scmp.ne.s32.totalorder %s8110_s18, 0 }
  0x53   : > { %7314 = vsyncadd (%p8119_p2), [#allocation3], 4294873728  ;;  %s7132_s29 = smul.u32 40, %s7516_s6  ;;  %s178_s7 = scalar_lea.sflag [#allocation6], %s7516_s6 }
  0x55   : > { %s7520_s10 = scalar_lea.vmem [#allocation5], %s7132_s29 }
  0x56   : > { %7316 = dma.done.wait (%p8120_p13), %s178_s7, 640  }
  0x57   : > { %7318 = vsyncadd (%p8120_p13), %s178_s7, 4294966656  ;;  %v7343_v0 = vmov 0.0|0.0   ;;  %vm7344_vm0 = vmmov 0   ;;  %v7345_v1 = vmov 0.0   ;;  %v234_v2 = vld [vmem:[#allocation2 + $0x18] sm:$0xff]  ;;  %v235_v3 = vld [vmem:[#allocation2 + $0x20] sm:$0xff] }
  0x58   : > { %6209 = vmatprep.subr.bf16.mxu0 %v7343_v0  ;;  %5229 = vmatprep.mubr.msk.f32.mxu0 %vm7344_vm0, %v7345_v1  ;;  %v236_v4 = vld [vmem:[#allocation2 + $0x28] sm:$0xff]  ;;  %v6210_v5 = vpack.c.bf16 %v235_v3, %v234_v2  ;;  %v237_v6 = vld [vmem:[#allocation2 + $0x30] sm:$0xff]  ;;  %v238_v8 = vld [vmem:[#allocation2 + $0x38] sm:$0xff]  ;;  %vm336_vm1 = vcmask 1041408   ;;  %vm524_vm2 = vcmask 64512   ;;  %vm1080_vm3 = vcmask 195584  }
  0x59   : > { %6233 = vmatprep.subr.bf16.mxu1 %v7343_v0  ;;  %5270 = vmatprep.mubr.msk.f32.mxu1 %vm7344_vm0, %v7345_v1  ;;  %v6213_v7 = vpack.c.bf16 %v237_v6, %v236_v4  ;;  %v239_v9 = vld [vmem:[#allocation2 + $0x40] sm:$0xff]  ;;  %v347_v12 = vld [vmem:[#allocation2 + $0xa8] sm:$0xff]  ;;  %v241_v14 = vld [vmem:[#allocation2 + $0x50] sm:$0xff]  ;;  %s4372_s8 = sshll.u32 %s7388_s16, 4  ;;  %s202_s9 = scalar_lea.vmem [#allocation7], %s7516_s6 }
  0x5a   : > { %6211 = vmatpush3.bf16.msra.mxu0 %v6210_v5  ;;  %v6216_v10 = vpack.c.bf16 %v239_v9, %v238_v8  ;;  %v346_v11 = vld [vmem:[#allocation2 + $0xa0] sm:$0xff]  ;;  %v240_v13 = vld [vmem:[#allocation2 + $0x48] sm:$0xff]  ;;  %v242_v17 = vld [vmem:[#allocation2 + $0x58] sm:$0xff]  ;;  %s4251_s25 = sshll.u32 %s202_s9, 4  ;;  %s8059_s11 = scalar_lea.hbm %s8106_s3, %s4372_s8  ;;  %s8061_s25 = int_to_ptr.vmem [resolvable:$true] %s4251_s25 }
  0x5b   : > { %6212 = vmatprep.subr.bf16.mxu0 %v7343_v0  ;;  %v6234_v15 = vpack.c.bf16 %v347_v12, %v346_v11  ;;  %v6219_v16 = vpack.c.bf16 %v241_v14, %v240_v13  ;;  %v243_v18 = vld [vmem:[#allocation2 + $0x60] sm:$0xff]  ;;  %v244_v20 = vld [vmem:[#allocation2 + $0x68] sm:$0xff]  ;;  %v245_v21 = vld [vmem:[#allocation2 + $0x70] sm:$0xff]  ;;  %s4239_s27 = scalar_lea.sflag [#allocation4], %s7516_s6  ;;  %s7267_s22 = scalar_lea.vmem %s8061_s25, 16 }
  0x5c   : > { %v6222_v19 = vpack.c.bf16 %v243_v18, %v242_v17  ;;  %v6225_v22 = vpack.c.bf16 %v245_v21, %v244_v20  ;;  %v203_v23 = vld [vmem:[%s7520_s10] sm:$0xff]  ;;  %v4336_v24 = vld [vmem:[#allocation2 + $0x8] ss:$0 sm:$0xff]  ;;  %v4337_v29 = vld [vmem:[#allocation2 + $0x10] ss:$0 sm:$0xff]  ;;  %p7268_p4 = scmp.ne.s32.totalorder %s8061_s25, %s7267_s22  ;;  %s7346_s16 = smov [#allocation7]  }
  0x5d   : > { %6235 = vmatpush3.bf16.msra.mxu1 %v6234_v15  ;;  %v246_v25 = vld [vmem:[#allocation2 + $0x78] sm:$0xff]  ;;  %v247_v26 = vld [vmem:[#allocation2 + $0x80] sm:$0xff]  ;;  %v220_v27 = vmul.f32 %v4336_v24, %v203_v23  ;;  %v248_v31 = vld [vmem:[#allocation2 + $0x88] sm:$0xff]  ;;  %s7271_s23 = sshll.u32 %s7346_s16, 4  ;;  %s7272_s23 = int_to_ptr.vmem [resolvable:$false] %s7271_s23 }
  0x5e   : > { %6214 = vmatpush3.bf16.msra.mxu0 %v6213_v7  ;;  %6236 = vmatprep.subr.bf16.mxu1 %v7343_v0  ;;  %v6228_v28 = vpack.c.bf16 %v247_v26, %v246_v25  ;;  %v204_v30 = vld [vmem:[%s7520_s10 + $0x8] sm:$0xff]  ;;  %v249_v32 = vld [vmem:[#allocation2 + $0x90] sm:$0xff]  ;;  %v349_v44 = vld [vmem:[#allocation2 + $0xb8] sm:$0xff]  ;;  %p7269_p6 = pnand %p7268_p4, %p7461_p12  ;;  %s7273_s28 = scalar_lea.vmem %s7272_s23, 32 }
  0x5f   : > { %6215 = vmatprep.subr.bf16.mxu0 %v7343_v0  ;;  %v228_v33 = vadd.f32 %v4337_v29, %v220_v27  ;;  %v221_v34 = vmul.f32 %v4336_v24, %v204_v30  ;;  %v6231_v35 = vpack.c.bf16 %v249_v32, %v248_v31  ;;  %v205_v36 = vld [vmem:[%s7520_s10 + $0x10] sm:$0xff]  ;;  %v350_v46 = vld [vmem:[#allocation2 + $0xc0] sm:$0xff]  ;;  %v353_v50 = vld [vmem:[#allocation2 + $0xd8] sm:$0xff]  ;;  %p7274_p10 = scmp.lt.s32.totalorder %s8061_s25, %s7272_s23  ;;  %p7275_p11 = scmp.lt.s32.totalorder %s7273_s28, %s7267_s22 }
  0x60   : > { %v222_v39 = vmul.f32 %v4336_v24, %v205_v36  ;;  %v348_v43 = vld [vmem:[#allocation2 + $0xb0] sm:$0xff]  ;;  %v351_v47 = vld [vmem:[#allocation2 + $0xc8] sm:$0xff]  ;;  %v354_v52 = vld [vmem:[#allocation2 + $0xe0] sm:$0xff]  ;;  %p7270_p8 = pneg %p7269_p6 }
  0x61   : > { %v231_v37 = vmax.f32 %v228_v33, 0.0  ;;  %v229_v38 = vadd.f32 %v4337_v29, %v221_v34  ;;  %v6237_v45 = vpack.c.bf16 %v349_v44, %v348_v43  ;;  %v6240_v48 = vpack.c.bf16 %v351_v47, %v350_v46  ;;  %v352_v49 = vld [vmem:[#allocation2 + $0xd0] sm:$0xff]  ;;  %v355_v53 = vld [vmem:[#allocation2 + $0xe8] sm:$0xff]  ;;  %v357_v56 = vld [vmem:[#allocation2 + $0xf8] sm:$0xff]  ;;  %p7276_p3 = por %p7275_p11, %p7274_p10 }
  0x62   : > { %6217 = vmatpush3.bf16.msra.mxu0 %v6216_v10  ;;  %v230_v41 = vadd.f32 %v4337_v29, %v222_v39  ;;  %v6243_v51 = vpack.c.bf16 %v353_v50, %v352_v49  ;;  %v6246_v54 = vpack.c.bf16 %v355_v53, %v354_v52  ;;  %v356_v55 = vld [vmem:[#allocation2 + $0xf0] sm:$0xff]  ;;  %v358_v58 = vld [vmem:[#allocation2 + $0x100] sm:$0xff]  ;;  %v359_v59 = vld [vmem:[#allocation2 + $0x108] sm:$0xff] }
  0x63   : > { %6218 = vmatprep.subr.bf16.mxu0 %v7343_v0  ;;  %v232_v40 = vmax.f32 %v229_v38, 0.0  ;;  %6238 = vmatpush3.bf16.msra.mxu1 %v6237_v45  ;;  %v6249_v57 = vpack.c.bf16 %v357_v56, %v356_v55  ;;  %v360_v60 = vld [vmem:[#allocation2 + $0x110] sm:$0xff]  ;;  %v6252_v61 = vpack.c.bf16 %v359_v59, %v358_v58  ;;  %v361_v62 = vld [vmem:[#allocation2 + $0x118] sm:$0xff]  ;;  %v439_v4 = vld [vmem:[#allocation2 + $0x140] sm:$0xff]  ;;  %p7277_p7 = pnand %p7276_p3, %p7270_p8 }
  0x64   : > { %v233_v42 = vmax.f32 %v230_v41, 0.0  ;;  %6239 = vmatprep.subr.bf16.mxu1 %v7343_v0  ;;  %v6255_v63 = vpack.c.bf16 %v361_v62, %v360_v60  ;;  %v437_v2 = vld [vmem:[#allocation2 + $0x130] sm:$0xff]  ;;  %v438_v3 = vld [vmem:[#allocation2 + $0x138] sm:$0xff]  ;;  %v440_v6 = vld [vmem:[#allocation2 + $0x148] sm:$0xff] }
  0x65   : > { %v6258_v5 = vpack.c.bf16 %v438_v3, %v437_v2  ;;  %v6261_v7 = vpack.c.bf16 %v440_v6, %v439_v4  ;;  %v441_v8 = vld [vmem:[#allocation2 + $0x150] sm:$0xff]  ;;  %v442_v9 = vld [vmem:[#allocation2 + $0x158] sm:$0xff]  ;;  %v443_v11 = vld [vmem:[#allocation2 + $0x160] sm:$0xff] }
  0x66   : > { %6220 = vmatpush3.bf16.msra.mxu0 %v6219_v16  ;;  %v6264_v10 = vpack.c.bf16 %v442_v9, %v441_v8  ;;  %v444_v12 = vld [vmem:[#allocation2 + $0x168] sm:$0xff]  ;;  %v445_v14 = vld [vmem:[#allocation2 + $0x170] sm:$0xff]  ;;  %v446_v15 = vld [vmem:[#allocation2 + $0x178] sm:$0xff] }
  0x67   : > { %6221 = vmatprep.subr.bf16.mxu0 %v7343_v0  ;;  %6241 = vmatpush3.bf16.msra.mxu1 %v6240_v48  ;;  %v6267_v13 = vpack.c.bf16 %v444_v12, %v443_v11  ;;  %v6270_v16 = vpack.c.bf16 %v446_v15, %v445_v14  ;;  %v447_v17 = vld [vmem:[#allocation2 + $0x180] sm:$0xff]  ;;  %v448_v18 = vld [vmem:[#allocation2 + $0x188] sm:$0xff]  ;;  %v4338_v23 = vld [vmem:[#allocation2 + $0x98] ss:$0 sm:$0xff] }
  0x68   : > { %6242 = vmatprep.subr.bf16.mxu1 %v7343_v0  ;;  %v450_v41 = vld [vmem:[#allocation2 + $0x198] sm:$0xff]  ;;  %v451_v43 = vld [vmem:[#allocation2 + $0x1a0] sm:$0xff]  ;;  %v452_v44 = vld [vmem:[#allocation2 + $0x1a8] sm:$0xff] }
  0x69   : > { %v6279_v45 = vpack.c.bf16 %v452_v44, %v451_v43  ;;  %v7577_v46 = vld [vmem:[%s7520_s10 + $0x18] sm:$0xff]  ;;  %v7589_v48 = vld [vmem:[%s8105_s2 + $0x20] sm:$0xff]  ;;  %v7595_v52 = vld [vmem:[%s8105_s2 + $0x28] sm:$0xff] }
  0x6a   : > { %6223 = vmatpush3.bf16.msra.mxu0 %v6222_v19  ;;  %v6273_v19 = vpack.c.bf16 %v448_v18, %v447_v17  ;;  %v7583_v47 = vld [vmem:[%s8105_s2 + $0x18] sm:$0xff]  ;;  %v639_v50 = vld [vmem:[#allocation2 + $0x340] sm:$0xff]  ;;  %v644_v59 = vld [vmem:[#allocation2 + $0x368] sm:$0xff] }
  0x6b   : > { %6224 = vmatprep.subr.bf16.mxu0 %v7343_v0  ;;  %6244 = vmatpush3.bf16.msra.mxu1 %v6243_v51  ;;  %v638_v49 = vld [vmem:[#allocation2 + $0x338] sm:$0xff]  ;;  %v640_v51 = vld [vmem:[#allocation2 + $0x348] sm:$0xff]  ;;  %v645_v60 = vld [vmem:[#allocation2 + $0x370] sm:$0xff] }
  0x6c   : > { %6245 = vmatprep.subr.bf16.mxu1 %v7343_v0  ;;  %1048 = vxpose.xlu0.b32.start [1/3] (short) (narrow) %v7583_v47, 8  ;;  %v6282_v53 = vpack.c.bf16 %v639_v50, %v638_v49  ;;  %v642_v56 = vld [vmem:[#allocation2 + $0x358] sm:$0xff]  ;;  %v648_v3 = vld [vmem:[#allocation2 + $0x388] sm:$0xff]  ;;  %v649_v4 = vld [vmem:[#allocation2 + $0x390] sm:$0xff] }
  0x6d   : > { %v646_v62 = vld [vmem:[#allocation2 + $0x378] sm:$0xff]  ;;  %v652_v9 = vld [vmem:[#allocation2 + $0x3a8] sm:$0xff]  ;;  %v729_v43 = vld [vmem:[#allocation2 + $0x1e0] sm:$0xff] }
  0x6e   : > { %6226 = vmatpush3.bf16.msra.mxu0 %v6225_v22  ;;  %v650_v6 = vld [vmem:[#allocation2 + $0x398] sm:$0xff]  ;;  %v746_v44 = vld [vmem:[#allocation2 + $0x268] sm:$0xff] }
  0x6f   : > { %6227 = vmatprep.subr.bf16.mxu0 %v7343_v0  ;;  %6247 = vmatpush3.bf16.msra.mxu1 %v6246_v54  ;;  %v641_v54 = vld [vmem:[#allocation2 + $0x350] sm:$0xff]  ;;  %v207_v12 = vld [vmem:[%s7520_s10 + $0x20] sm:$0xff] }
  0x70   : > { %6248 = vmatprep.subr.bf16.mxu1 %v7343_v0  ;;  %1049 = vxpose.xlu0.b32.cont [2/3] (short) (narrow) %v7589_v48, 8  ;;  %v6285_v55 = vpack.c.bf16 %v641_v54, %v640_v51  ;;  %v730_v51 = vld [vmem:[#allocation2 + $0x1e8] sm:$0xff]  ;;  %v748_v54 = vld [vmem:[#allocation2 + $0x278] sm:$0xff] }
  0x72   : > { %6229 = vmatpush3.bf16.msra.mxu0 %v6228_v28 }
  0x73   : > { %6230 = vmatprep.subr.bf16.mxu0 %v7343_v0  ;;  %6250 = vmatpush3.bf16.msra.mxu1 %v6249_v57  ;;  %v643_v57 = vld [vmem:[#allocation2 + $0x360] sm:$0xff] }
  0x74   : > { %6251 = vmatprep.subr.bf16.mxu1 %v7343_v0  ;;  %1050 = vxpose.xlu0.b32.end [3/3] (short) (narrow) %v7595_v52, 8  ;;  %v6288_v58 = vpack.c.bf16 %v643_v57, %v642_v56 }
  0x76   : > { %6232 = vmatpush3.bf16.msra.mxu0 %v6231_v35 }
  0x77   : > { %6257 = vmatprep.subr.bf16.mxu0 %v7343_v0  ;;  %6253 = vmatpush3.bf16.msra.mxu1 %v6252_v61  ;;  %v6291_v61 = vpack.c.bf16 %v645_v60, %v644_v59  ;;  %v750_v59 = vld [vmem:[#allocation2 + $0x288] sm:$0xff]  ;;  %v751_v60 = vld [vmem:[#allocation2 + $0x290] sm:$0xff] }
  0x78   : > { %6254 = vmatprep.subr.bf16.mxu1 %v7343_v0 }
  0x79   : > { %5230 = vmatmul.mubr.f32.vlgmr.msra.gmra.mrb[0].mxu0 %v231_v37 }
  0x7a   : > { %5232 = vmatprep.mubr.msk.f32.mxu0 %vm7344_vm0, %v7345_v1  ;;  %6259 = vmatpush3.bf16.msra.mxu0 %v6258_v5  ;;  %v6297_v5 = vpack.c.bf16 %v649_v4, %v648_v3  ;;  %v753_v3 = vld [vmem:[#allocation2 + $0x2a0] sm:$0xff] }
  0x7b   : > { %6256 = vmatpush3.bf16.msra.mxu1 %v6255_v63  ;;  %6260 = vmatprep.subr.bf16.mxu0 %v7343_v0  ;;  %v647_v63 = vld [vmem:[#allocation2 + $0x380] sm:$0xff] }
  0x7c   : > { %6281 = vmatprep.subr.bf16.mxu1 %v7343_v0  ;;  %v6294_v2 = vpack.c.bf16 %v647_v63, %v646_v62  ;;  %v734_v62 = vld [vmem:[#allocation2 + $0x208] sm:$0xff]  ;;  %v735_v63 = vld [vmem:[#allocation2 + $0x210] sm:$0xff] }
  0x7d   : > { %5233 = vmatmul.mubr.f32.gmra.mrb[2].mxu0 %v232_v40  ;;  %v449_v40 = vld [vmem:[#allocation2 + $0x190] sm:$0xff]  ;;  %v6327_v4 = vpack.c.bf16 %v735_v63, %v734_v62  ;;  %v955_v62 = vld [vmem:[#allocation2 + $0x400] sm:$0xff]  ;;  %v956_v63 = vld [vmem:[#allocation2 + $0x408] sm:$0xff] }
  0x7e   : > { %5235 = vmatprep.mubr.msk.f32.mxu0 %vm7344_vm0, %v7345_v1  ;;  %6262 = vmatpush3.bf16.msra.mxu0 %v6261_v7  ;;  %v651_v7 = vld [vmem:[#allocation2 + $0x3a0] sm:$0xff] }
  0x7f   : > { %6263 = vmatprep.subr.bf16.mxu0 %v7343_v0  ;;  %v6300_v8 = vpack.c.bf16 %v651_v7, %v650_v6  ;;  %v737_v6 = vld [vmem:[#allocation2 + $0x220] sm:$0xff] }
  0x81   : > { %5236 = vmatmul.mubr.f32.gmra.mrb[4].mxu0 %v233_v42  ;;  %v6276_v42 = vpack.c.bf16 %v450_v41, %v449_v40 }
  0x82   : > { %5305 = vmatprep.mubr.msk.f32.mxu0 %vm7344_vm0, %v7345_v1  ;;  %6265 = vmatpush3.bf16.msra.mxu0 %v6264_v10  ;;  %v653_v10 = vld [vmem:[#allocation2 + $0x3b0] sm:$0xff] }
  0x83   : > { %6266 = vmatprep.subr.bf16.mxu0 %v7343_v0  ;;  %v6303_v11 = vpack.c.bf16 %v653_v10, %v652_v9  ;;  %v755_v9 = vld [vmem:[#allocation2 + $0x2b0] sm:$0xff] }
  0x86   : > { %6268 = vmatpush3.bf16.msra.mxu0 %v6267_v13  ;;  %v362_v13 = vld [vmem:[#allocation2 + $0x120] sm:$0x1] }
  0x87   : > { %6269 = vmatprep.subr.bf16.mxu0 %v7343_v0  ;;  %v363_v14 = vmul.f32 %v362_v13, %v207_v12  ;;  %v739_v12 = vld [vmem:[#allocation2 + $0x230] sm:$0xff] }
  0x8a   : > { %6271 = vmatpush3.bf16.msra.mxu0 %v6270_v16  ;;  %v434_v16 = vld [vmem:[#allocation2 + $0x128] sm:$0x1] }
  0x8b   : > { %6272 = vmatprep.subr.bf16.mxu0 %v7343_v0 }
  0x8e   : > { %6274 = vmatpush3.bf16.msra.mxu0 %v6273_v19  ;;  %v740_v19 = vld [vmem:[#allocation2 + $0x238] sm:$0xff] }
  0x8f   : > { %6275 = vmatprep.subr.bf16.mxu0 %v7343_v0 }
  0x92   : > { %6277 = vmatpush3.bf16.msra.mxu0 %v6276_v42  ;;  %v728_v42 = vld [vmem:[#allocation2 + $0x1d8] sm:$0xff] }
  0x93   : > { %6278 = vmatprep.subr.bf16.mxu0 %v7343_v0  ;;  %v6315_v49 = vpack.c.bf16 %v729_v43, %v728_v42  ;;  %v768_v43 = vld [vmem:[#allocation2 + $0x318] sm:$0xff] }
  0x96   : > { %6280 = vmatpush3.bf16.msra.mxu0 %v6279_v45  ;;  %v747_v45 = vld [vmem:[#allocation2 + $0x270] sm:$0xff] }
  0x97   : > { %5308 = vmatprep.subr.mxu0 %v7577_v46  ;;  %v6317_v50 = vpack.c.bf16 %v747_v45, %v746_v44  ;;  %v769_v44 = vld [vmem:[#allocation2 + $0x320] sm:$0xff] }
  0x98   : > { %v6356_v45 = vpack.c.bf16 %v769_v44, %v768_v43 }
 0x14c   : > { %v321_v20 = vpop.f32.mrb[0].mxu0 }
 0x14d   : > { %v5231_v21 = vpop.f32.mrb[1].mxu0  ;;  %v7565_v26 = vadd.f32 %v4338_v23, %v321_v20  ;;  %v741_v20 = vld [vmem:[#allocation2 + $0x240] sm:$0xff] }
 0x150   : > { %v326_v22 = vpop.f32.mrb[2].mxu0 }
 0x151   : > { %v5234_v24 = vpop.f32.mrb[3].mxu0  ;;  %v7563_v25 = vadd.f32 %v4338_v23, %v326_v22 }
 0x152   : > { %v6305_v24 = vpack.c.bf16 %v741_v20, %v740_v19 }
 0x153   : > { %v335_v30 = vadd.f32 %v7563_v25, %v7565_v26 }
 0x154   : > { %v331_v27 = vpop.f32.mrb[4].mxu0 }
 0x155   : > { %v7567_v28 = vadd.f32 %v4338_v23, %v331_v27  ;;  %v5237_v29 = vpop.f32.mrb[5].mxu0  ;;  %v208_v23 = vld [vmem:[%s8105_s2] sm:$0xff]  ;;  %v724_v27 = vld [vmem:[#allocation2 + $0x1b8] sm:$0xff] }
 0x156   : > { %v725_v29 = vld [vmem:[#allocation2 + $0x1c0] sm:$0xff] }
 0x157   : > { %v337_v31 = vsel %vm336_vm1, %v7567_v28, 0.0 }
 0x158   : > { %v338_v32 = vadd.f32 %v337_v31, %v335_v30  ;;  %v742_v30 = vld [vmem:[#allocation2 + $0x248] sm:$0xff]  ;;  %v743_v31 = vld [vmem:[#allocation2 + $0x250] sm:$0xff] }
 0x15a   : > { %v339_v33 = vrot.slane %v338_v32, 4 }
 0x15c   : > { %v340_v34 = vadd.f32 %v339_v33, %v338_v32  ;;  %v209_v32 = vld [vmem:[%s8105_s2 + $0x8] sm:$0xff]  ;;  %v6307_v33 = vpack.c.bf16 %v725_v29, %v724_v27  ;;  %v760_v29 = vld [vmem:[#allocation2 + $0x2d8] sm:$0xff] }
 0x15e   : > { %v341_v35 = vrot.slane %v340_v34, 2 }
 0x160   : > { %v342_v36 = vadd.f32 %v341_v35, %v340_v34  ;;  %v210_v34 = vld [vmem:[%s8105_s2 + $0x10] sm:$0xff]  ;;  %v6309_v35 = vpack.c.bf16 %v743_v31, %v742_v30  ;;  %v761_v30 = vld [vmem:[#allocation2 + $0x2e0] sm:$0xff] }
 0x161   : > { %v6344_v31 = vpack.c.bf16 %v761_v30, %v760_v29 }
 0x162   : > { %v343_v37 = vrot.slane %v342_v36, 1 }
 0x164   : > { %v344_v38 = vadd.f32 %v343_v37, %v342_v36  ;;  %v726_v36 = vld [vmem:[#allocation2 + $0x1c8] sm:$0xff]  ;;  %v727_v37 = vld [vmem:[#allocation2 + $0x1d0] sm:$0xff] }
 0x165   : > { %v6311_v40 = vpack.c.bf16 %v727_v37, %v726_v36 }
 0x166   : > { %v345_v39 = vmul.f32 0.055555556, %v344_v38  ;;  %v744_v38 = vld [vmem:[#allocation2 + $0x258] sm:$0xff] }
 0x168   : > { %5271 = vmatmul.mubr.f32.vlgmr.msra.gmra.mrb[0].mxu1 %v345_v39  ;;  %v745_v39 = vld [vmem:[#allocation2 + $0x260] sm:$0xff] }
 0x169   : > { %5351 = vmatprep.mubr.msk.f32.mxu1 %vm7344_vm0, %v7345_v1  ;;  %6283 = vmatpush3.bf16.msra.mxu1 %v6282_v53  ;;  %v6313_v41 = vpack.c.bf16 %v745_v39, %v744_v38  ;;  %v731_v53 = vld [vmem:[#allocation2 + $0x1f0] sm:$0xff]  ;;  %v764_v38 = vld [vmem:[#allocation2 + $0x2f8] sm:$0xff]  ;;  %v765_v39 = vld [vmem:[#allocation2 + $0x300] sm:$0xff] }
 0x16a   : > { %6284 = vmatprep.subr.bf16.mxu1 %v7343_v0  ;;  %v6319_v56 = vpack.c.bf16 %v731_v53, %v730_v51  ;;  %v947_v51 = vld [vmem:[#allocation2 + $0x3c0] sm:$0xff]  ;;  %v948_v53 = vld [vmem:[#allocation2 + $0x3c8] sm:$0xff] }
 0x16d   : > { %6286 = vmatpush3.bf16.msra.mxu1 %v6285_v55  ;;  %v749_v55 = vld [vmem:[#allocation2 + $0x280] sm:$0xff] }
 0x16e   : > { %6287 = vmatprep.subr.bf16.mxu1 %v7343_v0  ;;  %v6321_v57 = vpack.c.bf16 %v749_v55, %v748_v54  ;;  %v6362_v54 = vpack.c.bf16 %v948_v53, %v947_v51  ;;  %v949_v55 = vld [vmem:[#allocation2 + $0x3d0] sm:$0xff]  ;;  %v1241_v51 = vld [vmem:[#allocation2 + $0x448] sm:$0xff] }
 0x171   : > { %6289 = vmatpush3.bf16.msra.mxu1 %v6288_v58  ;;  %v732_v58 = vld [vmem:[#allocation2 + $0x1f8] sm:$0xff] }
 0x172   : > { %6290 = vmatprep.subr.bf16.mxu1 %v7343_v0 }
 0x175   : > { %6292 = vmatpush3.bf16.msra.mxu1 %v6291_v61  ;;  %v6325_v61 = vpack.c.bf16 %v751_v60, %v750_v59  ;;  %v953_v60 = vld [vmem:[#allocation2 + $0x3f0] sm:$0xff] }
 0x176   : > { %6293 = vmatprep.subr.bf16.mxu1 %v7343_v0 }
 0x179   : > { %6295 = vmatpush3.bf16.msra.mxu1 %v6294_v2  ;;  %v752_v2 = vld [vmem:[#allocation2 + $0x298] sm:$0xff] }
 0x17a   : > { %6296 = vmatprep.subr.bf16.mxu1 %v7343_v0 }
 0x17d   : > { %6298 = vmatpush3.bf16.msra.mxu1 %v6297_v5  ;;  %v736_v5 = vld [vmem:[#allocation2 + $0x218] sm:$0xff] }
 0x17e   : > { %6299 = vmatprep.subr.bf16.mxu1 %v7343_v0  ;;  %v6331_v7 = vpack.c.bf16 %v737_v6, %v736_v5  ;;  %v959_v5 = vld [vmem:[#allocation2 + $0x420] sm:$0xff]  ;;  %v960_v6 = vld [vmem:[#allocation2 + $0x428] sm:$0xff] }
 0x181   : > { %6301 = vmatpush3.bf16.msra.mxu1 %v6300_v8  ;;  %v754_v8 = vld [vmem:[#allocation2 + $0x2a8] sm:$0xff] }
 0x182   : > { %6302 = vmatprep.subr.bf16.mxu1 %v7343_v0  ;;  %v6333_v10 = vpack.c.bf16 %v755_v9, %v754_v8  ;;  %v961_v8 = vld [vmem:[#allocation2 + $0x430] sm:$0xff]  ;;  %v962_v9 = vld [vmem:[#allocation2 + $0x438] sm:$0xff] }
 0x185   : > { %6304 = vmatpush3.bf16.msra.mxu1 %v6303_v11  ;;  %v738_v11 = vld [vmem:[#allocation2 + $0x228] sm:$0xff] }
 0x186   : > { %6337 = vmatprep.subr.bf16.mxu1 %v7343_v0  ;;  %v6335_v13 = vpack.c.bf16 %v739_v12, %v738_v11  ;;  %v772_v11 = vlaneseq }
 0x188   : > { %v773_v12 = vshrl.u32 %v772_v11, 7  ;;  %v1249_v11 = vld [vmem:[#allocation2 + $0x488] sm:$0xff] }
 0x23b   : > { %v430_v15 = vpop.f32.mrb[0].mxu1 }
 0x23c   : > { %v431_v17 = vadd.f32 %v430_v15, %v363_v14  ;;  %v5272_v18 = vpop.f32.mrb[1].mxu1  ;;  %v756_v14 = vld [vmem:[#allocation2 + $0x2b8] sm:$0xff]  ;;  %v757_v15 = vld [vmem:[#allocation2 + $0x2c0] sm:$0xff] }
 0x23d   : > { %v6338_v18 = vpack.c.bf16 %v757_v15, %v756_v14  ;;  %v7658_v15 = vsub.s32 0, %v773_v12  ;;  %v1250_v12 = vld [vmem:[#allocation2 + $0x490] sm:$0xff] }
 0x23e   : > { %v435_v21 = vadd.f32 %v434_v16, %v431_v17  ;;  %v453_v16 = vld [vmem:[#allocation2 + $0x1b0] sm:$0x1] }
 0x240   : > { %v436_v22 = vmax.f32 %v435_v21, 0.0  ;;  %v758_v21 = vld [vmem:[#allocation2 + $0x2c8] sm:$0xff] }
 0x242   : > { %5306 = vmatmul.mubr.f32.vlgmr.msra.gmra.mrb[6].mxu0 %v436_v22  ;;  %v759_v22 = vld [vmem:[#allocation2 + $0x2d0] sm:$0xff] }
 0x243   : > { %5309 = vmatpush3.msra.mxu0 %v7577_v46  ;;  %5310 = vmatprep.mubr.msk.f32.mxu0 %vm524_vm2, %v208_v23 }
 0x244   : > { %6306 = vmatprep.subr.bf16.mxu0 %v6305_v24  ;;  %v6341_v24 = vpack.c.bf16 %v759_v22, %v758_v21 }
 0x246   : > { %5311 = vmatmul.mubr.msk.f32.vlgmr.msra.gmra.mrb[8].mxu0 %vm524_vm2, %v209_v32 }
 0x247   : > { %5313 = vmatprep.mubr.msk.f32.mxu0 %vm524_vm2, %v210_v34  ;;  %6308 = vmatpush3.bf16.msra.mxu0 %v6307_v33  ;;  %v762_v34 = vld [vmem:[#allocation2 + $0x2e8] sm:$0xff] }
 0x248   : > { %6310 = vmatprep.subr.bf16.mxu0 %v6309_v35  ;;  %v763_v35 = vld [vmem:[#allocation2 + $0x2f0] sm:$0xff] }
 0x249   : > { %v6347_v36 = vpack.c.bf16 %v763_v35, %v762_v34  ;;  %v4345_v34 = vld [vmem:[#allocation2 + $0x3b8] ss:$0 sm:$0xff] }
 0x24a   : > { %5314 = vmatmul.mubr.msk.f32.gmra.mrb[10].mxu0 %vm524_vm2, %v7583_v47  ;;  %v733_v47 = vld [vmem:[#allocation2 + $0x200] sm:$0xff] }
 0x24b   : > { %5316 = vmatprep.mubr.msk.f32.mxu0 %vm524_vm2, %v7589_v48  ;;  %6312 = vmatpush3.bf16.msra.mxu0 %v6311_v40  ;;  %v6323_v48 = vpack.c.bf16 %v733_v47, %v732_v58  ;;  %v6350_v40 = vpack.c.bf16 %v765_v39, %v764_v38  ;;  %v951_v58 = vld [vmem:[#allocation2 + $0x3e0] sm:$0xff]  ;;  %v952_v47 = vld [vmem:[#allocation2 + $0x3e8] sm:$0xff] }
 0x24c   : > { %6314 = vmatprep.subr.bf16.mxu0 %v6313_v41  ;;  %v766_v41 = vld [vmem:[#allocation2 + $0x308] sm:$0xff]  ;;  %v6368_v59 = vpack.c.bf16 %v952_v47, %v951_v58  ;;  %v1243_v47 = vld [vmem:[#allocation2 + $0x458] sm:$0xff] }
 0x24e   : > { %5317 = vmatmul.mubr.msk.f32.gmra.mrb[12].mxu0 %vm524_vm2, %v7595_v52  ;;  %v6329_v52 = vpack.c.bf16 %v753_v3, %v752_v2  ;;  %v6374_v2 = vpack.c.bf16 %v956_v63, %v955_v62  ;;  %v957_v3 = vld [vmem:[#allocation2 + $0x410] sm:$0xff]  ;;  %v1245_v63 = vld [vmem:[#allocation2 + $0x468] sm:$0xff] }
 0x24f   : > { %6316 = vmatpush3.bf16.msra.mxu0 %v6315_v49  ;;  %v771_v49 = vld [vmem:[#allocation2 + $0x330] sm:$0xff] }
 0x250   : > { %6318 = vmatprep.subr.bf16.mxu0 %v6317_v50 }
 0x253   : > { %6320 = vmatpush3.bf16.msra.mxu0 %v6319_v56  ;;  %v950_v56 = vld [vmem:[#allocation2 + $0x3d8] sm:$0xff] }
 0x254   : > { %6322 = vmatprep.subr.bf16.mxu0 %v6321_v57  ;;  %v6365_v57 = vpack.c.bf16 %v950_v56, %v949_v55  ;;  %v1259_v55 = vld [vmem:[#allocation2 + $0x4d8] sm:$0xff]  ;;  %v1260_v56 = vld [vmem:[#allocation2 + $0x4e0] sm:$0xff] }
 0x255   : > { %v6416_v58 = vpack.c.bf16 %v1260_v56, %v1259_v55  ;;  %v1159_v56 = vld [vmem:[#allocation2 + $0x568] sm:$0xff] }
 0x257   : > { %6324 = vmatpush3.bf16.msra.mxu0 %v6323_v48  ;;  %v954_v48 = vld [vmem:[#allocation2 + $0x3f8] sm:$0xff] }
 0x258   : > { %6326 = vmatprep.subr.bf16.mxu0 %v6325_v61  ;;  %v6371_v61 = vpack.c.bf16 %v954_v48, %v953_v60  ;;  %v1261_v60 = vld [vmem:[#allocation2 + $0x4e8] sm:$0xff]  ;;  %v1262_v48 = vld [vmem:[#allocation2 + $0x4f0] sm:$0xff] }
 0x259   : > { %v6420_v62 = vpack.c.bf16 %v1262_v48, %v1261_v60  ;;  %v1163_v48 = vld [vmem:[#allocation2 + $0x588] sm:$0xff] }
 0x25b   : > { %6328 = vmatpush3.bf16.msra.mxu0 %v6327_v4  ;;  %v958_v4 = vld [vmem:[#allocation2 + $0x418] sm:$0xff] }
 0x25c   : > { %6330 = vmatprep.subr.bf16.mxu0 %v6329_v52  ;;  %v6377_v52 = vpack.c.bf16 %v958_v4, %v957_v3  ;;  %v1264_v3 = vld [vmem:[#allocation2 + $0x500] sm:$0xff] }
 0x25f   : > { %6332 = vmatpush3.bf16.msra.mxu0 %v6331_v7  ;;  %v6380_v7 = vpack.c.bf16 %v960_v6, %v959_v5  ;;  %v1247_v5 = vld [vmem:[#allocation2 + $0x478] sm:$0xff]  ;;  %v1248_v6 = vld [vmem:[#allocation2 + $0x480] sm:$0xff] }
 0x260   : > { %6334 = vmatprep.subr.bf16.mxu0 %v6333_v10  ;;  %v6383_v10 = vpack.c.bf16 %v962_v9, %v961_v8  ;;  %v1266_v8 = vld [vmem:[#allocation2 + $0x510] sm:$0xff]  ;;  %v6426_v9 = vpack.c.bf16 %v1248_v6, %v1247_v5  ;;  %v1169_v5 = vld [vmem:[#allocation2 + $0x5b8] sm:$0xff]  ;;  %v1170_v6 = vld [vmem:[#allocation2 + $0x5c0] sm:$0xff] }
 0x263   : > { %6336 = vmatpush3.bf16.msra.mxu0 %v6335_v13 }
 0x264   : > { %6361 = vmatprep.subr.bf16.mxu0 %v7343_v0 }
 0x315   : > { %v520_v17 = vpop.f32.mrb[6].mxu0 }
 0x316   : > { %v7627_v19 = vadd.f32 %v520_v17, %v453_v16  ;;  %v5307_v20 = vpop.f32.mrb[7].mxu0 }
 0x318   : > { %5352 = vmatmul.mubr.f32.vlgmr.msra.gmra.mrb[2].mxu1 %v7627_v19 }
 0x319   : > { %6339 = vmatpush3.bf16.msra.mxu1 %v6338_v18  ;;  %v5312_v23 = vpop.f32.mrb[8].mxu0  ;;  %5386 = vmatprep.mubr.msk.f32.mxu1 %vm7344_vm0, %v7345_v1 }
 0x31a   : > { %v609_v27 = vpop.f32.mrb[9].mxu0  ;;  %6340 = vmatprep.subr.bf16.mxu1 %v7343_v0 }
 0x31b   : > { %840 = vmatprep.mubr.f32.mxu0 %v609_v27 }
 0x31c   : > { %841 = vmatmul.mubr.f32.vlgmr.msra.gmra.mrb[14].mxu0 %v7565_v26 }
 0x31d   : > { %6342 = vmatpush3.bf16.msra.mxu1 %v6341_v24  ;;  %845 = vmatprep.mubr.f32.mxu0 %v5312_v23  ;;  %v5315_v32 = vpop.f32.mrb[10].mxu0 }
 0x31e   : > { %6343 = vmatprep.subr.bf16.mxu1 %v7343_v0  ;;  %v619_v33 = vpop.f32.mrb[11].mxu0  ;;  %6363 = vmatpush3.bf16.msra.mxu0 %v6362_v54  ;;  %v1242_v54 = vld [vmem:[#allocation2 + $0x450] sm:$0xff] }
 0x31f   : > { %6364 = vmatprep.subr.bf16.mxu0 %v7343_v0 }
 0x320   : > { %846 = vmatmul.mubr.f32.gmra.mrb[16].mxu0 %v7563_v25  ;;  %v767_v25 = vld [vmem:[#allocation2 + $0x310] sm:$0xff] }
 0x321   : > { %6345 = vmatpush3.bf16.msra.mxu1 %v6344_v31  ;;  %850 = vmatprep.mubr.f32.mxu0 %v619_v33  ;;  %v5318_v37 = vpop.f32.mrb[12].mxu0  ;;  %v6353_v42 = vpack.c.bf16 %v767_v25, %v766_v41 }
 0x322   : > { %6346 = vmatprep.subr.bf16.mxu1 %v7343_v0  ;;  %v629_v26 = vpop.f32.mrb[13].mxu0  ;;  %6366 = vmatpush3.bf16.msra.mxu0 %v6365_v57  ;;  %v6414_v57 = vpack.c.bf16 %v1242_v54, %v1241_v51  ;;  %v1158_v54 = vld [vmem:[#allocation2 + $0x560] sm:$0xff] }
 0x323   : > { %6367 = vmatprep.subr.bf16.mxu0 %v7343_v0 }
 0x324   : > { %851 = vmatmul.mubr.f32.gmra.mrb[18].mxu0 %v7567_v28  ;;  %v770_v28 = vld [vmem:[#allocation2 + $0x328] sm:$0xff] }
 0x325   : > { %6348 = vmatpush3.bf16.msra.mxu1 %v6347_v36  ;;  %5427 = vmatprep.mubr.msk.f32.mxu0 %vm7344_vm0, %v7345_v1  ;;  %v6359_v50 = vpack.c.bf16 %v771_v49, %v770_v28  ;;  %v1257_v49 = vld [vmem:[#allocation2 + $0x4c8] sm:$0xff] }
 0x326   : > { %6349 = vmatprep.subr.bf16.mxu1 %v7343_v0  ;;  %6369 = vmatpush3.bf16.msra.mxu0 %v6368_v59  ;;  %v1244_v59 = vld [vmem:[#allocation2 + $0x460] sm:$0xff] }
 0x327   : > { %6370 = vmatprep.subr.bf16.mxu0 %v7343_v0 }
 0x329   : > { %6351 = vmatpush3.bf16.msra.mxu1 %v6350_v40 }
 0x32a   : > { %6352 = vmatprep.subr.bf16.mxu1 %v7343_v0  ;;  %6372 = vmatpush3.bf16.msra.mxu0 %v6371_v61  ;;  %v6418_v61 = vpack.c.bf16 %v1244_v59, %v1243_v47  ;;  %v1161_v47 = vld [vmem:[#allocation2 + $0x578] sm:$0xff]  ;;  %v1162_v59 = vld [vmem:[#allocation2 + $0x580] sm:$0xff] }
 0x32b   : > { %6373 = vmatprep.subr.bf16.mxu0 %v7343_v0  ;;  %v6398_v60 = vpack.c.bf16 %v1162_v59, %v1161_v47  ;;  %v1475_v47 = vld [vmem:[#allocation2 + $0x7c0] sm:$0xff] }
 0x32d   : > { %6354 = vmatpush3.bf16.msra.mxu1 %v6353_v42 }
 0x32e   : > { %6355 = vmatprep.subr.bf16.mxu1 %v7343_v0  ;;  %6375 = vmatpush3.bf16.msra.mxu0 %v6374_v2  ;;  %v1263_v2 = vld [vmem:[#allocation2 + $0x4f8] sm:$0xff] }
 0x32f   : > { %6376 = vmatprep.subr.bf16.mxu0 %v7343_v0 }
 0x331   : > { %6357 = vmatpush3.bf16.msra.mxu1 %v6356_v45 }
 0x332   : > { %6358 = vmatprep.subr.bf16.mxu1 %v7343_v0  ;;  %6378 = vmatpush3.bf16.msra.mxu0 %v6377_v52  ;;  %v6424_v52 = vpack.c.bf16 %v1264_v3, %v1263_v2  ;;  %v1167_v3 = vld [vmem:[#allocation2 + $0x5a8] sm:$0xff] }
 0x333   : > { %6379 = vmatprep.subr.bf16.mxu0 %v7343_v0 }
 0x335   : > { %6360 = vmatpush3.bf16.msra.mxu1 %v6359_v50  ;;  %v1258_v50 = vld [vmem:[#allocation2 + $0x4d0] sm:$0xff] }
 0x336   : > { %6385 = vmatprep.subr.bf16.mxu1 %v7343_v0  ;;  %6381 = vmatpush3.bf16.msra.mxu0 %v6380_v7  ;;  %v6412_v53 = vpack.c.bf16 %v1258_v50, %v1257_v49  ;;  %v1265_v7 = vld [vmem:[#allocation2 + $0x508] sm:$0xff]  ;;  %v7676_v50 = vpop.trf.xlu0 }
 0x337   : > { %6382 = vmatprep.subr.bf16.mxu0 %v7343_v0 }
 0x338   : > { %5387 = vmatmul.mubr.f32.vlgmr.msra.gmra.mrb[4].mxu1 %v5315_v32 }
 0x339   : > { %5389 = vmatprep.mubr.msk.f32.mxu1 %vm7344_vm0, %v7345_v1 }
 0x33a   : > { %6384 = vmatpush3.bf16.msra.mxu0 %v6383_v10  ;;  %v6428_v10 = vpack.c.bf16 %v1266_v8, %v1265_v7  ;;  %v6410_v7 = vpack.c.bf16 %v1170_v6, %v1169_v5  ;;  %v1354_v8 = vld [vmem:[#allocation2 + $0x5d0] sm:$0xff]  ;;  %v1564_v6 = vld [vmem:[#allocation2 + $0x6d8] sm:$0xff] }
 0x33b   : > { %6413 = vmatprep.subr.bf16.mxu0 %v6412_v53  ;;  %v1157_v53 = vld [vmem:[#allocation2 + $0x558] sm:$0xff] }
 0x33c   : > { %5390 = vmatmul.mubr.f32.gmra.mrb[6].mxu1 %v629_v26  ;;  %v6392_v55 = vpack.c.bf16 %v1158_v54, %v1157_v53  ;;  %v1471_v53 = vld [vmem:[#allocation2 + $0x7a0] sm:$0xff] }
 0x33d   : > { %5392 = vmatprep.mubr.msk.f32.mxu1 %vm7344_vm0, %v7345_v1 }
 0x340   : > { %5393 = vmatmul.mubr.f32.gmra.mrb[8].mxu1 %v5318_v37 }
 0x341   : > { %5442 = vmatprep.mubr.msk.f32.mxu1 %vm7344_vm0, %v7345_v1 }
 0x3eb   : > { %v720_v13 = vpop.f32.mrb[2].mxu1 }
 0x3ec   : > { %v5353_v14 = vpop.f32.mrb[3].mxu1  ;;  %v775_v18 = vrot.slane %v720_v13, %v7658_v15  ;;  %v1267_v13 = vld [vmem:[#allocation2 + $0x518] sm:$0xff] }
 0x3ed   : > { %v1268_v14 = vld [vmem:[#allocation2 + $0x520] sm:$0xff] }
 0x3ef   : > { %v4484_v16 = vpop.f32.mrb[14].mxu0 }
 0x3f0   : > { %v4485_v17 = vpop.f32.mrb[15].mxu0 }
 0x3f1   : > { %v4486_v20 = vadd.f32 %v4485_v17, %v4484_v16  ;;  %v6430_v16 = vpack.c.bf16 %v1250_v12, %v1249_v11  ;;  %v6432_v17 = vpack.c.bf16 %v1268_v14, %v1267_v13  ;;  %v1357_v12 = vld [vmem:[#allocation2 + $0x5e8] sm:$0xff]  ;;  %v1358_v14 = vld [vmem:[#allocation2 + $0x5f0] sm:$0xff] }
 0x3f3   : > { %v4487_v21 = vpop.f32.mrb[16].mxu0  ;;  %v843_v22 = vadd.f32 %v4486_v20, %v775_v18  ;;  %v1252_v20 = vld [vmem:[#allocation2 + $0x4a0] sm:$0xff] }
 0x3f4   : > { %v4488_v23 = vpop.f32.mrb[17].mxu0 }
 0x3f5   : > { %v4489_v24 = vadd.f32 %v4488_v23, %v4487_v21  ;;  %v1269_v21 = vld [vmem:[#allocation2 + $0x528] sm:$0xff] }
 0x3f7   : > { %v4490_v27 = vpop.f32.mrb[18].mxu0  ;;  %v848_v29 = vadd.f32 %v4489_v24, %v775_v18 }
 0x3f8   : > { %v4491_v30 = vpop.f32.mrb[19].mxu0 }
 0x3f9   : > { %v4492_v31 = vadd.f32 %v4491_v30, %v4490_v27  ;;  %v1253_v27 = vld [vmem:[#allocation2 + $0x4a8] sm:$0xff]  ;;  %v1271_v30 = vld [vmem:[#allocation2 + $0x538] sm:$0xff] }
 0x3fb   : > { %v853_v32 = vadd.f32 %v4492_v31, %v775_v18  ;;  %v1251_v18 = vld [vmem:[#allocation2 + $0x498] sm:$0xff]  ;;  %v1272_v31 = vld [vmem:[#allocation2 + $0x540] sm:$0xff] }
 0x3fc   : > { %v6434_v23 = vpack.c.bf16 %v1252_v20, %v1251_v18  ;;  %v1360_v18 = vld [vmem:[#allocation2 + $0x600] sm:$0xff]  ;;  %v1361_v20 = vld [vmem:[#allocation2 + $0x608] sm:$0xff] }
 0x40b   : > { %v922_v33 = vpop.f32.mrb[4].mxu1 }
 0x40c   : > { %v923_v35 = vadd.f32 %v922_v33, %v843_v22  ;;  %v5388_v36 = vpop.f32.mrb[5].mxu1  ;;  %v1270_v22 = vld [vmem:[#allocation2 + $0x530] sm:$0xff]  ;;  %v6440_v33 = vpack.c.bf16 %v1272_v31, %v1271_v30  ;;  %v1462_v31 = vld [vmem:[#allocation2 + $0x758] sm:$0xff] }
 0x40d   : > { %v6436_v24 = vpack.c.bf16 %v1270_v22, %v1269_v21  ;;  %v6454_v21 = vpack.c.bf16 %v1361_v20, %v1360_v18  ;;  %v1362_v22 = vld [vmem:[#allocation2 + $0x610] sm:$0xff] }
 0x40e   : > { %v941_v37 = vadd.f32 %v4345_v34, %v923_v35  ;;  %v1256_v35 = vld [vmem:[#allocation2 + $0x4c0] sm:$0xff]  ;;  %v1567_v18 = vld [vmem:[#allocation2 + $0x6f0] sm:$0xff] }
 0x40f   : > { %v927_v38 = vpop.f32.mrb[6].mxu1 }
 0x410   : > { %v944_v39 = vmax.f32 %v941_v37, 0.0  ;;  %v928_v26 = vadd.f32 %v927_v38, %v848_v29  ;;  %v5391_v40 = vpop.f32.mrb[7].mxu1  ;;  %v1254_v29 = vld [vmem:[#allocation2 + $0x4b0] sm:$0xff] }
 0x412   : > { %v942_v41 = vadd.f32 %v4345_v34, %v928_v26  ;;  %5428 = vmatmul.mubr.f32.vlgmr.msra.gmra.mrb[20].mxu0 %v944_v39  ;;  %v4346_v39 = vld [vmem:[#allocation2 + $0x440] ss:$0 sm:$0xff] }
 0x413   : > { %v932_v25 = vpop.f32.mrb[8].mxu1  ;;  %5430 = vmatprep.mubr.msk.f32.mxu0 %vm7344_vm0, %v7345_v1  ;;  %6415 = vmatpush3.bf16.msra.mxu0 %v6414_v57  ;;  %v1160_v57 = vld [vmem:[#allocation2 + $0x570] sm:$0xff] }
 0x414   : > { %v945_v42 = vmax.f32 %v942_v41, 0.0  ;;  %v933_v43 = vadd.f32 %v932_v25, %v853_v32  ;;  %v5394_v44 = vpop.f32.mrb[9].mxu1  ;;  %6417 = vmatprep.subr.bf16.mxu0 %v6416_v58  ;;  %v6438_v32 = vpack.c.bf16 %v1254_v29, %v1253_v27  ;;  %v6395_v58 = vpack.c.bf16 %v1160_v57, %v1159_v56  ;;  %v1364_v27 = vld [vmem:[#allocation2 + $0x620] sm:$0xff]  ;;  %v1365_v29 = vld [vmem:[#allocation2 + $0x628] sm:$0xff]  ;;  %v1473_v56 = vld [vmem:[#allocation2 + $0x7b0] sm:$0xff] }
 0x415   : > { %v1155_v44 = vld [vmem:[#allocation2 + $0x548] sm:$0xff]  ;;  %v6460_v30 = vpack.c.bf16 %v1365_v29, %v1364_v27  ;;  %v1551_v27 = vld [vmem:[#allocation2 + $0x670] sm:$0xff]  ;;  %v1568_v29 = vld [vmem:[#allocation2 + $0x6f8] sm:$0xff] }
 0x416   : > { %v943_v45 = vadd.f32 %v4345_v34, %v933_v43  ;;  %5431 = vmatmul.mubr.f32.gmra.mrb[22].mxu0 %v945_v42  ;;  %v1255_v34 = vld [vmem:[#allocation2 + $0x4b8] sm:$0xff] }
 0x417   : > { %5433 = vmatprep.mubr.msk.f32.mxu0 %vm7344_vm0, %v7345_v1  ;;  %6419 = vmatpush3.bf16.msra.mxu0 %v6418_v61  ;;  %v6442_v36 = vpack.c.bf16 %v1256_v35, %v1255_v34  ;;  %v1164_v61 = vld [vmem:[#allocation2 + $0x590] sm:$0xff] }
 0x418   : > { %v946_v28 = vmax.f32 %v943_v45, 0.0  ;;  %6421 = vmatprep.subr.bf16.mxu0 %v6420_v62  ;;  %v1156_v45 = vld [vmem:[#allocation2 + $0x550] sm:$0xff]  ;;  %v6401_v62 = vpack.c.bf16 %v1164_v61, %v1163_v48 }
 0x419   : > { %v6389_v51 = vpack.c.bf16 %v1156_v45, %v1155_v44  ;;  %v1468_v44 = vld [vmem:[#allocation2 + $0x788] sm:$0xff]  ;;  %v1469_v45 = vld [vmem:[#allocation2 + $0x790] sm:$0xff] }
 0x41a   : > { %5434 = vmatmul.mubr.f32.gmra.mrb[24].mxu0 %v946_v28  ;;  %v1477_v48 = vld [vmem:[#allocation2 + $0x7d0] sm:$0xff] }
 0x41b   : > { %1341 = vmatprep.mubr.f32.mxu0 %v7577_v46  ;;  %v1246_v46 = vld [vmem:[#allocation2 + $0x470] sm:$0xff] }
 0x41c   : > { %v6422_v4 = vpack.c.bf16 %v1246_v46, %v1245_v63  ;;  %v1165_v63 = vld [vmem:[#allocation2 + $0x598] sm:$0xff]  ;;  %v1166_v46 = vld [vmem:[#allocation2 + $0x5a0] sm:$0xff] }
 0x41d   : > { %v6404_v2 = vpack.c.bf16 %v1166_v46, %v1165_v63  ;;  %v1366_v46 = vld [vmem:[#allocation2 + $0x630] sm:$0xff] }
 0x41e   : > { %6423 = vmatpush3.bf16.msra.mxu0 %v6422_v4  ;;  %v1168_v4 = vld [vmem:[#allocation2 + $0x5b0] sm:$0xff] }
 0x41f   : > { %6425 = vmatprep.subr.bf16.mxu0 %v6424_v52  ;;  %v6407_v52 = vpack.c.bf16 %v1168_v4, %v1167_v3  ;;  %v1368_v4 = vld [vmem:[#allocation2 + $0x640] sm:$0xff] }
 0x422   : > { %6427 = vmatpush3.bf16.msra.mxu0 %v6426_v9  ;;  %v1355_v9 = vld [vmem:[#allocation2 + $0x5d8] sm:$0xff] }
 0x423   : > { %6429 = vmatprep.subr.bf16.mxu0 %v6428_v10  ;;  %v1356_v10 = vld [vmem:[#allocation2 + $0x5e0] sm:$0xff]  ;;  %v6445_v11 = vpack.c.bf16 %v1355_v9, %v1354_v8 }
 0x424   : > { %v6448_v13 = vpack.c.bf16 %v1357_v12, %v1356_v10  ;;  %v4348_v12 = vld [vmem:[#allocation2 + $0x5c8] ss:$0 sm:$0xff] }
 0x426   : > { %6431 = vmatpush3.bf16.msra.mxu0 %v6430_v16  ;;  %v1359_v16 = vld [vmem:[#allocation2 + $0x5f8] sm:$0xff] }
 0x427   : > { %6433 = vmatprep.subr.bf16.mxu0 %v6432_v17  ;;  %v6451_v17 = vpack.c.bf16 %v1359_v16, %v1358_v14  ;;  %v1548_v14 = vld [vmem:[#allocation2 + $0x658] sm:$0xff]  ;;  %v1549_v16 = vld [vmem:[#allocation2 + $0x660] sm:$0xff] }
 0x42a   : > { %6435 = vmatpush3.bf16.msra.mxu0 %v6434_v23  ;;  %v1363_v23 = vld [vmem:[#allocation2 + $0x618] sm:$0xff] }
 0x42b   : > { %6437 = vmatprep.subr.bf16.mxu0 %v6436_v24  ;;  %v6457_v24 = vpack.c.bf16 %v1363_v23, %v1362_v22 }
 0x42e   : > { %6439 = vmatpush3.bf16.msra.mxu0 %v6438_v32  ;;  %v1463_v32 = vld [vmem:[#allocation2 + $0x760] sm:$0xff] }
 0x42f   : > { %6441 = vmatprep.subr.bf16.mxu0 %v6440_v33  ;;  %v214_v33 = vld [vmem:[#allocation2] sm:$0xff]  ;;  %v6469_v35 = vpack.c.bf16 %v1463_v32, %v1462_v31 }
 0x432   : > { %6443 = vmatpush3.bf16.msra.mxu0 %v6442_v36 }
 0x433   : > { %6468 = vmatprep.subr.bf16.mxu0 %v7343_v0 }
 0x4e5   : > { %v1034_v37 = vpop.f32.mrb[20].mxu0 }
 0x4e6   : > { %v5429_v38 = vpop.f32.mrb[21].mxu0  ;;  %v7667_v40 = vadd.f32 %v4346_v39, %v1034_v37 }
 0x4e7   : > { %v1464_v38 = vld [vmem:[#allocation2 + $0x768] sm:$0xff] }
 0x4e9   : > { %v1039_v26 = vpop.f32.mrb[22].mxu0 }
 0x4ea   : > { %v7669_v41 = vadd.f32 %v4346_v39, %v1039_v26  ;;  %v5432_v25 = vpop.f32.mrb[23].mxu0 }
 0x4eb   : > { %v1466_v25 = vld [vmem:[#allocation2 + $0x778] sm:$0xff] }
 0x4ec   : > { %v6386_v42 = vpack.c.bf16 %v7669_v41, %v7667_v40 }
 0x4ed   : > { %v1044_v43 = vpop.f32.mrb[24].mxu0 }
 0x4ee   : > { %v5435_v28 = vpop.f32.mrb[25].mxu0  ;;  %6387 = vmatpush3.bf16.msra.mxu1 %v6386_v42  ;;  %v7674_v49 = vadd.f32 %v4346_v39, %v1044_v43  ;;  %v1465_v39 = vld [vmem:[#allocation2 + $0x770] sm:$0xff]  ;;  %v1467_v42 = vld [vmem:[#allocation2 + $0x780] sm:$0xff] }
 0x4ef   : > { %5440 = vmatprep.subr.mxu1 %v7345_v1  ;;  %v6472_v26 = vpack.c.bf16 %v1465_v39, %v1464_v38  ;;  %v6475_v43 = vpack.c.bf16 %v1467_v42, %v1466_v25  ;;  %v6478_v28 = vpack.c.bf16 %v1469_v45, %v1468_v44  ;;  %v1554_v39 = vld [vmem:[#allocation2 + $0x688] sm:$0xff]  ;;  %v1572_v25 = vld [vmem:[#allocation2 + $0x718] sm:$0xff]  ;;  %v1573_v42 = vld [vmem:[#allocation2 + $0x720] sm:$0xff] }
 0x4f0   : > { %v6508_v44 = vpack.c.bf16 %v1573_v42, %v1572_v25  ;;  %v1556_v45 = vld [vmem:[#allocation2 + $0x698] sm:$0xff] }
 0x4f2   : > { %5441 = vmatpush3.msra.mxu1 %v7674_v49 }
 0x4f3   : > { %5443 = vmatmul.mubr.msk.f32.vlgmr.msra.gmra.mrb[10].mxu1 %vm1080_vm3, %v7676_v50  ;;  %6388 = vmatprep.subr.bf16.mxu1 %v7343_v0 }
 0x4f4   : > { %6390 = vmatpush3.bf16.msra.mxu1 %v6389_v51  ;;  %5477 = vmatprep.mubr.msk.f32.mxu1 %vm7344_vm0, %v7345_v1  ;;  %v1470_v51 = vld [vmem:[#allocation2 + $0x798] sm:$0xff] }
 0x4f5   : > { %6391 = vmatprep.subr.bf16.mxu1 %v7343_v0  ;;  %v6481_v54 = vpack.c.bf16 %v1471_v53, %v1470_v51  ;;  %v1574_v51 = vld [vmem:[#allocation2 + $0x728] sm:$0xff]  ;;  %v1575_v53 = vld [vmem:[#allocation2 + $0x730] sm:$0xff] }
 0x4f8   : > { %6393 = vmatpush3.bf16.msra.mxu1 %v6392_v55  ;;  %v1472_v55 = vld [vmem:[#allocation2 + $0x7a8] sm:$0xff] }
 0x4f9   : > { %6394 = vmatprep.subr.bf16.mxu1 %v7343_v0  ;;  %v6484_v57 = vpack.c.bf16 %v1473_v56, %v1472_v55  ;;  %v6512_v55 = vpack.c.bf16 %v1575_v53, %v1574_v51  ;;  %v1558_v56 = vld [vmem:[#allocation2 + $0x6a8] sm:$0xff] }
 0x4fc   : > { %6396 = vmatpush3.bf16.msra.mxu1 %v6395_v58  ;;  %v1474_v58 = vld [vmem:[#allocation2 + $0x7b8] sm:$0xff] }
 0x4fd   : > { %6397 = vmatprep.subr.bf16.mxu1 %v7343_v0  ;;  %v6487_v59 = vpack.c.bf16 %v1475_v47, %v1474_v58  ;;  %v1576_v58 = vld [vmem:[#allocation2 + $0x738] sm:$0xff]  ;;  %v1577_v47 = vld [vmem:[#allocation2 + $0x740] sm:$0xff] }
 0x500   : > { %6399 = vmatpush3.bf16.msra.mxu1 %v6398_v60  ;;  %v1476_v60 = vld [vmem:[#allocation2 + $0x7c8] sm:$0xff] }
 0x501   : > { %6400 = vmatprep.subr.bf16.mxu1 %v7343_v0  ;;  %v6490_v61 = vpack.c.bf16 %v1477_v48, %v1476_v60  ;;  %v6516_v60 = vpack.c.bf16 %v1577_v47, %v1576_v58  ;;  %v1560_v48 = vld [vmem:[#allocation2 + $0x6b8] sm:$0xff]  ;;  %v7199_v47 = vld [vmem:[%s8105_s2 + $0x20] sm:$0xff] }
 0x502   : > { %v7198_v58 = vld [vmem:[%s8105_s2 + $0x18] sm:$0xff] }
 0x504   : > { %6402 = vmatpush3.bf16.msra.mxu1 %v6401_v62 }
 0x505   : > { %6403 = vmatprep.subr.bf16.mxu1 %v7343_v0 }
 0x508   : > { %6405 = vmatpush3.bf16.msra.mxu1 %v6404_v2  ;;  %v1367_v2 = vld [vmem:[#allocation2 + $0x638] sm:$0xff] }
 0x509   : > { %6406 = vmatprep.subr.bf16.mxu1 %v7343_v0  ;;  %v6463_v3 = vpack.c.bf16 %v1367_v2, %v1366_v46  ;;  %v1578_v2 = vld [vmem:[#allocation2 + $0x748] sm:$0xff] }
 0x50c   : > { %6408 = vmatpush3.bf16.msra.mxu1 %v6407_v52  ;;  %v1369_v52 = vld [vmem:[#allocation2 + $0x648] sm:$0xff] }
 0x50d   : > { %6409 = vmatprep.subr.bf16.mxu1 %v7343_v0  ;;  %v6466_v5 = vpack.c.bf16 %v1369_v52, %v1368_v4  ;;  %v1562_v52 = vld [vmem:[#allocation2 + $0x6c8] sm:$0xff] }
 0x510   : > { %6411 = vmatpush3.bf16.msra.mxu1 %v6410_v7  ;;  %v1565_v7 = vld [vmem:[#allocation2 + $0x6e0] sm:$0xff] }
 0x511   : > { %6444 = vmatprep.subr.bf16.mxu1 %v7343_v0  ;;  %v6492_v8 = vpack.c.bf16 %v1565_v7, %v1564_v6  ;;  %v1653_v7 = vld [vmem:[#allocation2 + $0x7e0] sm:$0xff] }
 0x513   : > { %5478 = vmatmul.mubr.f32.vlgmr.msra.gmra.mrb[12].mxu1 %v7627_v19 }
 0x514   : > { %5512 = vmatprep.mubr.msk.f32.mxu1 %vm7344_vm0, %v7345_v1  ;;  %6446 = vmatpush3.bf16.msra.mxu1 %v6445_v11 }
 0x515   : > { %6447 = vmatprep.subr.bf16.mxu1 %v7343_v0 }
 0x518   : > { %6449 = vmatpush3.bf16.msra.mxu1 %v6448_v13 }
 0x519   : > { %6450 = vmatprep.subr.bf16.mxu1 %v7343_v0 }
 0x51c   : > { %6452 = vmatpush3.bf16.msra.mxu1 %v6451_v17  ;;  %v1566_v17 = vld [vmem:[#allocation2 + $0x6e8] sm:$0xff] }
 0x51d   : > { %6453 = vmatprep.subr.bf16.mxu1 %v7343_v0  ;;  %v6496_v23 = vpack.c.bf16 %v1567_v18, %v1566_v17  ;;  %v1660_v17 = vld [vmem:[#allocation2 + $0x818] sm:$0xff] }
 0x520   : > { %6455 = vmatpush3.bf16.msra.mxu1 %v6454_v21  ;;  %v6494_v21 = vpack.c.bf16 %v1549_v16, %v1548_v14  ;;  %v1659_v16 = vld [vmem:[#allocation2 + $0x810] sm:$0xff] }
 0x521   : > { %6456 = vmatprep.subr.bf16.mxu1 %v7343_v0  ;;  %v6534_v18 = vpack.c.bf16 %v1660_v17, %v1659_v16  ;;  %v1843_v17 = vld [vmem:[#allocation2 + $0xa28] sm:$0xff] }
 0x524   : > { %6458 = vmatpush3.bf16.msra.mxu1 %v6457_v24  ;;  %v1550_v24 = vld [vmem:[#allocation2 + $0x668] sm:$0xff] }
 0x525   : > { %6459 = vmatprep.subr.bf16.mxu1 %v7343_v0  ;;  %v6498_v31 = vpack.c.bf16 %v1551_v27, %v1550_v24  ;;  %v1664_v24 = vld [vmem:[#allocation2 + $0x838] sm:$0xff] }
 0x528   : > { %6461 = vmatpush3.bf16.msra.mxu1 %v6460_v30  ;;  %v1569_v30 = vld [vmem:[#allocation2 + $0x700] sm:$0xff] }
 0x529   : > { %6462 = vmatprep.subr.bf16.mxu1 %v7343_v0  ;;  %v6500_v32 = vpack.c.bf16 %v1569_v30, %v1568_v29  ;;  %v1446_v29 = vsel %vm336_vm1, %v7674_v49, 0.0  ;;  %v1445_v30 = vadd.f32 %v7669_v41, %v7667_v40 }
 0x52c   : > { %6464 = vmatpush3.bf16.msra.mxu1 %v6463_v3  ;;  %v1579_v3 = vld [vmem:[#allocation2 + $0x750] sm:$0xff] }
 0x52d   : > { %6465 = vmatprep.subr.bf16.mxu1 %v7343_v0  ;;  %v6520_v4 = vpack.c.bf16 %v1579_v3, %v1578_v2  ;;  %v1937_v3 = vld [vmem:[#allocation2 + $0x8e8] sm:$0xff] }
 0x530   : > { %6467 = vmatpush3.bf16.msra.mxu1 %v6466_v5  ;;  %v1563_v5 = vld [vmem:[#allocation2 + $0x6d0] sm:$0xff] }
 0x531   : > { %6493 = vmatprep.subr.bf16.mxu1 %v6492_v8  ;;  %v6522_v6 = vpack.c.bf16 %v1563_v5, %v1562_v52  ;;  %v1654_v8 = vld [vmem:[#allocation2 + $0x7e8] sm:$0xff] }
 0x532   : > { %v1835_v5 = vld [vmem:[#allocation2 + $0x9e8] sm:$0xff] }
 0x5c6   : > { %v1150_v34 = vpop.f32.mrb[10].mxu1 }
 0x5c7   : > { %v1154_v36 = vmul.f32 %v1150_v34, %v214_v33  ;;  %v5444_v37 = vpop.f32.mrb[11].mxu1  ;;  %v1552_v33 = vld [vmem:[#allocation2 + $0x678] sm:$0xff]  ;;  %v1553_v34 = vld [vmem:[#allocation2 + $0x680] sm:$0xff] }
 0x5c8   : > { %v6502_v37 = vpack.c.bf16 %v1553_v34, %v1552_v33  ;;  %v4349_v34 = vld [vmem:[#allocation2 + $0x650] ss:$0 sm:$0xff] }
 0x5c9   : > { %1342 = vmatmul.mubr.f32.vlgmr.msra.gmra.mrb[26].mxu0 %v1154_v36  ;;  %v1571_v36 = vld [vmem:[#allocation2 + $0x710] sm:$0xff] }
 0x5ca   : > { %6470 = vmatpush3.bf16.msra.mxu0 %v6469_v35  ;;  %5547 = vmatprep.mubr.msk.f32.mxu0 %vm7344_vm0, %v7345_v1  ;;  %v1570_v35 = vld [vmem:[#allocation2 + $0x708] sm:$0xff] }
 0x5cb   : > { %6471 = vmatprep.subr.bf16.mxu0 %v7343_v0  ;;  %v6504_v38 = vpack.c.bf16 %v1571_v36, %v1570_v35 }
 0x5ce   : > { %6473 = vmatpush3.bf16.msra.mxu0 %v6472_v26  ;;  %v1555_v26 = vld [vmem:[#allocation2 + $0x690] sm:$0xff] }
 0x5cf   : > { %6474 = vmatprep.subr.bf16.mxu0 %v7343_v0 }
 0x5d2   : > { %6476 = vmatpush3.bf16.msra.mxu0 %v6475_v43  ;;  %v6506_v43 = vpack.c.bf16 %v1555_v26, %v1554_v39 }
 0x5d3   : > { %6477 = vmatprep.subr.bf16.mxu0 %v7343_v0 }
 0x5d6   : > { %6479 = vmatpush3.bf16.msra.mxu0 %v6478_v28  ;;  %v1557_v28 = vld [vmem:[#allocation2 + $0x6a0] sm:$0xff] }
 0x5d7   : > { %6480 = vmatprep.subr.bf16.mxu0 %v7343_v0 }
 0x5da   : > { %6482 = vmatpush3.bf16.msra.mxu0 %v6481_v54  ;;  %v6510_v54 = vpack.c.bf16 %v1557_v28, %v1556_v45 }
 0x5db   : > { %6483 = vmatprep.subr.bf16.mxu0 %v7343_v0 }
 0x5de   : > { %6485 = vmatpush3.bf16.msra.mxu0 %v6484_v57  ;;  %v1559_v57 = vld [vmem:[#allocation2 + $0x6b0] sm:$0xff] }
 0x5df   : > { %6486 = vmatprep.subr.bf16.mxu0 %v7343_v0 }
 0x5e2   : > { %6488 = vmatpush3.bf16.msra.mxu0 %v6487_v59  ;;  %v6514_v59 = vpack.c.bf16 %v1559_v57, %v1558_v56  ;;  %v7196_v56 = vld [vmem:[%s8105_s2 + $0x8] sm:$0xff]  ;;  %v7197_v57 = vld [vmem:[%s8105_s2 + $0x10] sm:$0xff] }
 0x5e3   : > { %6489 = vmatprep.subr.bf16.mxu0 %v7343_v0 }
 0x5e6   : > { %6491 = vmatpush3.bf16.msra.mxu0 %v6490_v61  ;;  %v1237_v62 = vpop.f32.mrb[12].mxu1  ;;  %v1561_v61 = vld [vmem:[#allocation2 + $0x6c0] sm:$0xff] }
 0x5e7   : > { %v5479_v63 = vpop.f32.mrb[13].mxu1  ;;  %6524 = vmatprep.subr.bf16.mxu0 %v7343_v0 }
 0x5e9   : > { %5548 = vmatmul.mubr.f32.vlgmr.msra.gmra.mrb[28].mxu0 %v7627_v19  ;;  %v1276_v19 = vrot.slane %v1237_v62, %v7658_v15  ;;  %v6518_v62 = vpack.c.bf16 %v1561_v61, %v1560_v48  ;;  %v1666_v48 = vld [vmem:[#allocation2 + $0x848] sm:$0xff] }
 0x5ea   : > { %5582 = vmatprep.mubr.msk.f32.mxu0 %vm7344_vm0, %v7345_v1 }
 0x69c   : > { %v4584_v9 = vpop.f32.mrb[26].mxu0 }
 0x69d   : > { %v4585_v10 = vpop.f32.mrb[27].mxu0 }
 0x69e   : > { %v4586_v11 = vadd.f32 %v4585_v10, %v4584_v9  ;;  %v1655_v9 = vld [vmem:[#allocation2 + $0x7f0] sm:$0xff]  ;;  %v6525_v10 = vpack.c.bf16 %v1654_v8, %v1653_v7  ;;  %v1837_v7 = vld [vmem:[#allocation2 + $0x9f8] sm:$0xff] }
 0x6a0   : > { %v1344_v13 = vadd.f32 %v4586_v11, %v1276_v19  ;;  %v1656_v19 = vld [vmem:[#allocation2 + $0x7f8] sm:$0xff]  ;;  %6526 = vmatpush3.bf16.msra.mxu0 %v6525_v10 }
 0x6a1   : > { %v6528_v11 = vpack.c.bf16 %v1656_v19, %v1655_v9  ;;  %6527 = vmatprep.subr.bf16.mxu0 %v7343_v0  ;;  %v1838_v9 = vld [vmem:[#allocation2 + $0xa00] sm:$0xff]  ;;  %v1839_v19 = vld [vmem:[#allocation2 + $0xa08] sm:$0xff] }
 0x6a2   : > { %v1352_v20 = vadd.f32 %v4348_v12, %v1344_v13  ;;  %v1657_v12 = vld [vmem:[#allocation2 + $0x800] sm:$0xff]  ;;  %v1658_v13 = vld [vmem:[#allocation2 + $0x808] sm:$0xff]  ;;  %v6552_v10 = vpack.c.bf16 %v1838_v9, %v1837_v7  ;;  %v1930_v9 = vld [vmem:[#allocation2 + $0x8b0] sm:$0xff] }
 0x6a3   : > { %v6531_v14 = vpack.c.bf16 %v1658_v13, %v1657_v12  ;;  %v1841_v13 = vld [vmem:[#allocation2 + $0xa18] sm:$0xff] }
 0x6a4   : > { %v1353_v22 = vmax.f32 %v1352_v20, 0.0  ;;  %6529 = vmatpush3.bf16.msra.mxu0 %v6528_v11  ;;  %v1661_v20 = vld [vmem:[#allocation2 + $0x820] sm:$0xff]  ;;  %v1840_v11 = vld [vmem:[#allocation2 + $0xa10] sm:$0xff] }
 0x6a5   : > { %6530 = vmatprep.subr.bf16.mxu0 %v7343_v0  ;;  %v6555_v12 = vpack.c.bf16 %v1840_v11, %v1839_v19  ;;  %v1948_v19 = vld [vmem:[#allocation2 + $0x940] sm:$0xff] }
 0x6a6   : > { %5513 = vmatmul.mubr.f32.vlgmr.msra.gmra.mrb[14].mxu1 %v1353_v22 }
 0x6a7   : > { %6495 = vmatpush3.bf16.msra.mxu1 %v6494_v21  ;;  %v1662_v21 = vld [vmem:[#allocation2 + $0x828] sm:$0xff] }
 0x6a8   : > { %6497 = vmatprep.subr.bf16.mxu1 %v6496_v23  ;;  %6532 = vmatpush3.bf16.msra.mxu0 %v6531_v14  ;;  %v6537_v22 = vpack.c.bf16 %v1662_v21, %v1661_v20  ;;  %v1663_v23 = vld [vmem:[#allocation2 + $0x830] sm:$0xff]  ;;  %v1842_v14 = vld [vmem:[#allocation2 + $0xa20] sm:$0xff]  ;;  %v1845_v21 = vld [vmem:[#allocation2 + $0xa38] sm:$0xff] }
 0x6a9   : > { %6533 = vmatprep.subr.bf16.mxu0 %v7343_v0  ;;  %v6540_v27 = vpack.c.bf16 %v1664_v24, %v1663_v23  ;;  %v6558_v16 = vpack.c.bf16 %v1842_v14, %v1841_v13  ;;  %v1847_v24 = vld [vmem:[#allocation2 + $0xa48] sm:$0xff]  ;;  %v1931_v13 = vld [vmem:[#allocation2 + $0x8b8] sm:$0xff]  ;;  %v1932_v14 = vld [vmem:[#allocation2 + $0x8c0] sm:$0xff] }
 0x6ab   : > { %6499 = vmatpush3.bf16.msra.mxu1 %v6498_v31  ;;  %v1447_v31 = vadd.f32 %v1446_v29, %v1445_v30  ;;  %v1849_v30 = vld [vmem:[#allocation2 + $0xa58] sm:$0xff] }
 0x6ac   : > { %6501 = vmatprep.subr.bf16.mxu1 %v6500_v32  ;;  %6535 = vmatpush3.bf16.msra.mxu0 %v6534_v18  ;;  %v1844_v18 = vld [vmem:[#allocation2 + $0xa30] sm:$0xff] }
 0x6ad   : > { %6536 = vmatprep.subr.bf16.mxu0 %v7343_v0  ;;  %v1448_v32 = vrot.slane %v1447_v31, 4  ;;  %v6561_v20 = vpack.c.bf16 %v1844_v18, %v1843_v17  ;;  %v1950_v17 = vld [vmem:[#allocation2 + $0x950] sm:$0xff]  ;;  %v6594_v18 = vpack.c.bf16 %v1932_v14, %v1931_v13 }
 0x6ae   : > { %v2148_v14 = vld [vmem:[#allocation2 + $0xa90] sm:$0xff] }
 0x6af   : > { %6503 = vmatpush3.bf16.msra.mxu1 %v6502_v37  ;;  %v1449_v33 = vadd.f32 %v1448_v32, %v1447_v31  ;;  %v1850_v31 = vld [vmem:[#allocation2 + $0xa60] sm:$0xff] }
 0x6b0   : > { %6505 = vmatprep.subr.bf16.mxu1 %v6504_v38  ;;  %6538 = vmatpush3.bf16.msra.mxu0 %v6537_v22  ;;  %v1846_v22 = vld [vmem:[#allocation2 + $0xa40] sm:$0xff]  ;;  %v6570_v32 = vpack.c.bf16 %v1850_v31, %v1849_v30  ;;  %v1935_v30 = vld [vmem:[#allocation2 + $0x8d8] sm:$0xff] }
 0x6b1   : > { %6539 = vmatprep.subr.bf16.mxu0 %v7343_v0  ;;  %v1450_v35 = vrot.slane %v1449_v33, 2  ;;  %v6564_v23 = vpack.c.bf16 %v1846_v22, %v1845_v21  ;;  %v1933_v21 = vld [vmem:[#allocation2 + $0x8c8] sm:$0xff]  ;;  %v1934_v22 = vld [vmem:[#allocation2 + $0x8d0] sm:$0xff]  ;;  %v1936_v31 = vld [vmem:[#allocation2 + $0x8e0] sm:$0xff] }
 0x6b3   : > { %6507 = vmatpush3.bf16.msra.mxu1 %v6506_v43  ;;  %v1451_v26 = vadd.f32 %v1450_v35, %v1449_v33 }
 0x6b4   : > { %6509 = vmatprep.subr.bf16.mxu1 %v6508_v44  ;;  %6541 = vmatpush3.bf16.msra.mxu0 %v6540_v27  ;;  %v1848_v27 = vld [vmem:[#allocation2 + $0xa50] sm:$0xff] }
 0x6b5   : > { %6542 = vmatprep.subr.bf16.mxu0 %v7343_v0  ;;  %v1452_v43 = vrot.slane %v1451_v26, 1  ;;  %v6567_v29 = vpack.c.bf16 %v1848_v27, %v1847_v24  ;;  %v1952_v24 = vld [vmem:[#allocation2 + $0x960] sm:$0xff]  ;;  %v6598_v27 = vpack.c.bf16 %v1934_v22, %v1933_v21  ;;  %v2152_v22 = vld [vmem:[#allocation2 + $0xab0] sm:$0xff] }
 0x6b7   : > { %6511 = vmatpush3.bf16.msra.mxu1 %v6510_v54  ;;  %v1453_v28 = vadd.f32 %v1452_v43, %v1451_v26  ;;  %v1922_v26 = vld [vmem:[#allocation2 + $0x870] sm:$0xff]  ;;  %v1940_v43 = vld [vmem:[#allocation2 + $0x900] sm:$0xff] }
 0x6b8   : > { %6513 = vmatprep.subr.bf16.mxu1 %v6512_v55  ;;  %v7195_v55 = vld [vmem:[%s8105_s2] sm:$0xff] }
 0x6b9   : > { %v1454_v54 = vmul.f32 0.055555556, %v1453_v28 }
 0x6bb   : > { %6515 = vmatpush3.bf16.msra.mxu1 %v6514_v59  ;;  %v7200_v59 = vld [vmem:[%s8105_s2 + $0x28] sm:$0xff] }
 0x6bc   : > { %v7716_v63 = vpop.f32.mrb[28].mxu0  ;;  %6517 = vmatprep.subr.bf16.mxu1 %v6516_v60  ;;  %v1665_v60 = vld [vmem:[#allocation2 + $0x840] sm:$0xff] }
 0x6bd   : > { %v5549_v46 = vpop.f32.mrb[29].mxu0  ;;  %v6543_v61 = vpack.c.bf16 %v1666_v48, %v1665_v60  ;;  %v1925_v60 = vld [vmem:[#allocation2 + $0x888] sm:$0xff]  ;;  %v1926_v48 = vld [vmem:[#allocation2 + $0x890] sm:$0xff] }
 0x6be   : > { %v1668_v46 = vld [vmem:[#allocation2 + $0x858] sm:$0xff] }
 0x6bf   : > { %6519 = vmatpush3.bf16.msra.mxu1 %v6518_v62  ;;  %6544 = vmatpush3.bf16.msra.mxu0 %v6543_v61  ;;  %v1667_v62 = vld [vmem:[#allocation2 + $0x850] sm:$0xff]  ;;  %v1943_v61 = vld [vmem:[#allocation2 + $0x918] sm:$0xff] }
 0x6c0   : > { %6521 = vmatprep.subr.bf16.mxu1 %v6520_v4  ;;  %6545 = vmatprep.subr.bf16.mxu0 %v7343_v0  ;;  %v6546_v2 = vpack.c.bf16 %v1668_v46, %v1667_v62  ;;  %v1938_v4 = vld [vmem:[#allocation2 + $0x8f0] sm:$0xff]  ;;  %v1944_v62 = vld [vmem:[#allocation2 + $0x920] sm:$0xff]  ;;  %v6582_v46 = vpack.c.bf16 %v1926_v48, %v1925_v60 }
 0x6c1   : > { %v6572_v52 = vpack.c.bf16 %v1938_v4, %v1937_v3  ;;  %v1927_v3 = vld [vmem:[#allocation2 + $0x898] sm:$0xff]  ;;  %v1928_v4 = vld [vmem:[#allocation2 + $0x8a0] sm:$0xff]  ;;  %v1966_v60 = vld [vmem:[#allocation2 + $0x9d0] sm:$0xff] }
 0x6c3   : > { %6523 = vmatpush3.bf16.msra.mxu1 %v6522_v6  ;;  %6547 = vmatpush3.bf16.msra.mxu0 %v6546_v2  ;;  %v1836_v6 = vld [vmem:[#allocation2 + $0x9f0] sm:$0xff]  ;;  %v6584_v2 = vpack.c.bf16 %v1944_v62, %v1943_v61  ;;  %v1967_v61 = vld [vmem:[#allocation2 + $0x9d8] sm:$0xff]  ;;  %v1968_v62 = vld [vmem:[#allocation2 + $0x9e0] sm:$0xff] }
 0x6c4   : > { %6573 = vmatprep.subr.bf16.mxu0 %v6572_v52  ;;  %v6549_v8 = vpack.c.bf16 %v1836_v6, %v1835_v5  ;;  %v1945_v52 = vld [vmem:[#allocation2 + $0x928] sm:$0xff]  ;;  %v1946_v5 = vld [vmem:[#allocation2 + $0x930] sm:$0xff]  ;;  %v6586_v6 = vpack.c.bf16 %v1928_v4, %v1927_v3 }
 0x6c5   : > { %v6588_v7 = vpack.c.bf16 %v1946_v5, %v1945_v52 }
 0x779   : > { %v1441_v36 = vpop.f32.mrb[14].mxu1 }
 0x77a   : > { %v7728_v37 = vadd.f32 %v4349_v34, %v1441_v36  ;;  %v5514_v38 = vpop.f32.mrb[15].mxu1  ;;  %v1650_v36 = vld [vmem:[#allocation2 + $0x7d8] sm:$0x1] }
 0x77c   : > { %5585 = vmatprep.subr.mxu1 %v7728_v37  ;;  %v1455_v39 = vrot.slane %v7728_v37, 4 }
 0x77e   : > { %v1456_v25 = vadd.f32 %v1455_v39, %v7728_v37  ;;  %v1921_v39 = vld [vmem:[#allocation2 + $0x868] sm:$0xff] }
 0x77f   : > { %v6574_v28 = vpack.c.bf16 %v1922_v26, %v1921_v39 }
 0x780   : > { %v1457_v42 = vrot.slane %v1456_v25, 2 }
 0x782   : > { %v1458_v44 = vadd.f32 %v1457_v42, %v1456_v25  ;;  %v1939_v42 = vld [vmem:[#allocation2 + $0x8f8] sm:$0xff] }
 0x784   : > { %v1459_v45 = vrot.slane %v1458_v44, 1 }
 0x786   : > { %v1460_v51 = vadd.f32 %v1459_v45, %v1458_v44 }
 0x788   : > { %v1461_v53 = vmul.f32 0.125, %v1460_v51 }
 0x78a   : > { %1644 = vmatprep.mubr.f32.mxu1 %v1461_v53  ;;  %v6576_v53 = vpack.c.bf16 %v1940_v43, %v1939_v42  ;;  %v1955_v43 = vld [vmem:[#allocation2 + $0x978] sm:$0xff] }
 0x78b   : > { %1645 = vmatmul.mubr.f32.vlgmr.msra.gmra.mrb[16].mxu1 %v1454_v54  ;;  %v1923_v54 = vld [vmem:[#allocation2 + $0x878] sm:$0xff] }
 0x78c   : > { %5586 = vmatpush3.msra.mxu1 %v7728_v37  ;;  %5587 = vmatprep.mubr.msk.f32.mxu1 %vm524_vm2, %v7195_v55  ;;  %v1924_v55 = vld [vmem:[#allocation2 + $0x880] sm:$0xff] }
 0x78d   : > { %6548 = vmatprep.subr.bf16.mxu1 %v7343_v0 }
 0x78f   : > { %5588 = vmatmul.mubr.msk.f32.vlgmr.msra.gmra.mrb[18].mxu1 %vm524_vm2, %v7196_v56 }
 0x790   : > { %5590 = vmatprep.mubr.msk.f32.mxu1 %vm524_vm2, %v7197_v57  ;;  %6550 = vmatpush3.bf16.msra.mxu1 %v6549_v8  ;;  %v1941_v57 = vld [vmem:[#allocation2 + $0x908] sm:$0xff] }
 0x791   : > { %6551 = vmatprep.subr.bf16.mxu1 %v7343_v0  ;;  %v1929_v8 = vld [vmem:[#allocation2 + $0x8a8] sm:$0xff] }
 0x792   : > { %v6590_v11 = vpack.c.bf16 %v1930_v9, %v1929_v8 }
 0x793   : > { %5591 = vmatmul.mubr.msk.f32.gmra.mrb[20].mxu1 %vm524_vm2, %v7198_v58  ;;  %v1942_v58 = vld [vmem:[#allocation2 + $0x910] sm:$0xff] }
 0x794   : > { %5593 = vmatprep.mubr.msk.f32.mxu1 %vm524_vm2, %v7199_v47  ;;  %6553 = vmatpush3.bf16.msra.mxu1 %v6552_v10  ;;  %v1947_v10 = vld [vmem:[#allocation2 + $0x938] sm:$0xff] }
 0x795   : > { %6554 = vmatprep.subr.bf16.mxu1 %v7343_v0 }
 0x797   : > { %5594 = vmatmul.mubr.msk.f32.gmra.mrb[22].mxu1 %vm524_vm2, %v7200_v59  ;;  %v6580_v59 = vpack.c.bf16 %v1942_v58, %v1941_v57  ;;  %v1963_v58 = vld [vmem:[#allocation2 + $0x9b8] sm:$0xff] }
 0x798   : > { %5628 = vmatprep.mubr.msk.f32.mxu1 %vm7344_vm0, %v7345_v1  ;;  %6556 = vmatpush3.bf16.msra.mxu1 %v6555_v12  ;;  %v6592_v12 = vpack.c.bf16 %v1948_v19, %v1947_v10  ;;  %v2144_v10 = vld [vmem:[#allocation2 + $0xa70] sm:$0xff]  ;;  %v2145_v19 = vld [vmem:[#allocation2 + $0xa78] sm:$0xff] }
 0x799   : > { %6557 = vmatprep.subr.bf16.mxu1 %v7343_v0 }
 0x79c   : > { %6559 = vmatpush3.bf16.msra.mxu1 %v6558_v16  ;;  %v1949_v16 = vld [vmem:[#allocation2 + $0x948] sm:$0xff] }
 0x79d   : > { %6560 = vmatprep.subr.bf16.mxu1 %v7343_v0 }
 0x7a0   : > { %6562 = vmatpush3.bf16.msra.mxu1 %v6561_v20  ;;  %v6596_v20 = vpack.c.bf16 %v1950_v17, %v1949_v16  ;;  %v2149_v16 = vld [vmem:[#allocation2 + $0xa98] sm:$0xff] }
 0x7a1   : > { %6563 = vmatprep.subr.bf16.mxu1 %v7343_v0  ;;  %v6635_v17 = vpack.c.bf16 %v2149_v16, %v2148_v14  ;;  %v2328_v14 = vld [vmem:[#allocation2 + $0xc58] sm:$0xff]  ;;  %v2329_v16 = vld [vmem:[#allocation2 + $0xc60] sm:$0xff] }
 0x7a4   : > { %6565 = vmatpush3.bf16.msra.mxu1 %v6564_v23  ;;  %v1951_v23 = vld [vmem:[#allocation2 + $0x958] sm:$0xff] }
 0x7a5   : > { %6566 = vmatprep.subr.bf16.mxu1 %v7343_v0 }
 0x7a8   : > { %6568 = vmatpush3.bf16.msra.mxu1 %v6567_v29  ;;  %v6600_v29 = vpack.c.bf16 %v1952_v24, %v1951_v23  ;;  %v2153_v23 = vld [vmem:[#allocation2 + $0xab8] sm:$0xff] }
 0x7a9   : > { %6569 = vmatprep.subr.bf16.mxu1 %v7343_v0  ;;  %v6641_v24 = vpack.c.bf16 %v2153_v23, %v2152_v22 }
 0x7ac   : > { %6571 = vmatpush3.bf16.msra.mxu1 %v6570_v32  ;;  %v6602_v32 = vpack.c.bf16 %v1936_v31, %v1935_v30  ;;  %v2156_v31 = vld [vmem:[#allocation2 + $0xad0] sm:$0xff] }
 0x7ad   : > { %6604 = vmatprep.subr.bf16.mxu1 %v7343_v0 }
 0x85e   : > { %v4653_v33 = vpop.f32.mrb[16].mxu1 }
 0x85f   : > { %v4654_v34 = vpop.f32.mrb[17].mxu1 }
 0x860   : > { %v4655_v35 = vadd.f32 %v4654_v34, %v4653_v33 }
 0x862   : > { %v1647_v38 = vadd.f32 %v4655_v35, %v7716_v63  ;;  %v7771_v25 = vpop.f32.mrb[18].mxu1  ;;  %v6578_v63 = vpack.c.bf16 %v1924_v55, %v1923_v54  ;;  %v1953_v35 = vld [vmem:[#allocation2 + $0x968] sm:$0xff]  ;;  %v1962_v55 = vld [vmem:[#allocation2 + $0x9b0] sm:$0xff] }
 0x863   : > { %v1806_v44 = vpop.f32.mrb[19].mxu1  ;;  %v1961_v54 = vld [vmem:[#allocation2 + $0x9a8] sm:$0xff] }
 0x864   : > { %v1651_v45 = vadd.f32 %v1650_v36, %v1647_v38  ;;  %v1954_v36 = vld [vmem:[#allocation2 + $0x970] sm:$0xff]  ;;  %v1669_v38 = vld [vmem:[#allocation2 + $0x860] sm:$0x1]  ;;  %v6617_v57 = vpack.c.bf16 %v1962_v55, %v1961_v54 }
 0x865   : > { %v6605_v26 = vpack.c.bf16 %v1954_v36, %v1953_v35  ;;  %v2159_v35 = vld [vmem:[#allocation2 + $0xae8] sm:$0xff] }
 0x866   : > { %v1652_v51 = vmax.f32 %v1651_v45, 0.0  ;;  %v7773_v56 = vpop.f32.mrb[20].mxu1 }
 0x867   : > { %v1816_v47 = vpop.f32.mrb[21].mxu1 }
 0x868   : > { %5583 = vmatmul.mubr.f32.vlgmr.msra.gmra.mrb[30].mxu0 %v1652_v51  ;;  %v1960_v51 = vld [vmem:[#allocation2 + $0x9a0] sm:$0xff] }
 0x869   : > { %6575 = vmatpush3.bf16.msra.mxu0 %v6574_v28  ;;  %2037 = vmatprep.mubr.f32.mxu0 %v1806_v44  ;;  %v1958_v44 = vld [vmem:[#allocation2 + $0x990] sm:$0xff]  ;;  %v1959_v28 = vld [vmem:[#allocation2 + $0x998] sm:$0xff] }
 0x86a   : > { %6577 = vmatprep.subr.bf16.mxu0 %v6576_v53  ;;  %v5595_v33 = vpop.f32.mrb[22].mxu1  ;;  %v6614_v53 = vpack.c.bf16 %v1960_v51, %v1959_v28  ;;  %v2316_v28 = vld [vmem:[#allocation2 + $0xbf8] sm:$0xff]  ;;  %v2317_v51 = vld [vmem:[#allocation2 + $0xc00] sm:$0xff] }
 0x86b   : > { %v1826_v34 = vpop.f32.mrb[23].mxu1  ;;  %v6656_v55 = vpack.c.bf16 %v2317_v51, %v2316_v28  ;;  %v2422_v28 = vld [vmem:[#allocation2 + $0xb98] sm:$0xff]  ;;  %v2423_v51 = vld [vmem:[#allocation2 + $0xba0] sm:$0xff] }
 0x86d   : > { %6579 = vmatpush3.bf16.msra.mxu0 %v6578_v63 }
 0x86e   : > { %6581 = vmatprep.subr.bf16.mxu0 %v6580_v59  ;;  %v1965_v59 = vld [vmem:[#allocation2 + $0x9c8] sm:$0xff] }
 0x86f   : > { %v6623_v48 = vpack.c.bf16 %v1966_v60, %v1965_v59  ;;  %v2319_v59 = vld [vmem:[#allocation2 + $0xc10] sm:$0xff] }
 0x871   : > { %6583 = vmatpush3.bf16.msra.mxu0 %v6582_v46  ;;  %v6626_v46 = vpack.c.bf16 %v1968_v62, %v1967_v61 }
 0x872   : > { %6585 = vmatprep.subr.bf16.mxu0 %v6584_v2 }
 0x875   : > { %6587 = vmatpush3.bf16.msra.mxu0 %v6586_v6 }
 0x876   : > { %6589 = vmatprep.subr.bf16.mxu0 %v6588_v7 }
 0x879   : > { %6591 = vmatpush3.bf16.msra.mxu0 %v6590_v11  ;;  %v6629_v11 = vpack.c.bf16 %v2145_v19, %v2144_v10  ;;  %v2324_v10 = vld [vmem:[#allocation2 + $0xc38] sm:$0xff]  ;;  %v2325_v19 = vld [vmem:[#allocation2 + $0xc40] sm:$0xff] }
 0x87a   : > { %6593 = vmatprep.subr.bf16.mxu0 %v6592_v12  ;;  %v2147_v12 = vld [vmem:[#allocation2 + $0xa88] sm:$0xff] }
 0x87d   : > { %6595 = vmatpush3.bf16.msra.mxu0 %v6594_v18  ;;  %v2150_v18 = vld [vmem:[#allocation2 + $0xaa0] sm:$0xff] }
 0x87e   : > { %6597 = vmatprep.subr.bf16.mxu0 %v6596_v20  ;;  %v2151_v20 = vld [vmem:[#allocation2 + $0xaa8] sm:$0xff] }
 0x87f   : > { %v6638_v21 = vpack.c.bf16 %v2151_v20, %v2150_v18  ;;  %v2330_v18 = vld [vmem:[#allocation2 + $0xc68] sm:$0xff]  ;;  %v2331_v20 = vld [vmem:[#allocation2 + $0xc70] sm:$0xff] }
 0x881   : > { %6599 = vmatpush3.bf16.msra.mxu0 %v6598_v27  ;;  %v2154_v27 = vld [vmem:[#allocation2 + $0xac0] sm:$0xff] }
 0x882   : > { %6601 = vmatprep.subr.bf16.mxu0 %v6600_v29  ;;  %v2155_v29 = vld [vmem:[#allocation2 + $0xac8] sm:$0xff] }
 0x883   : > { %v6644_v30 = vpack.c.bf16 %v2155_v29, %v2154_v27 }
 0x885   : > { %6603 = vmatpush3.bf16.msra.mxu0 %v6602_v32  ;;  %v2157_v32 = vld [vmem:[#allocation2 + $0xad8] sm:$0xff] }
 0x886   : > { %6628 = vmatprep.subr.bf16.mxu0 %v7343_v0 }
 0x888   : > { %2038 = vmatmul.mubr.f32.vlgmr.msra.gmra.mrb[32].mxu0 %v7667_v40 }
 0x889   : > { %2042 = vmatprep.mubr.f32.mxu0 %v7771_v25  ;;  %v1956_v25 = vld [vmem:[#allocation2 + $0x980] sm:$0xff]  ;;  %6630 = vmatpush3.bf16.msra.mxu0 %v6629_v11  ;;  %v2326_v11 = vld [vmem:[#allocation2 + $0xc48] sm:$0xff] }
 0x88a   : > { %6631 = vmatprep.subr.bf16.mxu0 %v7343_v0 }
 0x88c   : > { %2043 = vmatmul.mubr.f32.gmra.mrb[34].mxu0 %v7669_v41  ;;  %v6608_v41 = vpack.c.bf16 %v1956_v25, %v1955_v43 }
 0x88d   : > { %2047 = vmatprep.mubr.f32.mxu0 %v1816_v47  ;;  %v1964_v47 = vld [vmem:[#allocation2 + $0x9c0] sm:$0xff] }
 0x88e   : > { %v6620_v63 = vpack.c.bf16 %v1964_v47, %v1963_v58 }
 0x890   : > { %2048 = vmatmul.mubr.f32.gmra.mrb[36].mxu0 %v7674_v49  ;;  %v1957_v49 = vld [vmem:[#allocation2 + $0x988] sm:$0xff] }
 0x891   : > { %5704 = vmatprep.mubr.msk.f32.mxu0 %vm7344_vm0, %v7345_v1  ;;  %v6611_v45 = vpack.c.bf16 %v1958_v44, %v1957_v49  ;;  %v4356_v49 = vld [vmem:[#allocation2 + $0xa68] ss:$0 sm:$0xff] }
 0x93b   : > { %v1736_v39 = vpop.f32.mrb[30].mxu0 }
 0x93c   : > { %v7782_v42 = vadd.f32 %v1736_v39, %v1669_v38  ;;  %v5584_v40 = vpop.f32.mrb[31].mxu0 }
 0x93e   : > { %5629 = vmatmul.mubr.f32.vlgmr.msra.gmra.mrb[24].mxu1 %v7782_v42 }
 0x93f   : > { %6606 = vmatpush3.bf16.msra.mxu1 %v6605_v26  ;;  %5663 = vmatprep.mubr.msk.f32.mxu1 %vm7344_vm0, %v7345_v1 }
 0x940   : > { %6607 = vmatprep.subr.bf16.mxu1 %v7343_v0 }
 0x943   : > { %6609 = vmatpush3.bf16.msra.mxu1 %v6608_v41 }
 0x944   : > { %6610 = vmatprep.subr.bf16.mxu1 %v7343_v0 }
 0x947   : > { %6612 = vmatpush3.bf16.msra.mxu1 %v6611_v45 }
 0x948   : > { %6613 = vmatprep.subr.bf16.mxu1 %v7343_v0 }
 0x94b   : > { %6615 = vmatpush3.bf16.msra.mxu1 %v6614_v53 }
 0x94c   : > { %6616 = vmatprep.subr.bf16.mxu1 %v7343_v0 }
 0x94f   : > { %6618 = vmatpush3.bf16.msra.mxu1 %v6617_v57 }
 0x950   : > { %6619 = vmatprep.subr.bf16.mxu1 %v7343_v0 }
 0x953   : > { %6621 = vmatpush3.bf16.msra.mxu1 %v6620_v63  ;;  %v2318_v63 = vld [vmem:[#allocation2 + $0xc08] sm:$0xff] }
 0x954   : > { %6622 = vmatprep.subr.bf16.mxu1 %v7343_v0  ;;  %v6659_v61 = vpack.c.bf16 %v2319_v59, %v2318_v63 }
 0x957   : > { %6624 = vmatpush3.bf16.msra.mxu1 %v6623_v48 }
 0x958   : > { %6625 = vmatprep.subr.bf16.mxu1 %v7343_v0 }
 0x95b   : > { %v4729_v2 = vpop.f32.mrb[32].mxu0  ;;  %6627 = vmatpush3.bf16.msra.mxu1 %v6626_v46 }
 0x95c   : > { %v4730_v3 = vpop.f32.mrb[33].mxu0  ;;  %6652 = vmatprep.subr.bf16.mxu1 %v7343_v0 }
 0x95d   : > { %v4731_v4 = vadd.f32 %v4730_v3, %v4729_v2  ;;  %v2320_v3 = vld [vmem:[#allocation2 + $0xc18] sm:$0xff] }
 0x95e   : > { %5664 = vmatmul.mubr.f32.vlgmr.msra.gmra.mrb[26].mxu1 %v7773_v56  ;;  %v2146_v56 = vld [vmem:[#allocation2 + $0xa80] sm:$0xff] }
 0x95f   : > { %v4732_v52 = vpop.f32.mrb[34].mxu0  ;;  %5666 = vmatprep.mubr.msk.f32.mxu1 %vm7344_vm0, %v7345_v1  ;;  %v6632_v13 = vpack.c.bf16 %v2147_v12, %v2146_v56  ;;  %v6668_v56 = vpack.c.bf16 %v2325_v19, %v2324_v10  ;;  %v2327_v12 = vld [vmem:[#allocation2 + $0xc50] sm:$0xff]  ;;  %v2431_v10 = vld [vmem:[#allocation2 + $0xbe0] sm:$0xff] }
 0x960   : > { %v4733_v5 = vpop.f32.mrb[35].mxu0 }
 0x961   : > { %v4734_v6 = vadd.f32 %v4733_v5, %v4732_v52  ;;  %6633 = vmatpush3.bf16.msra.mxu0 %v6632_v13  ;;  %v6671_v13 = vpack.c.bf16 %v2327_v12, %v2326_v11  ;;  %v2414_v12 = vld [vmem:[#allocation2 + $0xb58] sm:$0xff] }
 0x962   : > { %5667 = vmatmul.mubr.f32.gmra.mrb[28].mxu1 %v1826_v34  ;;  %6634 = vmatprep.subr.bf16.mxu0 %v7343_v0  ;;  %v2158_v34 = vld [vmem:[#allocation2 + $0xae0] sm:$0xff] }
 0x963   : > { %v4735_v7 = vpop.f32.mrb[36].mxu0  ;;  %5669 = vmatprep.mubr.msk.f32.mxu1 %vm7344_vm0, %v7345_v1  ;;  %v6650_v36 = vpack.c.bf16 %v2159_v35, %v2158_v34  ;;  %v2419_v34 = vld [vmem:[#allocation2 + $0xb80] sm:$0xff] }
 0x964   : > { %v4736_v8 = vpop.f32.mrb[37].mxu0 }
 0x965   : > { %v4737_v9 = vadd.f32 %v4736_v8, %v4735_v7  ;;  %6636 = vmatpush3.bf16.msra.mxu0 %v6635_v17  ;;  %v2322_v7 = vld [vmem:[#allocation2 + $0xc28] sm:$0xff]  ;;  %v2323_v8 = vld [vmem:[#allocation2 + $0xc30] sm:$0xff]  ;;  %v6674_v17 = vpack.c.bf16 %v2329_v16, %v2328_v14 }
 0x966   : > { %5670 = vmatmul.mubr.f32.gmra.mrb[30].mxu1 %v5595_v33  ;;  %6637 = vmatprep.subr.bf16.mxu0 %v7343_v0  ;;  %v6647_v33 = vpack.c.bf16 %v2157_v32, %v2156_v31  ;;  %v2432_v16 = vld [vmem:[#allocation2 + $0xbe8] sm:$0xff] }
 0x967   : > { %5719 = vmatprep.mubr.msk.f32.mxu1 %vm7344_vm0, %v7345_v1 }
 0x969   : > { %6639 = vmatpush3.bf16.msra.mxu0 %v6638_v21  ;;  %v6677_v21 = vpack.c.bf16 %v2331_v20, %v2330_v18 }
 0x96a   : > { %6640 = vmatprep.subr.bf16.mxu0 %v7343_v0 }
 0x96d   : > { %6642 = vmatpush3.bf16.msra.mxu0 %v6641_v24  ;;  %v4357_v24 = vld [vmem:[#allocation2 + $0xaf0] ss:$0 sm:$0xff] }
 0x96e   : > { %6643 = vmatprep.subr.bf16.mxu0 %v7343_v0 }
 0x971   : > { %6645 = vmatpush3.bf16.msra.mxu0 %v6644_v30 }
 0x972   : > { %6646 = vmatprep.subr.bf16.mxu0 %v7343_v0 }
 0x975   : > { %6648 = vmatpush3.bf16.msra.mxu0 %v6647_v33  ;;  %v2418_v33 = vld [vmem:[#allocation2 + $0xb78] sm:$0xff] }
 0x976   : > { %6649 = vmatprep.subr.bf16.mxu0 %v7343_v0 }
 0x979   : > { %6651 = vmatpush3.bf16.msra.mxu0 %v6650_v36  ;;  %v2402_v36 = vld [vmem:[#allocation2 + $0xaf8] sm:$0xff] }
 0x97a   : > { %6655 = vmatprep.subr.bf16.mxu0 %v7343_v0 }
 0xa11   : > { %v1917_v38 = vpop.f32.mrb[24].mxu1 }
 0xa12   : > { %v1972_v39 = vrot.slane %v1917_v38, %v7658_v15  ;;  %v5630_v26 = vpop.f32.mrb[25].mxu1  ;;  %v2403_v38 = vld [vmem:[#allocation2 + $0xb00] sm:$0xff] }
 0xa13   : > { %v2420_v26 = vld [vmem:[#allocation2 + $0xb88] sm:$0xff] }
 0xa14   : > { %v2040_v40 = vadd.f32 %v4731_v4, %v1972_v39  ;;  %v2045_v43 = vadd.f32 %v4734_v6, %v1972_v39  ;;  %v2050_v25 = vadd.f32 %v4737_v9, %v1972_v39  ;;  %v2321_v4 = vld [vmem:[#allocation2 + $0xc20] sm:$0xff]  ;;  %v6665_v9 = vpack.c.bf16 %v2323_v8, %v2322_v7  ;;  %v2412_v7 = vld [vmem:[#allocation2 + $0xb48] sm:$0xff]  ;;  %v2413_v8 = vld [vmem:[#allocation2 + $0xb50] sm:$0xff] }
 0xa15   : > { %v6662_v5 = vpack.c.bf16 %v2321_v4, %v2320_v3  ;;  %v2411_v3 = vld [vmem:[#allocation2 + $0xb40] sm:$0xff]  ;;  %v2428_v4 = vld [vmem:[#allocation2 + $0xbc8] sm:$0xff]  ;;  %v6701_v19 = vpack.c.bf16 %v2413_v8, %v2412_v7 }
 0xa16   : > { %v2635_v8 = vld [vmem:[#allocation2 + $0xe68] sm:$0xff] }
 0xa31   : > { %v2119_v41 = vpop.f32.mrb[26].mxu1 }
 0xa32   : > { %v2120_v44 = vadd.f32 %v2119_v41, %v2040_v40  ;;  %v5665_v45 = vpop.f32.mrb[27].mxu1  ;;  %v2421_v40 = vld [vmem:[#allocation2 + $0xb90] sm:$0xff]  ;;  %v6681_v41 = vpack.c.bf16 %v2403_v38, %v2402_v36  ;;  %v2520_v36 = vld [vmem:[#allocation2 + $0xca8] sm:$0xff] }
 0xa33   : > { %v2405_v45 = vld [vmem:[#allocation2 + $0xb10] sm:$0xff] }
 0xa34   : > { %v2138_v53 = vadd.f32 %v4356_v49, %v2120_v44  ;;  %v2404_v44 = vld [vmem:[#allocation2 + $0xb08] sm:$0xff] }
 0xa35   : > { %v2124_v54 = vpop.f32.mrb[28].mxu1 }
 0xa36   : > { %v2141_v57 = vmax.f32 %v2138_v53, 0.0  ;;  %v2125_v58 = vadd.f32 %v2124_v54, %v2045_v43  ;;  %v5668_v47 = vpop.f32.mrb[29].mxu1  ;;  %v6679_v43 = vpack.c.bf16 %v2419_v34, %v2418_v33  ;;  %v6685_v53 = vpack.c.bf16 %v2405_v45, %v2404_v44  ;;  %v2518_v33 = vld [vmem:[#allocation2 + $0xc98] sm:$0xff]  ;;  %v2525_v44 = vld [vmem:[#allocation2 + $0xcd0] sm:$0xff] }
 0xa37   : > { %v6687_v54 = vpack.c.bf16 %v2423_v51, %v2422_v28  ;;  %v2425_v47 = vld [vmem:[#allocation2 + $0xbb0] sm:$0xff]  ;;  %v2526_v45 = vld [vmem:[#allocation2 + $0xcd8] sm:$0xff]  ;;  %v2623_v51 = vld [vmem:[#allocation2 + $0xe08] sm:$0xff] }
 0xa38   : > { %v2139_v60 = vadd.f32 %v4356_v49, %v2125_v58  ;;  %5705 = vmatmul.mubr.f32.vlgmr.msra.gmra.mrb[38].mxu0 %v2141_v57  ;;  %v2407_v57 = vld [vmem:[#allocation2 + $0xb20] sm:$0xff]  ;;  %v2424_v58 = vld [vmem:[#allocation2 + $0xba8] sm:$0xff]  ;;  %v6727_v28 = vpack.c.bf16 %v2526_v45, %v2525_v44  ;;  %v2730_v45 = vld [vmem:[#allocation2 + $0xdb0] sm:$0xff] }
 0xa39   : > { %6657 = vmatpush3.bf16.msra.mxu0 %v6656_v55  ;;  %v2129_v48 = vpop.f32.mrb[30].mxu1  ;;  %5707 = vmatprep.mubr.msk.f32.mxu0 %vm7344_vm0, %v7345_v1  ;;  %v2406_v55 = vld [vmem:[#allocation2 + $0xb18] sm:$0xff]  ;;  %v6691_v59 = vpack.c.bf16 %v2425_v47, %v2424_v58  ;;  %v2729_v44 = vld [vmem:[#allocation2 + $0xda8] sm:$0xff] }
 0xa3a   : > { %v2142_v62 = vmax.f32 %v2139_v60, 0.0  ;;  %v2130_v46 = vadd.f32 %v2129_v48, %v2050_v25  ;;  %v5671_v2 = vpop.f32.mrb[31].mxu1  ;;  %6658 = vmatprep.subr.bf16.mxu0 %v7343_v0  ;;  %v6689_v63 = vpack.c.bf16 %v2407_v57, %v2406_v55  ;;  %v2408_v60 = vld [vmem:[#allocation2 + $0xb28] sm:$0xff]  ;;  %v2409_v48 = vld [vmem:[#allocation2 + $0xb30] sm:$0xff]  ;;  %v7201_v57 = vld [vmem:[#allocation2] sm:$0xff] }
 0xa3b   : > { %v2410_v2 = vld [vmem:[#allocation2 + $0xb38] sm:$0xff] }
 0xa3c   : > { %v2140_v52 = vadd.f32 %v4356_v49, %v2130_v46  ;;  %5708 = vmatmul.mubr.f32.gmra.mrb[40].mxu0 %v2142_v62  ;;  %v6683_v49 = vpack.c.bf16 %v2421_v40, %v2420_v26  ;;  %v2427_v62 = vld [vmem:[#allocation2 + $0xbc0] sm:$0xff]  ;;  %v6693_v46 = vpack.c.bf16 %v2409_v48, %v2408_v60  ;;  %v2522_v26 = vld [vmem:[#allocation2 + $0xcb8] sm:$0xff]  ;;  %v2627_v48 = vld [vmem:[#allocation2 + $0xe28] sm:$0xff] }
 0xa3d   : > { %6660 = vmatpush3.bf16.msra.mxu0 %v6659_v61  ;;  %5710 = vmatprep.mubr.msk.f32.mxu0 %vm7344_vm0, %v7345_v1  ;;  %v2426_v61 = vld [vmem:[#allocation2 + $0xbb8] sm:$0xff] }
 0xa3e   : > { %v2143_v6 = vmax.f32 %v2140_v52, 0.0  ;;  %6661 = vmatprep.subr.bf16.mxu0 %v7343_v0  ;;  %v2429_v52 = vld [vmem:[#allocation2 + $0xbd0] sm:$0xff] }
 0xa40   : > { %5711 = vmatmul.mubr.f32.gmra.mrb[42].mxu0 %v2143_v6  ;;  %v6699_v6 = vpack.c.bf16 %v2429_v52, %v2428_v4  ;;  %v2632_v4 = vld [vmem:[#allocation2 + $0xe50] sm:$0xff] }
 0xa41   : > { %6663 = vmatpush3.bf16.msra.mxu0 %v6662_v5  ;;  %5754 = vmatprep.mubr.msk.f32.mxu0 %vm7344_vm0, %v7345_v1  ;;  %v6697_v5 = vpack.c.bf16 %v2411_v3, %v2410_v2  ;;  %v2631_v3 = vld [vmem:[#allocation2 + $0xe48] sm:$0xff] }
 0xa42   : > { %6664 = vmatprep.subr.bf16.mxu0 %v7343_v0  ;;  %v6748_v52 = vpack.c.bf16 %v2632_v4, %v2631_v3 }
 0xa45   : > { %6666 = vmatpush3.bf16.msra.mxu0 %v6665_v9  ;;  %v2430_v9 = vld [vmem:[#allocation2 + $0xbd8] sm:$0xff] }
 0xa46   : > { %6667 = vmatprep.subr.bf16.mxu0 %v7343_v0  ;;  %v6703_v11 = vpack.c.bf16 %v2431_v10, %v2430_v9  ;;  %v2636_v9 = vld [vmem:[#allocation2 + $0xe70] sm:$0xff] }
 0xa47   : > { %v6754_v10 = vpack.c.bf16 %v2636_v9, %v2635_v8 }
 0xa49   : > { %6669 = vmatpush3.bf16.msra.mxu0 %v6668_v56 }
 0xa4a   : > { %6670 = vmatprep.subr.bf16.mxu0 %v7343_v0 }
 0xa4d   : > { %6672 = vmatpush3.bf16.msra.mxu0 %v6671_v13  ;;  %v2415_v13 = vld [vmem:[#allocation2 + $0xb60] sm:$0xff] }
 0xa4e   : > { %6673 = vmatprep.subr.bf16.mxu0 %v7343_v0  ;;  %v6705_v18 = vpack.c.bf16 %v2415_v13, %v2414_v12  ;;  %v2527_v13 = vld [vmem:[#allocation2 + $0xce0] sm:$0xff] }
 0xa51   : > { %6675 = vmatpush3.bf16.msra.mxu0 %v6674_v17  ;;  %v2433_v17 = vld [vmem:[#allocation2 + $0xbf0] sm:$0xff] }
 0xa52   : > { %6676 = vmatprep.subr.bf16.mxu0 %v7343_v0  ;;  %v6707_v20 = vpack.c.bf16 %v2433_v17, %v2432_v16  ;;  %v2529_v17 = vld [vmem:[#allocation2 + $0xcf0] sm:$0xff] }
 0xa55   : > { %6678 = vmatpush3.bf16.msra.mxu0 %v6677_v21  ;;  %v2416_v21 = vld [vmem:[#allocation2 + $0xb68] sm:$0xff] }
 0xa56   : > { %6711 = vmatprep.subr.bf16.mxu0 %v7343_v0 }
 0xa58   : > { %5755 = vmatmul.mubr.f32.vlgmr.msra.gmra.mrb[44].mxu0 %v7782_v42 }
 0xa59   : > { %5789 = vmatprep.mubr.msk.f32.mxu0 %vm7344_vm0, %v7345_v1 }
 0xb0b   : > { %v2231_v22 = vpop.f32.mrb[38].mxu0 }
 0xb0c   : > { %v5706_v23 = vpop.f32.mrb[39].mxu0  ;;  %v7828_v29 = vadd.f32 %v4357_v24, %v2231_v22  ;;  %v2417_v22 = vld [vmem:[#allocation2 + $0xb70] sm:$0xff] }
 0xb0d   : > { %v6709_v23 = vpack.c.bf16 %v2417_v22, %v2416_v21  ;;  %v2725_v21 = vld [vmem:[#allocation2 + $0xd88] sm:$0xff]  ;;  %v2726_v22 = vld [vmem:[#allocation2 + $0xd90] sm:$0xff] }
 0xb0f   : > { %v2236_v27 = vpop.f32.mrb[40].mxu0 }
 0xb10   : > { %v7830_v30 = vadd.f32 %v4357_v24, %v2236_v27  ;;  %v5709_v31 = vpop.f32.mrb[41].mxu0  ;;  %v2516_v27 = vld [vmem:[#allocation2 + $0xc88] sm:$0xff] }
 0xb11   : > { %v2517_v31 = vld [vmem:[#allocation2 + $0xc90] sm:$0xff] }
 0xb12   : > { %v6653_v32 = vpack.c.bf16 %v7830_v30, %v7828_v29  ;;  %v6715_v34 = vpack.c.bf16 %v2518_v33, %v2517_v31 }
 0xb13   : > { %v2241_v35 = vpop.f32.mrb[42].mxu0 }
 0xb14   : > { %v5712_v39 = vpop.f32.mrb[43].mxu0  ;;  %6654 = vmatpush3.bf16.msra.mxu1 %v6653_v32  ;;  %v7835_v25 = vadd.f32 %v4357_v24, %v2241_v35  ;;  %v2515_v24 = vld [vmem:[#allocation2 + $0xc80] sm:$0xff] }
 0xb15   : > { %5717 = vmatprep.subr.mxu1 %v7345_v1  ;;  %v6712_v32 = vpack.c.bf16 %v2516_v27, %v2515_v24  ;;  %v2519_v35 = vld [vmem:[#allocation2 + $0xca0] sm:$0xff]  ;;  %v2521_v39 = vld [vmem:[#allocation2 + $0xcb0] sm:$0xff] }
 0xb16   : > { %v6718_v38 = vpack.c.bf16 %v2520_v36, %v2519_v35  ;;  %v6721_v40 = vpack.c.bf16 %v2522_v26, %v2521_v39  ;;  %v2710_v35 = vld [vmem:[#allocation2 + $0xd10] sm:$0xff]  ;;  %v2727_v36 = vld [vmem:[#allocation2 + $0xd98] sm:$0xff] }
 0xb17   : > { %6713 = vmatpush3.bf16.msra.mxu0 %v6712_v32  ;;  %v4359_v32 = vld [vmem:[#allocation2 + $0xc78] ss:$0 sm:$0xff] }
 0xb18   : > { %5718 = vmatpush3.msra.mxu1 %v7835_v25  ;;  %6714 = vmatprep.subr.bf16.mxu0 %v7343_v0 }
 0xb19   : > { %5720 = vmatmul.mubr.msk.f32.vlgmr.msra.gmra.mrb[32].mxu1 %vm1080_vm3, %v7676_v50  ;;  %6680 = vmatprep.subr.bf16.mxu1 %v6679_v43  ;;  %v2523_v43 = vld [vmem:[#allocation2 + $0xcc0] sm:$0xff] }
 0xb1a   : > { %2502 = vmatprep.mubr.f32.mxu1 %v7728_v37  ;;  %6682 = vmatpush3.bf16.msra.mxu1 %v6681_v41  ;;  %v6695_v37 = vpack.c.bf16 %v2427_v62, %v2426_v61  ;;  %v2524_v41 = vld [vmem:[#allocation2 + $0xcc8] sm:$0xff]  ;;  %v2628_v61 = vld [vmem:[#allocation2 + $0xe30] sm:$0xff] }
 0xb1b   : > { %6684 = vmatprep.subr.bf16.mxu1 %v6683_v49  ;;  %6716 = vmatpush3.bf16.msra.mxu0 %v6715_v34  ;;  %v6724_v49 = vpack.c.bf16 %v2524_v41, %v2523_v43  ;;  %v6742_v62 = vpack.c.bf16 %v2628_v61, %v2627_v48  ;;  %v2709_v34 = vld [vmem:[#allocation2 + $0xd08] sm:$0xff]  ;;  %v2711_v41 = vld [vmem:[#allocation2 + $0xd18] sm:$0xff] }
 0xb1c   : > { %6717 = vmatprep.subr.bf16.mxu0 %v7343_v0  ;;  %v6761_v26 = vpack.c.bf16 %v2710_v35, %v2709_v34  ;;  %v2820_v35 = vld [vmem:[#allocation2 + $0xec0] sm:$0xff] }
 0xb1e   : > { %6686 = vmatpush3.bf16.msra.mxu1 %v6685_v53  ;;  %v2624_v53 = vld [vmem:[#allocation2 + $0xe10] sm:$0xff] }
 0xb1f   : > { %6688 = vmatprep.subr.bf16.mxu1 %v6687_v54  ;;  %6719 = vmatpush3.bf16.msra.mxu0 %v6718_v38  ;;  %v6736_v55 = vpack.c.bf16 %v2624_v53, %v2623_v51  ;;  %v2728_v38 = vld [vmem:[#allocation2 + $0xda0] sm:$0xff]  ;;  %v2713_v51 = vld [vmem:[#allocation2 + $0xd28] sm:$0xff]  ;;  %v2714_v53 = vld [vmem:[#allocation2 + $0xd30] sm:$0xff] }
 0xb20   : > { %6720 = vmatprep.subr.bf16.mxu0 %v7343_v0  ;;  %v6763_v43 = vpack.c.bf16 %v2728_v38, %v2727_v36  ;;  %v2821_v36 = vld [vmem:[#allocation2 + $0xec8] sm:$0xff] }
 0xb21   : > { %v6801_v38 = vpack.c.bf16 %v2821_v36, %v2820_v35  ;;  %v3088_v35 = vld [vmem:[#allocation2 + $0xf48] sm:$0xff]  ;;  %v3089_v36 = vld [vmem:[#allocation2 + $0xf50] sm:$0xff] }
 0xb22   : > { %6690 = vmatpush3.bf16.msra.mxu1 %v6689_v63  ;;  %v2625_v63 = vld [vmem:[#allocation2 + $0xe18] sm:$0xff] }
 0xb23   : > { %6692 = vmatprep.subr.bf16.mxu1 %v6691_v59  ;;  %6722 = vmatpush3.bf16.msra.mxu0 %v6721_v40  ;;  %v2626_v59 = vld [vmem:[#allocation2 + $0xe20] sm:$0xff] }
 0xb24   : > { %6723 = vmatprep.subr.bf16.mxu0 %v7343_v0  ;;  %v6739_v60 = vpack.c.bf16 %v2626_v59, %v2625_v63  ;;  %v2716_v63 = vld [vmem:[#allocation2 + $0xd40] sm:$0xff]  ;;  %v2733_v59 = vld [vmem:[#allocation2 + $0xdc8] sm:$0xff] }
 0xb26   : > { %6694 = vmatpush3.bf16.msra.mxu1 %v6693_v46  ;;  %v2629_v46 = vld [vmem:[#allocation2 + $0xe38] sm:$0xff] }
 0xb27   : > { %6696 = vmatprep.subr.bf16.mxu1 %v6695_v37  ;;  %6725 = vmatpush3.bf16.msra.mxu0 %v6724_v49  ;;  %v2630_v37 = vld [vmem:[#allocation2 + $0xe40] sm:$0xff] }
 0xb28   : > { %6726 = vmatprep.subr.bf16.mxu0 %v7343_v0  ;;  %v6745_v2 = vpack.c.bf16 %v2630_v37, %v2629_v46  ;;  %v2712_v49 = vld [vmem:[#allocation2 + $0xd20] sm:$0xff]  ;;  %v2718_v46 = vld [vmem:[#allocation2 + $0xd50] sm:$0xff]  ;;  %v2735_v37 = vld [vmem:[#allocation2 + $0xdd8] sm:$0xff] }
 0xb2a   : > { %6698 = vmatpush3.bf16.msra.mxu1 %v6697_v5  ;;  %v2633_v5 = vld [vmem:[#allocation2 + $0xe58] sm:$0xff] }
 0xb2b   : > { %v7841_v56 = vpop.f32.mrb[44].mxu0  ;;  %6700 = vmatprep.subr.bf16.mxu1 %v6699_v6  ;;  %6728 = vmatpush3.bf16.msra.mxu0 %v6727_v28  ;;  %v2634_v6 = vld [vmem:[#allocation2 + $0xe60] sm:$0xff]  ;;  %v6765_v28 = vpack.c.bf16 %v2712_v49, %v2711_v41  ;;  %v2825_v41 = vld [vmem:[#allocation2 + $0xee8] sm:$0xff] }
 0xb2c   : > { %v5756_v14 = vpop.f32.mrb[45].mxu0  ;;  %6729 = vmatprep.subr.bf16.mxu0 %v7343_v0  ;;  %v6751_v7 = vpack.c.bf16 %v2634_v6, %v2633_v5  ;;  %v2720_v5 = vld [vmem:[#allocation2 + $0xd60] sm:$0xff]  ;;  %v2737_v6 = vld [vmem:[#allocation2 + $0xde8] sm:$0xff] }
 0xb2d   : > { %v2528_v14 = vld [vmem:[#allocation2 + $0xce8] sm:$0xff] }
 0xb2e   : > { %6702 = vmatpush3.bf16.msra.mxu1 %v6701_v19  ;;  %v2637_v19 = vld [vmem:[#allocation2 + $0xe78] sm:$0xff]  ;;  %v6730_v16 = vpack.c.bf16 %v2528_v14, %v2527_v13 }
 0xb2f   : > { %6704 = vmatprep.subr.bf16.mxu1 %v6703_v11  ;;  %v2638_v11 = vld [vmem:[#allocation2 + $0xe80] sm:$0xff]  ;;  %v2739_v14 = vld [vmem:[#allocation2 + $0xdf8] sm:$0xff] }
 0xb30   : > { %v6757_v12 = vpack.c.bf16 %v2638_v11, %v2637_v19  ;;  %6731 = vmatpush3.bf16.msra.mxu0 %v6730_v16  ;;  %v2722_v19 = vld [vmem:[#allocation2 + $0xd70] sm:$0xff]  ;;  %v2740_v16 = vld [vmem:[#allocation2 + $0xe00] sm:$0xff] }
 0xb31   : > { %6732 = vmatprep.subr.bf16.mxu0 %v7343_v0 }
 0xb32   : > { %6706 = vmatpush3.bf16.msra.mxu1 %v6705_v18  ;;  %v2530_v18 = vld [vmem:[#allocation2 + $0xcf8] sm:$0xff] }
 0xb33   : > { %6708 = vmatprep.subr.bf16.mxu1 %v6707_v20  ;;  %v6733_v20 = vpack.c.bf16 %v2530_v18, %v2529_v17  ;;  %v6787_v17 = vpack.c.bf16 %v2740_v16, %v2739_v14  ;;  %v2723_v18 = vld [vmem:[#allocation2 + $0xd78] sm:$0xff]  ;;  %v3085_v14 = vld [vmem:[#allocation2 + $0xf30] sm:$0xff] }
 0xb34   : > { %v3102_v16 = vld [vmem:[#allocation2 + $0xfb8] sm:$0xff] }
 0xb35   : > { %6734 = vmatpush3.bf16.msra.mxu0 %v6733_v20  ;;  %v2724_v20 = vld [vmem:[#allocation2 + $0xd80] sm:$0xff] }
 0xb36   : > { %6710 = vmatpush3.bf16.msra.mxu1 %v6709_v23  ;;  %v6759_v23 = vpack.c.bf16 %v2726_v22, %v2725_v21  ;;  %v6789_v21 = vpack.c.bf16 %v2724_v20, %v2723_v18  ;;  %v2814_v22 = vld [vmem:[#allocation2 + $0xe90] sm:$0xff]  ;;  %v7203_v18 = vld [vmem:[%s8105_s2 + $0x8] sm:$0xff] }
 0xb37   : > { %6735 = vmatprep.subr.bf16.mxu1 %v7343_v0  ;;  %v7204_v20 = vld [vmem:[%s8105_s2 + $0x10] sm:$0xff] }
 0xb38   : > { %6760 = vmatprep.subr.bf16.mxu0 %v6759_v23  ;;  %v2815_v23 = vld [vmem:[#allocation2 + $0xe98] sm:$0xff] }
 0xbec   : > { %v2311_v54 = vpop.f32.mrb[32].mxu1 }
 0xbed   : > { %v2315_v58 = vmul.f32 %v7201_v57, %v2311_v54  ;;  %v5721_v47 = vpop.f32.mrb[33].mxu1  ;;  %v2731_v54 = vld [vmem:[#allocation2 + $0xdb8] sm:$0xff]  ;;  %v6769_v57 = vpack.c.bf16 %v2714_v53, %v2713_v51  ;;  %v4360_v53 = vld [vmem:[#allocation2 + $0xd00] ss:$0 sm:$0xff] }
 0xbee   : > { %v2715_v47 = vld [vmem:[#allocation2 + $0xd38] sm:$0xff] }
 0xbef   : > { %2503 = vmatmul.mubr.f32.vlgmr.msra.gmra.mrb[34].mxu1 %v2315_v58  ;;  %v6773_v48 = vpack.c.bf16 %v2716_v63, %v2715_v47 }
 0xbf0   : > { %6737 = vmatpush3.bf16.msra.mxu1 %v6736_v55  ;;  %5824 = vmatprep.mubr.msk.f32.mxu1 %vm7344_vm0, %v7345_v1  ;;  %v2732_v55 = vld [vmem:[#allocation2 + $0xdc0] sm:$0xff] }
 0xbf1   : > { %6738 = vmatprep.subr.bf16.mxu1 %v7343_v0  ;;  %v6771_v58 = vpack.c.bf16 %v2732_v55, %v2731_v54 }
 0xbf4   : > { %6740 = vmatpush3.bf16.msra.mxu1 %v6739_v60  ;;  %v2734_v60 = vld [vmem:[#allocation2 + $0xdd0] sm:$0xff] }
 0xbf5   : > { %6741 = vmatprep.subr.bf16.mxu1 %v7343_v0  ;;  %v6775_v61 = vpack.c.bf16 %v2734_v60, %v2733_v59 }
 0xbf8   : > { %6743 = vmatpush3.bf16.msra.mxu1 %v6742_v62  ;;  %v2717_v62 = vld [vmem:[#allocation2 + $0xd48] sm:$0xff] }
 0xbf9   : > { %6744 = vmatprep.subr.bf16.mxu1 %v7343_v0  ;;  %v6777_v3 = vpack.c.bf16 %v2718_v46, %v2717_v62 }
 0xbfc   : > { %6746 = vmatpush3.bf16.msra.mxu1 %v6745_v2  ;;  %v2736_v2 = vld [vmem:[#allocation2 + $0xde0] sm:$0xff] }
 0xbfd   : > { %6747 = vmatprep.subr.bf16.mxu1 %v7343_v0  ;;  %v6779_v4 = vpack.c.bf16 %v2736_v2, %v2735_v37  ;;  %v3098_v2 = vld [vmem:[#allocation2 + $0xf98] sm:$0xff] }
 0xc00   : > { %6749 = vmatpush3.bf16.msra.mxu1 %v6748_v52  ;;  %v2719_v52 = vld [vmem:[#allocation2 + $0xd58] sm:$0xff] }
 0xc01   : > { %6750 = vmatprep.subr.bf16.mxu1 %v7343_v0  ;;  %v6781_v8 = vpack.c.bf16 %v2720_v5, %v2719_v52 }
 0xc04   : > { %6752 = vmatpush3.bf16.msra.mxu1 %v6751_v7  ;;  %v2738_v7 = vld [vmem:[#allocation2 + $0xdf0] sm:$0xff] }
 0xc05   : > { %6753 = vmatprep.subr.bf16.mxu1 %v7343_v0  ;;  %v6783_v9 = vpack.c.bf16 %v2738_v7, %v2737_v6  ;;  %v3082_v6 = vld [vmem:[#allocation2 + $0xf18] sm:$0xff]  ;;  %v3083_v7 = vld [vmem:[#allocation2 + $0xf20] sm:$0xff] }
 0xc08   : > { %6755 = vmatpush3.bf16.msra.mxu1 %v6754_v10  ;;  %v2721_v10 = vld [vmem:[#allocation2 + $0xd68] sm:$0xff] }
 0xc09   : > { %6756 = vmatprep.subr.bf16.mxu1 %v7343_v0  ;;  %v6785_v11 = vpack.c.bf16 %v2722_v19, %v2721_v10  ;;  %v7202_v10 = vld [vmem:[%s8105_s2] sm:$0xff]  ;;  %v6841_v19 = vpack.c.bf16 %v3083_v7, %v3082_v6  ;;  %v2829_v6 = vld [vmem:[#allocation2 + $0xf08] sm:$0xff] }
 0xc0c   : > { %6758 = vmatpush3.bf16.msra.mxu1 %v6757_v12 }
 0xc0d   : > { %6791 = vmatprep.subr.bf16.mxu1 %v7343_v0 }
 0xc0f   : > { %5825 = vmatmul.mubr.f32.vlgmr.msra.gmra.mrb[36].mxu1 %v7782_v42  ;;  %v2437_v42 = vrot.slane %v7841_v56, %v7658_v15  ;;  %v6767_v56 = vpack.c.bf16 %v2730_v45, %v2729_v44  ;;  %v2607_v44 = vsel %vm336_vm1, %v7835_v25, 0.0  ;;  %v2606_v45 = vadd.f32 %v7830_v30, %v7828_v29 }
 0xc10   : > { %5859 = vmatprep.mubr.msk.f32.mxu1 %vm7344_vm0, %v7345_v1 }
 0xcc2   : > { %v4829_v24 = vpop.f32.mrb[34].mxu1 }
 0xcc3   : > { %v4830_v27 = vpop.f32.mrb[35].mxu1 }
 0xcc4   : > { %v4831_v31 = vadd.f32 %v4830_v27, %v4829_v24  ;;  %v6792_v24 = vpack.c.bf16 %v2815_v23, %v2814_v22  ;;  %v2816_v27 = vld [vmem:[#allocation2 + $0xea0] sm:$0xff]  ;;  %v3086_v23 = vld [vmem:[#allocation2 + $0xf38] sm:$0xff] }
 0xcc6   : > { %v2505_v33 = vadd.f32 %v4831_v31, %v2437_v42  ;;  %v2817_v42 = vld [vmem:[#allocation2 + $0xea8] sm:$0xff]  ;;  %6793 = vmatpush3.bf16.msra.mxu1 %v6792_v24  ;;  %v3087_v24 = vld [vmem:[#allocation2 + $0xf40] sm:$0xff] }
 0xcc7   : > { %v6795_v31 = vpack.c.bf16 %v2817_v42, %v2816_v27  ;;  %6794 = vmatprep.subr.bf16.mxu1 %v7343_v0  ;;  %v3104_v27 = vld [vmem:[#allocation2 + $0xfc8] sm:$0xff]  ;;  %v3105_v42 = vld [vmem:[#allocation2 + $0xfd0] sm:$0xff] }
 0xcc8   : > { %v2513_v39 = vadd.f32 %v4359_v32, %v2505_v33  ;;  %v2818_v32 = vld [vmem:[#allocation2 + $0xeb0] sm:$0xff]  ;;  %v2819_v33 = vld [vmem:[#allocation2 + $0xeb8] sm:$0xff] }
 0xcc9   : > { %v6798_v34 = vpack.c.bf16 %v2819_v33, %v2818_v32  ;;  %v6849_v32 = vpack.c.bf16 %v3087_v24, %v3086_v23  ;;  %v7206_v33 = vld [vmem:[%s8105_s2 + $0x20] sm:$0xff]  ;;  %v2998_v23 = vld [vmem:[#allocation2 + $0x10a8] sm:$0xff]  ;;  %v2999_v24 = vld [vmem:[#allocation2 + $0x10b0] sm:$0xff] }
 0xcca   : > { %v2514_v40 = vmax.f32 %v2513_v39, 0.0  ;;  %6796 = vmatpush3.bf16.msra.mxu1 %v6795_v31  ;;  %v2822_v39 = vld [vmem:[#allocation2 + $0xed0] sm:$0xff]  ;;  %v7205_v31 = vld [vmem:[%s8105_s2 + $0x18] sm:$0xff] }
 0xccb   : > { %6797 = vmatprep.subr.bf16.mxu1 %v7343_v0 }
 0xccc   : > { %5790 = vmatmul.mubr.f32.vlgmr.msra.gmra.mrb[46].mxu0 %v2514_v40 }
 0xccd   : > { %6762 = vmatpush3.bf16.msra.mxu0 %v6761_v26  ;;  %v2823_v26 = vld [vmem:[#allocation2 + $0xed8] sm:$0xff] }
 0xcce   : > { %6764 = vmatprep.subr.bf16.mxu0 %v6763_v43  ;;  %6799 = vmatpush3.bf16.msra.mxu1 %v6798_v34  ;;  %v6804_v40 = vpack.c.bf16 %v2823_v26, %v2822_v39  ;;  %v2824_v43 = vld [vmem:[#allocation2 + $0xee0] sm:$0xff]  ;;  %v6851_v34 = vpack.c.bf16 %v3105_v42, %v3104_v27  ;;  %v7207_v26 = vld [vmem:[%s8105_s2 + $0x28] sm:$0xff]  ;;  %v3000_v42 = vld [vmem:[#allocation2 + $0x10b8] sm:$0xff] }
 0xccf   : > { %6800 = vmatprep.subr.bf16.mxu1 %v7343_v0  ;;  %v6807_v49 = vpack.c.bf16 %v2825_v41, %v2824_v43  ;;  %v3107_v39 = vld [vmem:[#allocation2 + $0xfe0] sm:$0xff]  ;;  %v3090_v41 = vld [vmem:[#allocation2 + $0xf58] sm:$0xff] }
 0xcd1   : > { %6766 = vmatpush3.bf16.msra.mxu0 %v6765_v28  ;;  %v2608_v28 = vadd.f32 %v2607_v44, %v2606_v45  ;;  %v3108_v44 = vld [vmem:[#allocation2 + $0xfe8] sm:$0xff]  ;;  %v3109_v45 = vld [vmem:[#allocation2 + $0xff0] sm:$0xff] }
 0xcd2   : > { %6768 = vmatprep.subr.bf16.mxu0 %v6767_v56  ;;  %6802 = vmatpush3.bf16.msra.mxu1 %v6801_v38  ;;  %v3106_v38 = vld [vmem:[#allocation2 + $0xfd8] sm:$0xff] }
 0xcd3   : > { %6803 = vmatprep.subr.bf16.mxu1 %v7343_v0  ;;  %v2609_v56 = vrot.slane %v2608_v28, 4  ;;  %v6855_v43 = vpack.c.bf16 %v3107_v39, %v3106_v38  ;;  %v3005_v38 = vld [vmem:[#allocation2 + $0x10e0] sm:$0xff] }
 0xcd5   : > { %6770 = vmatpush3.bf16.msra.mxu0 %v6769_v57  ;;  %v2610_v51 = vadd.f32 %v2609_v56, %v2608_v28  ;;  %v6859_v56 = vpack.c.bf16 %v3109_v45, %v3108_v44  ;;  %v3010_v44 = vld [vmem:[#allocation2 + $0x1108] sm:$0xff]  ;;  %v3011_v45 = vld [vmem:[#allocation2 + $0x1110] sm:$0xff] }
 0xcd6   : > { %6772 = vmatprep.subr.bf16.mxu0 %v6771_v58  ;;  %6805 = vmatpush3.bf16.msra.mxu1 %v6804_v40  ;;  %v6853_v40 = vpack.c.bf16 %v3089_v36, %v3088_v35  ;;  %v3004_v36 = vld [vmem:[#allocation2 + $0x10d8] sm:$0xff] }
 0xcd7   : > { %6806 = vmatprep.subr.bf16.mxu1 %v7343_v0  ;;  %v2611_v54 = vrot.slane %v2610_v51, 2  ;;  %v6828_v39 = vpack.c.bf16 %v3005_v38, %v3004_v36  ;;  %v3311_v36 = vld [vmem:[#allocation2 + $0x1150] sm:$0xff] }
 0xcd9   : > { %6774 = vmatpush3.bf16.msra.mxu0 %v6773_v48  ;;  %v2612_v63 = vadd.f32 %v2611_v54, %v2610_v51  ;;  %v3092_v51 = vld [vmem:[#allocation2 + $0xf68] sm:$0xff]  ;;  %v3110_v54 = vld [vmem:[#allocation2 + $0xff8] sm:$0xff] }
 0xcda   : > { %6776 = vmatprep.subr.bf16.mxu0 %v6775_v61  ;;  %6808 = vmatpush3.bf16.msra.mxu1 %v6807_v49  ;;  %v3091_v49 = vld [vmem:[#allocation2 + $0xf60] sm:$0xff] }
 0xcdb   : > { %6809 = vmatprep.subr.bf16.mxu1 %v7343_v0  ;;  %v2613_v48 = vrot.slane %v2612_v63, 1  ;;  %v6857_v28 = vpack.c.bf16 %v3091_v49, %v3090_v41  ;;  %v3009_v41 = vld [vmem:[#allocation2 + $0x1100] sm:$0xff] }
 0xcdd   : > { %6778 = vmatpush3.bf16.msra.mxu0 %v6777_v3  ;;  %v2614_v46 = vadd.f32 %v2613_v48, %v2612_v63  ;;  %v3099_v3 = vld [vmem:[#allocation2 + $0xfa0] sm:$0xff]  ;;  %v3094_v63 = vld [vmem:[#allocation2 + $0xf78] sm:$0xff]  ;;  %v2826_v48 = vld [vmem:[#allocation2 + $0xef0] sm:$0xff] }
 0xcde   : > { %6780 = vmatprep.subr.bf16.mxu0 %v6779_v4  ;;  %v6839_v5 = vpack.c.bf16 %v3099_v3, %v3098_v2  ;;  %v3096_v2 = vld [vmem:[#allocation2 + $0xf88] sm:$0xff]  ;;  %v3097_v3 = vld [vmem:[#allocation2 + $0xf90] sm:$0xff] }
 0xcdf   : > { %v2615_v52 = vmul.f32 0.055555556, %v2614_v46 }
 0xce1   : > { %6782 = vmatpush3.bf16.msra.mxu0 %v6781_v8  ;;  %v3100_v8 = vld [vmem:[#allocation2 + $0xfa8] sm:$0xff] }
 0xce2   : > { %v7866_v12 = vpop.f32.mrb[36].mxu1  ;;  %6784 = vmatprep.subr.bf16.mxu0 %v6783_v9  ;;  %v3101_v9 = vld [vmem:[#allocation2 + $0xfb0] sm:$0xff] }
 0xce3   : > { %v5826_v13 = vpop.f32.mrb[37].mxu1 }
 0xce4   : > { %v3084_v13 = vld [vmem:[#allocation2 + $0xf28] sm:$0xff] }
 0xce5   : > { %6786 = vmatpush3.bf16.msra.mxu0 %v6785_v11  ;;  %v6843_v11 = vpack.c.bf16 %v3101_v9, %v3100_v8 }
 0xce6   : > { %6788 = vmatprep.subr.bf16.mxu0 %v6787_v17  ;;  %v3103_v17 = vld [vmem:[#allocation2 + $0xfc0] sm:$0xff] }
 0xce7   : > { %v6847_v22 = vpack.c.bf16 %v3103_v17, %v3102_v16  ;;  %v2997_v16 = vld [vmem:[#allocation2 + $0x10a0] sm:$0xff] }
 0xce9   : > { %6790 = vmatpush3.bf16.msra.mxu0 %v6789_v21  ;;  %v6845_v21 = vpack.c.bf16 %v3085_v14, %v3084_v13  ;;  %v2996_v14 = vld [vmem:[#allocation2 + $0x1098] sm:$0xff] }
 0xd9f   : > { %v2602_v55 = vpop.f32.mrb[46].mxu0 }
 0xda0   : > { %v7878_v57 = vadd.f32 %v4360_v53, %v2602_v55  ;;  %v5791_v58 = vpop.f32.mrb[47].mxu0  ;;  %v3093_v53 = vld [vmem:[#allocation2 + $0xf70] sm:$0xff]  ;;  %v3111_v55 = vld [vmem:[#allocation2 + $0x1000] sm:$0xff] }
 0xda1   : > { %v6861_v58 = vpack.c.bf16 %v3093_v53, %v3092_v51  ;;  %v3114_v51 = vld [vmem:[#allocation2 + $0x1018] sm:$0xff]  ;;  %v3115_v53 = vld [vmem:[#allocation2 + $0x1020] sm:$0xff] }
 0xda2   : > { %5862 = vmatprep.subr.mxu0 %v7878_v57  ;;  %v2616_v47 = vrot.slane %v7878_v57, 4 }
 0xda4   : > { %v2617_v59 = vadd.f32 %v2616_v47, %v7878_v57  ;;  %v6863_v47 = vpack.c.bf16 %v3111_v55, %v3110_v54  ;;  %v2830_v55 = vld [vmem:[#allocation2 + $0xf10] sm:$0x1] }
 0xda6   : > { %v2618_v60 = vrot.slane %v2617_v59, 2 }
 0xda8   : > { %v2619_v61 = vadd.f32 %v2618_v60, %v2617_v59  ;;  %v3095_v59 = vld [vmem:[#allocation2 + $0xf80] sm:$0xff] }
 0xda9   : > { %v6865_v60 = vpack.c.bf16 %v3095_v59, %v3094_v63  ;;  %v6872_v63 = vpack.c.bf16 %v3115_v53, %v3114_v51 }
 0xdaa   : > { %v2620_v62 = vrot.slane %v2619_v61, 1 }
 0xdac   : > { %v2621_v37 = vadd.f32 %v2620_v62, %v2619_v61  ;;  %v2827_v61 = vld [vmem:[#allocation2 + $0xef8] sm:$0xff]  ;;  %v3112_v62 = vld [vmem:[#allocation2 + $0x1008] sm:$0xff] }
 0xdad   : > { %v6810_v46 = vpack.c.bf16 %v2827_v61, %v2826_v48  ;;  %v3116_v61 = vld [vmem:[#allocation2 + $0x1028] sm:$0xff] }
 0xdae   : > { %v2622_v4 = vmul.f32 0.125, %v2621_v37  ;;  %v3113_v37 = vld [vmem:[#allocation2 + $0x1010] sm:$0xff] }
 0xdaf   : > { %6811 = vmatpush3.bf16.msra.mxu1 %v6810_v46 }
 0xdb0   : > { %2805 = vmatprep.mubr.f32.mxu0 %v2622_v4  ;;  %v6867_v4 = vpack.c.bf16 %v3113_v37, %v3112_v62  ;;  %6812 = vmatprep.subr.bf16.mxu1 %v7343_v0  ;;  %v3117_v62 = vld [vmem:[#allocation2 + $0x1030] sm:$0xff] }
 0xdb1   : > { %2806 = vmatmul.mubr.f32.vlgmr.msra.gmra.mrb[48].mxu0 %v2615_v52  ;;  %v6869_v52 = vpack.c.bf16 %v3097_v3, %v3096_v2  ;;  %v6875_v2 = vpack.c.bf16 %v3117_v62, %v3116_v61  ;;  %v4367_v61 = vld [vmem:[#allocation2 + $0x1118] ss:$0 sm:$0xff] }
 0xdb2   : > { %5863 = vmatpush3.msra.mxu0 %v7878_v57  ;;  %5864 = vmatprep.mubr.msk.f32.mxu0 %vm524_vm2, %v7202_v10 }
 0xdb3   : > { %6840 = vmatprep.subr.bf16.mxu0 %v6839_v5  ;;  %v2828_v5 = vld [vmem:[#allocation2 + $0xf00] sm:$0xff] }
 0xdb4   : > { %v6813_v7 = vpack.c.bf16 %v2829_v6, %v2828_v5 }
 0xdb5   : > { %5865 = vmatmul.mubr.msk.f32.vlgmr.msra.gmra.mrb[50].mxu0 %vm524_vm2, %v7203_v18 }
 0xdb6   : > { %5867 = vmatprep.mubr.msk.f32.mxu0 %vm524_vm2, %v7204_v20  ;;  %6842 = vmatpush3.bf16.msra.mxu0 %v6841_v19  ;;  %v2811_v19 = vld [vmem:[#allocation2 + $0xe88] sm:$0x1]  ;;  %v6816_v20 = vpack.c.bf16 %v2997_v16, %v2996_v14  ;;  %v3125_v16 = vld [vmem:[#allocation2 + $0x1070] sm:$0xff] }
 0xdb7   : > { %6844 = vmatprep.subr.bf16.mxu0 %v6843_v11  ;;  %6814 = vmatpush3.bf16.msra.mxu1 %v6813_v7  ;;  %v3124_v14 = vld [vmem:[#allocation2 + $0x1068] sm:$0xff] }
 0xdb8   : > { %6815 = vmatprep.subr.bf16.mxu1 %v7343_v0 }
 0xdb9   : > { %5868 = vmatmul.mubr.msk.f32.gmra.mrb[52].mxu0 %vm524_vm2, %v7205_v31  ;;  %v3001_v31 = vld [vmem:[#allocation2 + $0x10c0] sm:$0xff] }
 0xdba   : > { %6846 = vmatpush3.bf16.msra.mxu0 %v6845_v21  ;;  %5870 = vmatprep.mubr.msk.f32.mxu0 %vm524_vm2, %v7206_v33  ;;  %v6822_v33 = vpack.c.bf16 %v3001_v31, %v3000_v42  ;;  %v3306_v42 = vld [vmem:[#allocation2 + $0x1128] sm:$0xff]  ;;  %v3307_v31 = vld [vmem:[#allocation2 + $0x1130] sm:$0xff] }
 0xdbb   : > { %6848 = vmatprep.subr.bf16.mxu0 %v6847_v22 }
 0xdbd   : > { %5871 = vmatmul.mubr.msk.f32.gmra.mrb[54].mxu0 %vm524_vm2, %v7207_v26  ;;  %v3007_v26 = vld [vmem:[#allocation2 + $0x10f0] sm:$0xff] }
 0xdbe   : > { %6850 = vmatpush3.bf16.msra.mxu0 %v6849_v32 }
 0xdbf   : > { %6852 = vmatprep.subr.bf16.mxu0 %v6851_v34  ;;  %v3003_v34 = vld [vmem:[#allocation2 + $0x10d0] sm:$0xff] }
 0xdc2   : > { %6854 = vmatpush3.bf16.msra.mxu0 %v6853_v40 }
 0xdc3   : > { %6856 = vmatprep.subr.bf16.mxu0 %v6855_v43  ;;  %v3008_v43 = vld [vmem:[#allocation2 + $0x10f8] sm:$0xff] }
 0xdc4   : > { %v6834_v49 = vpack.c.bf16 %v3009_v41, %v3008_v43  ;;  %v3316_v43 = vld [vmem:[#allocation2 + $0x1178] sm:$0xff] }
 0xdc6   : > { %6858 = vmatpush3.bf16.msra.mxu0 %v6857_v28  ;;  %v6837_v28 = vpack.c.bf16 %v3011_v45, %v3010_v44  ;;  %v3318_v44 = vld [vmem:[#allocation2 + $0x1188] sm:$0xff] }
 0xdc7   : > { %6860 = vmatprep.subr.bf16.mxu0 %v6859_v56 }
 0xdca   : > { %6862 = vmatpush3.bf16.msra.mxu0 %v6861_v58 }
 0xdcb   : > { %6864 = vmatprep.subr.bf16.mxu0 %v6863_v47 }
 0xdce   : > { %6866 = vmatpush3.bf16.msra.mxu0 %v6865_v60 }
 0xdcf   : > { %6868 = vmatprep.subr.bf16.mxu0 %v6867_v4  ;;  %v3118_v4 = vld [vmem:[#allocation2 + $0x1038] sm:$0xff] }
 0xdd2   : > { %6870 = vmatpush3.bf16.msra.mxu0 %v6869_v52  ;;  %v3119_v52 = vld [vmem:[#allocation2 + $0x1040] sm:$0xff] }
 0xdd3   : > { %6895 = vmatprep.subr.bf16.mxu0 %v7343_v0  ;;  %v6878_v7 = vpack.c.bf16 %v3119_v52, %v3118_v4 }
 0xe84   : > { %v4898_v8 = vpop.f32.mrb[48].mxu0 }
 0xe85   : > { %v4899_v9 = vpop.f32.mrb[49].mxu0 }
 0xe86   : > { %v4900_v10 = vadd.f32 %v4899_v9, %v4898_v8  ;;  %v3120_v8 = vld [vmem:[#allocation2 + $0x1048] sm:$0xff]  ;;  %v3121_v9 = vld [vmem:[#allocation2 + $0x1050] sm:$0xff] }
 0xe88   : > { %v2808_v11 = vadd.f32 %v4900_v10, %v7866_v12  ;;  %v5866_v13 = vpop.f32.mrb[50].mxu0  ;;  %v6819_v12 = vpack.c.bf16 %v2999_v24, %v2998_v23  ;;  %v6881_v10 = vpack.c.bf16 %v3121_v9, %v3120_v8  ;;  %v3128_v23 = vld [vmem:[#allocation2 + $0x1088] sm:$0xff]  ;;  %v3129_v24 = vld [vmem:[#allocation2 + $0x1090] sm:$0xff] }
 0xe89   : > { %v2967_v17 = vpop.f32.mrb[51].mxu0 }
 0xe8a   : > { %v2812_v18 = vadd.f32 %v2811_v19, %v2808_v11  ;;  %3198 = vmatprep.mubr.f32.mxu0 %v2967_v17  ;;  %v3122_v19 = vld [vmem:[#allocation2 + $0x1058] sm:$0xff]  ;;  %v3123_v11 = vld [vmem:[#allocation2 + $0x1060] sm:$0xff]  ;;  %v6887_v17 = vpack.c.bf16 %v3125_v16, %v3124_v14  ;;  %v3481_v16 = vld [vmem:[#allocation2 + $0x12c8] sm:$0xff] }
 0xe8b   : > { %3199 = vmatmul.mubr.f32.vlgmr.msra.gmra.mrb[56].mxu0 %v7828_v29 }
 0xe8c   : > { %v2813_v21 = vmax.f32 %v2812_v18, 0.0  ;;  %3203 = vmatprep.mubr.f32.mxu0 %v5866_v13  ;;  %v7913_v22 = vpop.f32.mrb[52].mxu0  ;;  %v6884_v13 = vpack.c.bf16 %v3123_v11, %v3122_v19  ;;  %v3126_v18 = vld [vmem:[#allocation2 + $0x1078] sm:$0xff]  ;;  %v3480_v19 = vld [vmem:[#allocation2 + $0x12c0] sm:$0xff] }
 0xe8d   : > { %v2977_v27 = vpop.f32.mrb[53].mxu0 }
 0xe8e   : > { %5860 = vmatmul.mubr.f32.vlgmr.msra.gmra.mrb[38].mxu1 %v2813_v21 }
 0xe8f   : > { %3204 = vmatmul.mubr.f32.gmra.mrb[58].mxu0 %v7830_v30  ;;  %6817 = vmatpush3.bf16.msra.mxu1 %v6816_v20  ;;  %v3002_v30 = vld [vmem:[#allocation2 + $0x10c8] sm:$0xff]  ;;  %v3127_v20 = vld [vmem:[#allocation2 + $0x1080] sm:$0xff] }
 0xe90   : > { %3208 = vmatprep.mubr.f32.mxu0 %v2977_v27  ;;  %6818 = vmatprep.subr.bf16.mxu1 %v7343_v0  ;;  %v7917_v32 = vpop.f32.mrb[54].mxu0  ;;  %v6825_v35 = vpack.c.bf16 %v3003_v34, %v3002_v30  ;;  %v6890_v21 = vpack.c.bf16 %v3127_v20, %v3126_v18  ;;  %v6893_v27 = vpack.c.bf16 %v3129_v24, %v3128_v23  ;;  %v3308_v30 = vld [vmem:[#allocation2 + $0x1138] sm:$0xff]  ;;  %v3309_v34 = vld [vmem:[#allocation2 + $0x1140] sm:$0xff] }
 0xe91   : > { %v7919_v29 = vpop.f32.mrb[55].mxu0  ;;  %5905 = vmatprep.mubr.msk.f32.mxu1 %vm7344_vm0, %v7345_v1  ;;  %v3483_v23 = vld [vmem:[#allocation2 + $0x12d8] sm:$0xff]  ;;  %v3484_v24 = vld [vmem:[#allocation2 + $0x12e0] sm:$0xff] }
 0xe93   : > { %3209 = vmatmul.mubr.f32.gmra.mrb[60].mxu0 %v7835_v25  ;;  %6820 = vmatpush3.bf16.msra.mxu1 %v6819_v12  ;;  %v3006_v25 = vld [vmem:[#allocation2 + $0x10e8] sm:$0xff]  ;;  %v3305_v12 = vld [vmem:[#allocation2 + $0x1120] sm:$0xff] }
 0xe94   : > { %6821 = vmatprep.subr.bf16.mxu1 %v7343_v0  ;;  %5981 = vmatprep.mubr.msk.f32.mxu0 %vm7344_vm0, %v7345_v1  ;;  %v6831_v40 = vpack.c.bf16 %v3007_v26, %v3006_v25  ;;  %v3314_v25 = vld [vmem:[#allocation2 + $0x1168] sm:$0xff] }
 0xe97   : > { %6823 = vmatpush3.bf16.msra.mxu1 %v6822_v33  ;;  %v6896_v33 = vpack.c.bf16 %v3306_v42, %v3305_v12  ;;  %v3485_v12 = vld [vmem:[#allocation2 + $0x12e8] sm:$0xff]  ;;  %v3486_v42 = vld [vmem:[#allocation2 + $0x12f0] sm:$0xff] }
 0xe98   : > { %6824 = vmatprep.subr.bf16.mxu1 %v7343_v0 }
 0xe99   : > { %6897 = vmatpush3.bf16.msra.mxu0 %v6896_v33  ;;  %v3487_v33 = vld [vmem:[#allocation2 + $0x12f8] sm:$0xff] }
 0xe9a   : > { %6898 = vmatprep.subr.bf16.mxu0 %v7343_v0 }
 0xe9b   : > { %6826 = vmatpush3.bf16.msra.mxu1 %v6825_v35  ;;  %v3310_v35 = vld [vmem:[#allocation2 + $0x1148] sm:$0xff] }
 0xe9c   : > { %6827 = vmatprep.subr.bf16.mxu1 %v7343_v0 }
 0xe9f   : > { %6829 = vmatpush3.bf16.msra.mxu1 %v6828_v39  ;;  %v3313_v39 = vld [vmem:[#allocation2 + $0x1160] sm:$0xff] }
 0xea0   : > { %6830 = vmatprep.subr.bf16.mxu1 %v7343_v0  ;;  %v6908_v26 = vpack.c.bf16 %v3314_v25, %v3313_v39 }
 0xea3   : > { %6832 = vmatpush3.bf16.msra.mxu1 %v6831_v40  ;;  %v3315_v40 = vld [vmem:[#allocation2 + $0x1170] sm:$0xff] }
 0xea4   : > { %6833 = vmatprep.subr.bf16.mxu1 %v7343_v0  ;;  %v6911_v41 = vpack.c.bf16 %v3316_v43, %v3315_v40 }
 0xea7   : > { %6835 = vmatpush3.bf16.msra.mxu1 %v6834_v49  ;;  %v3317_v49 = vld [vmem:[#allocation2 + $0x1180] sm:$0xff] }
 0xea8   : > { %6836 = vmatprep.subr.bf16.mxu1 %v7343_v0  ;;  %v6914_v45 = vpack.c.bf16 %v3318_v44, %v3317_v49 }
 0xeab   : > { %6838 = vmatpush3.bf16.msra.mxu1 %v6837_v28  ;;  %v3319_v28 = vld [vmem:[#allocation2 + $0x1190] sm:$0xff] }
 0xeac   : > { %6871 = vmatprep.subr.bf16.mxu1 %v7343_v0 }
 0xf5e   : > { %v4974_v56 = vpop.f32.mrb[56].mxu0 }
 0xf5f   : > { %v4975_v54 = vpop.f32.mrb[57].mxu0 }
 0xf60   : > { %v7933_v58 = vadd.f32 %v4975_v54, %v4974_v56  ;;  %v3320_v56 = vld [vmem:[#allocation2 + $0x1198] sm:$0xff] }
 0xf61   : > { %v2897_v47 = vpop.f32.mrb[38].mxu1  ;;  %v6917_v51 = vpack.c.bf16 %v3320_v56, %v3319_v28  ;;  %v3579_v28 = vld [vmem:[#allocation2 + $0x1228] sm:$0xff]  ;;  %v3580_v56 = vld [vmem:[#allocation2 + $0x1230] sm:$0xff] }
 0xf62   : > { %v7935_v59 = vadd.f32 %v2897_v47, %v2830_v55  ;;  %v5861_v60 = vpop.f32.mrb[39].mxu1  ;;  %v4977_v48 = vpop.f32.mrb[58].mxu0 }
 0xf63   : > { %v4978_v46 = vpop.f32.mrb[59].mxu0 }
 0xf64   : > { %v7937_v37 = vadd.f32 %v4978_v46, %v4977_v48  ;;  %5906 = vmatmul.mubr.f32.vlgmr.msra.gmra.mrb[40].mxu1 %v7935_v59 }
 0xf65   : > { %6873 = vmatpush3.bf16.msra.mxu1 %v6872_v63  ;;  %5940 = vmatprep.mubr.msk.f32.mxu1 %vm7344_vm0, %v7345_v1 }
 0xf66   : > { %v4980_v3 = vpop.f32.mrb[60].mxu0  ;;  %6874 = vmatprep.subr.bf16.mxu1 %v7343_v0 }
 0xf67   : > { %v4981_v5 = vpop.f32.mrb[61].mxu0 }
 0xf68   : > { %v7943_v6 = vadd.f32 %v4981_v5, %v4980_v3  ;;  %v3478_v3 = vld [vmem:[#allocation2 + $0x12b0] sm:$0xff] }
 0xf69   : > { %6876 = vmatpush3.bf16.msra.mxu1 %v6875_v2  ;;  %v3477_v2 = vld [vmem:[#allocation2 + $0x12a8] sm:$0xff] }
 0xf6a   : > { %6877 = vmatprep.subr.bf16.mxu1 %v7343_v0  ;;  %v6923_v5 = vpack.c.bf16 %v3478_v3, %v3477_v2  ;;  %v3565_v3 = vld [vmem:[#allocation2 + $0x11b8] sm:$0xff] }
 0xf6d   : > { %6879 = vmatpush3.bf16.msra.mxu1 %v6878_v7 }
 0xf6e   : > { %6880 = vmatprep.subr.bf16.mxu1 %v7343_v0 }
 0xf71   : > { %6882 = vmatpush3.bf16.msra.mxu1 %v6881_v10  ;;  %v3479_v10 = vld [vmem:[#allocation2 + $0x12b8] sm:$0xff] }
 0xf72   : > { %6883 = vmatprep.subr.bf16.mxu1 %v7343_v0 }
 0xf75   : > { %6885 = vmatpush3.bf16.msra.mxu1 %v6884_v13 }
 0xf76   : > { %6886 = vmatprep.subr.bf16.mxu1 %v7343_v0 }
 0xf79   : > { %6888 = vmatpush3.bf16.msra.mxu1 %v6887_v17  ;;  %v3482_v17 = vld [vmem:[#allocation2 + $0x12d0] sm:$0xff] }
 0xf7a   : > { %6889 = vmatprep.subr.bf16.mxu1 %v7343_v0  ;;  %v6929_v20 = vpack.c.bf16 %v3482_v17, %v3481_v16  ;;  %v3588_v16 = vld [vmem:[#allocation2 + $0x1270] sm:$0xff]  ;;  %v3571_v17 = vld [vmem:[#allocation2 + $0x11e8] sm:$0xff] }
 0xf7d   : > { %6891 = vmatpush3.bf16.msra.mxu1 %v6890_v21 }
 0xf7e   : > { %6892 = vmatprep.subr.bf16.mxu1 %v7343_v0 }
 0xf81   : > { %6894 = vmatpush3.bf16.msra.mxu1 %v6893_v27  ;;  %v6932_v27 = vpack.c.bf16 %v3484_v24, %v3483_v23 }
 0xf82   : > { %6919 = vmatprep.subr.bf16.mxu1 %v7343_v0 }
 0xf84   : > { %5941 = vmatmul.mubr.f32.vlgmr.msra.gmra.mrb[42].mxu1 %v7913_v22  ;;  %v6899_v22 = vpack.c.bf16 %v3308_v30, %v3307_v31  ;;  %v6935_v31 = vpack.c.bf16 %v3486_v42, %v3485_v12  ;;  %v3488_v30 = vld [vmem:[#allocation2 + $0x1300] sm:$0xff]  ;;  %v3591_v42 = vld [vmem:[#allocation2 + $0x1288] sm:$0xff] }
 0xf85   : > { %5943 = vmatprep.mubr.msk.f32.mxu1 %vm7344_vm0, %v7345_v1  ;;  %v3574_v12 = vld [vmem:[#allocation2 + $0x1200] sm:$0xff] }
 0xf86   : > { %6900 = vmatpush3.bf16.msra.mxu0 %v6899_v22  ;;  %v6938_v22 = vpack.c.bf16 %v3488_v30, %v3487_v33 }
 0xf87   : > { %6901 = vmatprep.subr.bf16.mxu0 %v7343_v0 }
 0xf88   : > { %5944 = vmatmul.mubr.f32.gmra.mrb[44].mxu1 %v7919_v29  ;;  %v6902_v29 = vpack.c.bf16 %v3310_v35, %v3309_v34  ;;  %v3489_v34 = vld [vmem:[#allocation2 + $0x1308] sm:$0xff]  ;;  %v3490_v35 = vld [vmem:[#allocation2 + $0x1310] sm:$0xff] }
 0xf89   : > { %5946 = vmatprep.mubr.msk.f32.mxu1 %vm7344_vm0, %v7345_v1 }
 0xf8a   : > { %6903 = vmatpush3.bf16.msra.mxu0 %v6902_v29  ;;  %v6941_v29 = vpack.c.bf16 %v3490_v35, %v3489_v34  ;;  %v3575_v34 = vld [vmem:[#allocation2 + $0x1208] sm:$0xff]  ;;  %v3576_v35 = vld [vmem:[#allocation2 + $0x1210] sm:$0xff] }
 0xf8b   : > { %6904 = vmatprep.subr.bf16.mxu0 %v7343_v0 }
 0xf8c   : > { %5947 = vmatmul.mubr.f32.gmra.mrb[46].mxu1 %v7917_v32  ;;  %v3312_v32 = vld [vmem:[#allocation2 + $0x1158] sm:$0xff] }
 0xf8d   : > { %5996 = vmatprep.mubr.msk.f32.mxu1 %vm7344_vm0, %v7345_v1  ;;  %v6905_v38 = vpack.c.bf16 %v3312_v32, %v3311_v36  ;;  %v3491_v36 = vld [vmem:[#allocation2 + $0x1318] sm:$0xff]  ;;  %v3492_v32 = vld [vmem:[#allocation2 + $0x1320] sm:$0xff] }
 0xf8f   : > { %6906 = vmatpush3.bf16.msra.mxu0 %v6905_v38  ;;  %v6944_v38 = vpack.c.bf16 %v3492_v32, %v3491_v36  ;;  %v3593_v36 = vld [vmem:[#allocation2 + $0x1298] sm:$0xff]  ;;  %v3594_v32 = vld [vmem:[#allocation2 + $0x12a0] sm:$0xff] }
 0xf90   : > { %6907 = vmatprep.subr.bf16.mxu0 %v7343_v0 }
 0xf93   : > { %6909 = vmatpush3.bf16.msra.mxu0 %v6908_v26  ;;  %v4368_v26 = vld [vmem:[#allocation2 + $0x11a0] ss:$0 sm:$0xff] }
 0xf94   : > { %6910 = vmatprep.subr.bf16.mxu0 %v7343_v0 }
 0xf97   : > { %6912 = vmatpush3.bf16.msra.mxu0 %v6911_v41 }
 0xf98   : > { %6913 = vmatprep.subr.bf16.mxu0 %v7343_v0 }
 0xf9b   : > { %6915 = vmatpush3.bf16.msra.mxu0 %v6914_v45 }
 0xf9c   : > { %6916 = vmatprep.subr.bf16.mxu0 %v7343_v0 }
 0xf9f   : > { %6918 = vmatpush3.bf16.msra.mxu0 %v6917_v51 }
 0xfa0   : > { %6922 = vmatprep.subr.bf16.mxu0 %v7343_v0 }
0x1037   : > { %v3078_v53 = vpop.f32.mrb[40].mxu1 }
0x1038   : > { %v3133_v54 = vrot.slane %v3078_v53, %v7658_v15  ;;  %v5907_v55 = vpop.f32.mrb[41].mxu1  ;;  %v3563_v53 = vld [vmem:[#allocation2 + $0x11a8] sm:$0xff] }
0x103a   : > { %v3201_v47 = vadd.f32 %v7933_v58, %v3133_v54  ;;  %v3206_v63 = vadd.f32 %v7937_v37, %v3133_v54  ;;  %v3211_v60 = vadd.f32 %v7943_v6, %v3133_v54  ;;  %v6926_v37 = vpack.c.bf16 %v3480_v19, %v3479_v10  ;;  %v3564_v54 = vld [vmem:[#allocation2 + $0x11b0] sm:$0xff]  ;;  %v3585_v19 = vld [vmem:[#allocation2 + $0x1258] sm:$0xff] }
0x103b   : > { %v3568_v10 = vld [vmem:[#allocation2 + $0x11d0] sm:$0xff] }
0x1057   : > { %v3280_v48 = vpop.f32.mrb[42].mxu1 }
0x1058   : > { %v3281_v62 = vadd.f32 %v3280_v48, %v3201_v47  ;;  %v5942_v46 = vpop.f32.mrb[43].mxu1  ;;  %v6946_v48 = vpack.c.bf16 %v3580_v56, %v3579_v28  ;;  %v3680_v56 = vld [vmem:[#allocation2 + $0x1350] sm:$0xff] }
0x105a   : > { %v3299_v4 = vadd.f32 %v4367_v61, %v3281_v62  ;;  %v6948_v62 = vpack.c.bf16 %v3564_v54, %v3563_v53  ;;  %v3682_v54 = vld [vmem:[#allocation2 + $0x1360] sm:$0xff] }
0x105b   : > { %v3285_v52 = vpop.f32.mrb[44].mxu1 }
0x105c   : > { %v3302_v7 = vmax.f32 %v3299_v4, 0.0  ;;  %v3286_v8 = vadd.f32 %v3285_v52, %v3206_v63  ;;  %v5945_v9 = vpop.f32.mrb[45].mxu1  ;;  %v3581_v63 = vld [vmem:[#allocation2 + $0x1238] sm:$0xff]  ;;  %v3566_v4 = vld [vmem:[#allocation2 + $0x11c0] sm:$0xff]  ;;  %v3583_v52 = vld [vmem:[#allocation2 + $0x1248] sm:$0xff] }
0x105d   : > { %v3567_v9 = vld [vmem:[#allocation2 + $0x11c8] sm:$0xff] }
0x105e   : > { %v3300_v11 = vadd.f32 %v4367_v61, %v3286_v8  ;;  %5982 = vmatmul.mubr.f32.vlgmr.msra.gmra.mrb[62].mxu0 %v3302_v7  ;;  %v6952_v7 = vpack.c.bf16 %v3566_v4, %v3565_v3  ;;  %v3784_v3 = vld [vmem:[#allocation2 + $0x14b8] sm:$0xff]  ;;  %v3785_v4 = vld [vmem:[#allocation2 + $0x14c0] sm:$0xff] }
0x105f   : > { %6924 = vmatpush3.bf16.msra.mxu0 %v6923_v5  ;;  %v3290_v58 = vpop.f32.mrb[46].mxu1  ;;  %5984 = vmatprep.mubr.msk.f32.mxu0 %vm7344_vm0, %v7345_v1  ;;  %v3584_v5 = vld [vmem:[#allocation2 + $0x1250] sm:$0xff] }
0x1060   : > { %v3303_v6 = vmax.f32 %v3300_v11, 0.0  ;;  %v3291_v13 = vadd.f32 %v3290_v58, %v3211_v60  ;;  %v5948_v14 = vpop.f32.mrb[47].mxu1  ;;  %6925 = vmatprep.subr.bf16.mxu0 %v7343_v0  ;;  %v3582_v60 = vld [vmem:[#allocation2 + $0x1240] sm:$0xff]  ;;  %v6954_v8 = vpack.c.bf16 %v3584_v5, %v3583_v52  ;;  %v6956_v58 = vpack.c.bf16 %v3568_v10, %v3567_v9  ;;  %v3786_v10 = vld [vmem:[#allocation2 + $0x14c8] sm:$0xff] }
0x1061   : > { %v6950_v2 = vpack.c.bf16 %v3582_v60, %v3581_v63  ;;  %v3586_v11 = vld [vmem:[#allocation2 + $0x1260] sm:$0xff]  ;;  %v3587_v14 = vld [vmem:[#allocation2 + $0x1268] sm:$0xff]  ;;  %v3684_v63 = vld [vmem:[#allocation2 + $0x1370] sm:$0xff]  ;;  %v7003_v5 = vpack.c.bf16 %v3785_v4, %v3784_v3 }
0x1062   : > { %v3301_v18 = vadd.f32 %v4367_v61, %v3291_v13  ;;  %5985 = vmatmul.mubr.f32.gmra.mrb[64].mxu0 %v3303_v6  ;;  %v3569_v6 = vld [vmem:[#allocation2 + $0x11d8] sm:$0xff]  ;;  %v3570_v13 = vld [vmem:[#allocation2 + $0x11e0] sm:$0xff] }
0x1063   : > { %6927 = vmatpush3.bf16.msra.mxu0 %v6926_v37  ;;  %5987 = vmatprep.mubr.msk.f32.mxu0 %vm7344_vm0, %v7345_v1  ;;  %v6958_v37 = vpack.c.bf16 %v3586_v11, %v3585_v19  ;;  %v3685_v60 = vld [vmem:[#allocation2 + $0x1378] sm:$0xff]  ;;  %v3787_v19 = vld [vmem:[#allocation2 + $0x14d0] sm:$0xff] }
0x1064   : > { %v3304_v21 = vmax.f32 %v3301_v18, 0.0  ;;  %6928 = vmatprep.subr.bf16.mxu0 %v7343_v0  ;;  %v3572_v18 = vld [vmem:[#allocation2 + $0x11f0] sm:$0xff]  ;;  %v7006_v11 = vpack.c.bf16 %v3787_v19, %v3786_v10  ;;  %v3894_v10 = vld [vmem:[#allocation2 + $0x1478] sm:$0xff]  ;;  %v3895_v19 = vld [vmem:[#allocation2 + $0x1480] sm:$0xff] }
0x1065   : > { %v6964_v23 = vpack.c.bf16 %v3572_v18, %v3571_v17  ;;  %v3794_v18 = vld [vmem:[#allocation2 + $0x1508] sm:$0xff] }
0x1066   : > { %5988 = vmatmul.mubr.f32.gmra.mrb[66].mxu0 %v3304_v21  ;;  %v3590_v21 = vld [vmem:[#allocation2 + $0x1280] sm:$0xff] }
0x1067   : > { %6930 = vmatpush3.bf16.msra.mxu0 %v6929_v20  ;;  %6031 = vmatprep.mubr.msk.f32.mxu0 %vm7344_vm0, %v7345_v1  ;;  %v3589_v20 = vld [vmem:[#allocation2 + $0x1278] sm:$0xff] }
0x1068   : > { %6931 = vmatprep.subr.bf16.mxu0 %v7343_v0  ;;  %v6966_v24 = vpack.c.bf16 %v3590_v21, %v3589_v20  ;;  %v3795_v20 = vld [vmem:[#allocation2 + $0x1510] sm:$0xff] }
0x1069   : > { %v7018_v21 = vpack.c.bf16 %v3795_v20, %v3794_v18  ;;  %v3898_v18 = vld [vmem:[#allocation2 + $0x1498] sm:$0xff]  ;;  %v3899_v20 = vld [vmem:[#allocation2 + $0x14a0] sm:$0xff] }
0x106b   : > { %6933 = vmatpush3.bf16.msra.mxu0 %v6932_v27  ;;  %v3573_v27 = vld [vmem:[#allocation2 + $0x11f8] sm:$0xff] }
0x106c   : > { %6934 = vmatprep.subr.bf16.mxu0 %v7343_v0  ;;  %v6968_v33 = vpack.c.bf16 %v3574_v12, %v3573_v27  ;;  %v3798_v12 = vld [vmem:[#allocation2 + $0x1528] sm:$0xff] }
0x106f   : > { %6936 = vmatpush3.bf16.msra.mxu0 %v6935_v31  ;;  %v3592_v31 = vld [vmem:[#allocation2 + $0x1290] sm:$0xff] }
0x1070   : > { %6937 = vmatprep.subr.bf16.mxu0 %v7343_v0 }
0x1073   : > { %6939 = vmatpush3.bf16.msra.mxu0 %v6938_v22  ;;  %v6970_v22 = vpack.c.bf16 %v3592_v31, %v3591_v42  ;;  %v3799_v42 = vld [vmem:[#allocation2 + $0x1530] sm:$0xff] }
0x1074   : > { %6940 = vmatprep.subr.bf16.mxu0 %v7343_v0  ;;  %v7024_v31 = vpack.c.bf16 %v3799_v42, %v3798_v12  ;;  %v3901_v42 = vld [vmem:[#allocation2 + $0x14b0] sm:$0xff] }
0x1077   : > { %6942 = vmatpush3.bf16.msra.mxu0 %v6941_v29 }
0x1078   : > { %6943 = vmatprep.subr.bf16.mxu0 %v7343_v0 }
0x107b   : > { %6945 = vmatpush3.bf16.msra.mxu0 %v6944_v38  ;;  %v6972_v38 = vpack.c.bf16 %v3576_v35, %v3575_v34  ;;  %v3690_v35 = vld [vmem:[#allocation2 + $0x13a0] sm:$0xff] }
0x107c   : > { %6978 = vmatprep.subr.bf16.mxu0 %v7343_v0 }
0x107e   : > { %6032 = vmatmul.mubr.f32.vlgmr.msra.gmra.mrb[68].mxu0 %v7935_v59 }
0x107f   : > { %6066 = vmatprep.mubr.msk.f32.mxu0 %vm7344_vm0, %v7345_v1 }
0x1131   : > { %v3392_v39 = vpop.f32.mrb[62].mxu0 }
0x1132   : > { %v5983_v25 = vpop.f32.mrb[63].mxu0  ;;  %v3393_v43 = vadd.f32 %v4368_v26, %v3392_v39  ;;  %v6974_v39 = vpack.c.bf16 %v3594_v32, %v3593_v36  ;;  %v3886_v32 = vld [vmem:[#allocation2 + $0x1438] sm:$0xff] }
0x1133   : > { %v3577_v25 = vld [vmem:[#allocation2 + $0x1218] sm:$0xff] }
0x1135   : > { %v3397_v40 = vpop.f32.mrb[64].mxu0 }
0x1136   : > { %v3398_v41 = vadd.f32 %v4368_v26, %v3397_v40  ;;  %v5986_v49 = vpop.f32.mrb[65].mxu0 }
0x1137   : > { %v3678_v49 = vld [vmem:[#allocation2 + $0x1340] sm:$0xff] }
0x1138   : > { %v6920_v44 = vpack.c.bf16 %v3398_v41, %v3393_v43  ;;  %v3767_v45 = vadd.f32 %v3398_v41, %v3393_v43  ;;  %v3676_v43 = vld [vmem:[#allocation2 + $0x1330] sm:$0xff]  ;;  %v3677_v41 = vld [vmem:[#allocation2 + $0x1338] sm:$0xff] }
0x1139   : > { %v3402_v51 = vpop.f32.mrb[66].mxu0 }
0x113a   : > { %v3403_v55 = vadd.f32 %v4368_v26, %v3402_v51  ;;  %v5989_v47 = vpop.f32.mrb[67].mxu0  ;;  %6921 = vmatpush3.bf16.msra.mxu1 %v6920_v44  ;;  %v3578_v26 = vld [vmem:[#allocation2 + $0x1220] sm:$0xff]  ;;  %v6979_v44 = vpack.c.bf16 %v3677_v41, %v3676_v43  ;;  %v3681_v51 = vld [vmem:[#allocation2 + $0x1358] sm:$0xff]  ;;  %v4370_v43 = vld [vmem:[#allocation2 + $0x1328] ss:$0 sm:$0xff] }
0x113b   : > { %5994 = vmatprep.subr.mxu1 %v7345_v1  ;;  %v6976_v40 = vpack.c.bf16 %v3578_v26, %v3577_v25  ;;  %v6985_v53 = vpack.c.bf16 %v3681_v51, %v3680_v56 }
0x113c   : > { %v3768_v61 = vsel %vm336_vm1, %v3403_v55, 0.0  ;;  %6980 = vmatpush3.bf16.msra.mxu0 %v6979_v44  ;;  %v3871_v44 = vld [vmem:[#allocation2 + $0x13c0] sm:$0xff] }
0x113d   : > { %v7992_v46 = vadd.f32 %v3768_v61, %v3767_v45  ;;  %v3679_v45 = vld [vmem:[#allocation2 + $0x1348] sm:$0xff]  ;;  %6981 = vmatprep.subr.bf16.mxu0 %v7343_v0  ;;  %v3686_v61 = vld [vmem:[#allocation2 + $0x1380] sm:$0xff] }
0x113e   : > { %5995 = vmatpush3.msra.mxu1 %v3403_v55  ;;  %v6982_v28 = vpack.c.bf16 %v3679_v45, %v3678_v49  ;;  %v3683_v55 = vld [vmem:[#allocation2 + $0x1368] sm:$0xff]  ;;  %v3870_v49 = vld [vmem:[#allocation2 + $0x13b8] sm:$0xff] }
0x113f   : > { %5997 = vmatmul.mubr.msk.f32.vlgmr.msra.gmra.mrb[48].mxu1 %vm1080_vm3, %v7676_v50  ;;  %6947 = vmatprep.subr.bf16.mxu1 %v6946_v48  ;;  %v6960_v50 = vpack.c.bf16 %v3570_v13, %v3569_v6  ;;  %v6988_v47 = vpack.c.bf16 %v3683_v55, %v3682_v54  ;;  %v6991_v48 = vpack.c.bf16 %v3685_v60, %v3684_v63  ;;  %v3790_v13 = vld [vmem:[#allocation2 + $0x14e8] sm:$0xff]  ;;  %v3890_v63 = vld [vmem:[#allocation2 + $0x1458] sm:$0xff]  ;;  %v3891_v60 = vld [vmem:[#allocation2 + $0x1460] sm:$0xff] }
0x1140   : > { %3663 = vmatprep.mubr.f32.mxu1 %v7878_v57  ;;  %6949 = vmatpush3.bf16.msra.mxu1 %v6948_v62  ;;  %v6962_v57 = vpack.c.bf16 %v3588_v16, %v3587_v14  ;;  %v3687_v62 = vld [vmem:[#allocation2 + $0x1388] sm:$0xff]  ;;  %v3791_v14 = vld [vmem:[#allocation2 + $0x14f0] sm:$0xff]  ;;  %v7028_v51 = vpack.c.bf16 %v3871_v44, %v3870_v49  ;;  %v3983_v49 = vld [vmem:[#allocation2 + $0x1580] sm:$0xff] }
0x1141   : > { %6951 = vmatprep.subr.bf16.mxu1 %v6950_v2  ;;  %6983 = vmatpush3.bf16.msra.mxu0 %v6982_v28  ;;  %v6994_v2 = vpack.c.bf16 %v3687_v62, %v3686_v61  ;;  %v7012_v16 = vpack.c.bf16 %v3791_v14, %v3790_v13  ;;  %v3888_v45 = vld [vmem:[#allocation2 + $0x1448] sm:$0xff]  ;;  %v3889_v28 = vld [vmem:[#allocation2 + $0x1450] sm:$0xff]  ;;  %v3875_v61 = vld [vmem:[#allocation2 + $0x13e0] sm:$0xff] }
0x1142   : > { %6984 = vmatprep.subr.bf16.mxu0 %v7343_v0  ;;  %v7030_v54 = vpack.c.bf16 %v3889_v28, %v3888_v45  ;;  %v3872_v55 = vld [vmem:[#allocation2 + $0x13c8] sm:$0xff]  ;;  %v3897_v14 = vld [vmem:[#allocation2 + $0x1490] sm:$0xff] }
0x1143   : > { %v3892_v62 = vld [vmem:[#allocation2 + $0x1468] sm:$0xff]  ;;  %v3985_v28 = vld [vmem:[#allocation2 + $0x1590] sm:$0xff] }
0x1144   : > { %6953 = vmatpush3.bf16.msra.mxu1 %v6952_v7  ;;  %v7208_v7 = vld [vmem:[#allocation2] sm:$0xff]  ;;  %v3896_v13 = vld [vmem:[#allocation2 + $0x1488] sm:$0xff] }
0x1145   : > { %6955 = vmatprep.subr.bf16.mxu1 %v6954_v8  ;;  %6986 = vmatpush3.bf16.msra.mxu0 %v6985_v53  ;;  %v3984_v44 = vld [vmem:[#allocation2 + $0x1588] sm:$0xff] }
0x1146   : > { %6987 = vmatprep.subr.bf16.mxu0 %v7343_v0  ;;  %v7071_v45 = vpack.c.bf16 %v3984_v44, %v3983_v49  ;;  %v4150_v49 = vld [vmem:[#allocation2 + $0x1650] sm:$0xff]  ;;  %v4151_v44 = vld [vmem:[#allocation2 + $0x1658] sm:$0xff] }
0x1148   : > { %6957 = vmatpush3.bf16.msra.mxu1 %v6956_v58  ;;  %v3788_v58 = vld [vmem:[#allocation2 + $0x14d8] sm:$0xff] }
0x1149   : > { %6959 = vmatprep.subr.bf16.mxu1 %v6958_v37  ;;  %6989 = vmatpush3.bf16.msra.mxu0 %v6988_v47  ;;  %v3789_v37 = vld [vmem:[#allocation2 + $0x14e0] sm:$0xff]  ;;  %v3873_v47 = vld [vmem:[#allocation2 + $0x13d0] sm:$0xff] }
0x114a   : > { %6990 = vmatprep.subr.bf16.mxu0 %v7343_v0  ;;  %v7009_v6 = vpack.c.bf16 %v3789_v37, %v3788_v58  ;;  %v3878_v58 = vld [vmem:[#allocation2 + $0x13f8] sm:$0xff]  ;;  %v3879_v37 = vld [vmem:[#allocation2 + $0x1400] sm:$0xff] }
0x114c   : > { %6961 = vmatpush3.bf16.msra.mxu1 %v6960_v50  ;;  %v3792_v50 = vld [vmem:[#allocation2 + $0x14f8] sm:$0xff] }
0x114d   : > { %6963 = vmatprep.subr.bf16.mxu1 %v6962_v57  ;;  %6992 = vmatpush3.bf16.msra.mxu0 %v6991_v48  ;;  %v3793_v57 = vld [vmem:[#allocation2 + $0x1500] sm:$0xff]  ;;  %v7032_v48 = vpack.c.bf16 %v3873_v47, %v3872_v55  ;;  %v4371_v55 = vld [vmem:[#allocation2 + $0x13b0] ss:$0 sm:$0xff] }
0x114e   : > { %6993 = vmatprep.subr.bf16.mxu0 %v7343_v0  ;;  %v7015_v17 = vpack.c.bf16 %v3793_v57, %v3792_v50  ;;  %v3880_v50 = vld [vmem:[#allocation2 + $0x1408] sm:$0xff]  ;;  %v3881_v57 = vld [vmem:[#allocation2 + $0x1410] sm:$0xff] }
0x1150   : > { %6965 = vmatpush3.bf16.msra.mxu1 %v6964_v23  ;;  %v3796_v23 = vld [vmem:[#allocation2 + $0x1518] sm:$0xff] }
0x1151   : > { %v7997_v30 = vpop.f32.mrb[68].mxu0  ;;  %6967 = vmatprep.subr.bf16.mxu1 %v6966_v24  ;;  %6995 = vmatpush3.bf16.msra.mxu0 %v6994_v2  ;;  %v3797_v24 = vld [vmem:[#allocation2 + $0x1520] sm:$0xff]  ;;  %v3893_v2 = vld [vmem:[#allocation2 + $0x1470] sm:$0xff] }
0x1152   : > { %v6033_v29 = vpop.f32.mrb[69].mxu0  ;;  %6996 = vmatprep.subr.bf16.mxu0 %v7343_v0  ;;  %v7021_v27 = vpack.c.bf16 %v3797_v24, %v3796_v23  ;;  %v7038_v4 = vpack.c.bf16 %v3893_v2, %v3892_v62  ;;  %v3882_v23 = vld [vmem:[#allocation2 + $0x1418] sm:$0xff]  ;;  %v3883_v24 = vld [vmem:[#allocation2 + $0x1420] sm:$0xff] }
0x1153   : > { %v3691_v29 = vld [vmem:[#allocation2 + $0x13a8] sm:$0xff]  ;;  %v7052_v12 = vpack.c.bf16 %v3883_v24, %v3882_v23  ;;  %v4069_v23 = vld [vmem:[#allocation2 + $0x1600] sm:$0xff] }
0x1154   : > { %6969 = vmatpush3.bf16.msra.mxu1 %v6968_v33  ;;  %v3688_v33 = vld [vmem:[#allocation2 + $0x1390] sm:$0xff]  ;;  %v7000_v36 = vpack.c.bf16 %v3691_v29, %v3690_v35  ;;  %v3975_v35 = vld [vmem:[#allocation2 + $0x1540] sm:$0xff]  ;;  %v3976_v29 = vld [vmem:[#allocation2 + $0x1548] sm:$0xff] }
0x1155   : > { %6971 = vmatprep.subr.bf16.mxu1 %v6970_v22  ;;  %v3689_v22 = vld [vmem:[#allocation2 + $0x1398] sm:$0xff] }
0x1156   : > { %v6997_v34 = vpack.c.bf16 %v3689_v22, %v3688_v33  ;;  %v3885_v33 = vld [vmem:[#allocation2 + $0x1430] sm:$0xff] }
0x1158   : > { %6973 = vmatpush3.bf16.msra.mxu1 %v6972_v38  ;;  %6998 = vmatpush3.bf16.msra.mxu0 %v6997_v34  ;;  %v3887_v38 = vld [vmem:[#allocation2 + $0x1440] sm:$0xff] }
0x1159   : > { %6975 = vmatprep.subr.bf16.mxu1 %v6974_v39  ;;  %6999 = vmatprep.subr.bf16.mxu0 %v7343_v0  ;;  %v7026_v39 = vpack.c.bf16 %v3887_v38, %v3886_v32  ;;  %v7059_v32 = vpack.c.bf16 %v3976_v29, %v3975_v35  ;;  %v3978_v38 = vld [vmem:[#allocation2 + $0x1558] sm:$0xff]  ;;  %v4075_v35 = vld [vmem:[#allocation2 + $0x1630] sm:$0xff] }
0x115c   : > { %6977 = vmatpush3.bf16.msra.mxu1 %v6976_v40  ;;  %7001 = vmatpush3.bf16.msra.mxu0 %v7000_v36  ;;  %v3977_v36 = vld [vmem:[#allocation2 + $0x1550] sm:$0xff] }
0x115d   : > { %7002 = vmatprep.subr.bf16.mxu1 %v7343_v0  ;;  %7027 = vmatprep.subr.bf16.mxu0 %v7026_v39  ;;  %v7062_v39 = vpack.c.bf16 %v3978_v38, %v3977_v36 }
0x1212   : > { %v3472_v52 = vpop.f32.mrb[48].mxu1 }
0x1213   : > { %v3476_v8 = vmul.f32 %v7208_v7, %v3472_v52  ;;  %v5998_v9 = vpop.f32.mrb[49].mxu1  ;;  %v3876_v52 = vld [vmem:[#allocation2 + $0x13e8] sm:$0xff] }
0x1215   : > { %3664 = vmatmul.mubr.f32.vlgmr.msra.gmra.mrb[50].mxu1 %v3476_v8 }
0x1216   : > { %7004 = vmatpush3.bf16.msra.mxu1 %v7003_v5  ;;  %6101 = vmatprep.mubr.msk.f32.mxu1 %vm7344_vm0, %v7345_v1  ;;  %v3877_v5 = vld [vmem:[#allocation2 + $0x13f0] sm:$0xff] }
0x1217   : > { %7005 = vmatprep.subr.bf16.mxu1 %v7343_v0  ;;  %v7040_v7 = vpack.c.bf16 %v3877_v5, %v3876_v52 }
0x121a   : > { %7007 = vmatpush3.bf16.msra.mxu1 %v7006_v11  ;;  %v7042_v11 = vpack.c.bf16 %v3895_v19, %v3894_v10  ;;  %v3988_v10 = vld [vmem:[#allocation2 + $0x15a8] sm:$0xff] }
0x121b   : > { %7008 = vmatprep.subr.bf16.mxu1 %v7343_v0 }
0x121e   : > { %7010 = vmatpush3.bf16.msra.mxu1 %v7009_v6  ;;  %v7044_v6 = vpack.c.bf16 %v3879_v37, %v3878_v58  ;;  %v3990_v58 = vld [vmem:[#allocation2 + $0x15b8] sm:$0xff] }
0x121f   : > { %7011 = vmatprep.subr.bf16.mxu1 %v7343_v0 }
0x1222   : > { %7013 = vmatpush3.bf16.msra.mxu1 %v7012_v16  ;;  %v7046_v16 = vpack.c.bf16 %v3897_v14, %v3896_v13  ;;  %v4063_v13 = vld [vmem:[#allocation2 + $0x15d0] sm:$0xff]  ;;  %v4064_v14 = vld [vmem:[#allocation2 + $0x15d8] sm:$0xff] }
0x1223   : > { %7014 = vmatprep.subr.bf16.mxu1 %v7343_v0 }
0x1226   : > { %7016 = vmatpush3.bf16.msra.mxu1 %v7015_v17  ;;  %v7048_v17 = vpack.c.bf16 %v3881_v57, %v3880_v50  ;;  %v4065_v50 = vld [vmem:[#allocation2 + $0x15e0] sm:$0xff] }
0x1227   : > { %7017 = vmatprep.subr.bf16.mxu1 %v7343_v0  ;;  %v7086_v57 = vpack.c.bf16 %v4065_v50, %v4064_v14 }
0x122a   : > { %7019 = vmatpush3.bf16.msra.mxu1 %v7018_v21  ;;  %v7050_v21 = vpack.c.bf16 %v3899_v20, %v3898_v18  ;;  %v4067_v18 = vld [vmem:[#allocation2 + $0x15f0] sm:$0xff] }
0x122b   : > { %7020 = vmatprep.subr.bf16.mxu1 %v7343_v0 }
0x122e   : > { %7022 = vmatpush3.bf16.msra.mxu1 %v7021_v27  ;;  %v3900_v27 = vld [vmem:[#allocation2 + $0x14a8] sm:$0xff] }
0x122f   : > { %7023 = vmatprep.subr.bf16.mxu1 %v7343_v0  ;;  %v7054_v22 = vpack.c.bf16 %v3901_v42, %v3900_v27  ;;  %v4070_v27 = vld [vmem:[#allocation2 + $0x1608] sm:$0xff] }
0x1232   : > { %7025 = vmatpush3.bf16.msra.mxu1 %v7024_v31  ;;  %v3884_v31 = vld [vmem:[#allocation2 + $0x1428] sm:$0xff] }
0x1233   : > { %7058 = vmatprep.subr.bf16.mxu1 %v7343_v0  ;;  %v7056_v34 = vpack.c.bf16 %v3885_v33, %v3884_v31  ;;  %v4072_v31 = vld [vmem:[#allocation2 + $0x1618] sm:$0xff]  ;;  %v4073_v33 = vld [vmem:[#allocation2 + $0x1620] sm:$0xff] }
0x1235   : > { %6102 = vmatmul.mubr.f32.vlgmr.msra.gmra.mrb[52].mxu1 %v7935_v59  ;;  %v3598_v59 = vrot.slane %v7997_v30, %v7658_v15  ;;  %v7034_v15 = vpack.c.bf16 %v3891_v60, %v3890_v63  ;;  %v3874_v30 = vld [vmem:[#allocation2 + $0x13d8] sm:$0xff] }
0x1236   : > { %6136 = vmatprep.mubr.msk.f32.mxu1 %vm7344_vm0, %v7345_v1  ;;  %v7036_v3 = vpack.c.bf16 %v3875_v61, %v3874_v30  ;;  %7060 = vmatpush3.bf16.msra.mxu1 %v7059_v32 }
0x1237   : > { %7061 = vmatprep.subr.bf16.mxu1 %v7343_v0 }
0x123a   : > { %7063 = vmatpush3.bf16.msra.mxu1 %v7062_v39  ;;  %v3972_v39 = vld [vmem:[#allocation2 + $0x1538] sm:$0x1] }
0x123b   : > { %7064 = vmatprep.subr.bf16.mxu1 %v7343_v0 }
0x12e8   : > { %v5074_v25 = vpop.f32.mrb[50].mxu1 }
0x12e9   : > { %v5075_v26 = vpop.f32.mrb[51].mxu1 }
0x12ea   : > { %v5076_v40 = vadd.f32 %v5075_v26, %v5074_v25  ;;  %v3979_v25 = vld [vmem:[#allocation2 + $0x1560] sm:$0xff]  ;;  %v3980_v26 = vld [vmem:[#allocation2 + $0x1568] sm:$0xff] }
0x12ec   : > { %v3666_v41 = vadd.f32 %v5076_v40, %v3598_v59  ;;  %v7065_v59 = vpack.c.bf16 %v3980_v26, %v3979_v25  ;;  %v3981_v40 = vld [vmem:[#allocation2 + $0x1570] sm:$0xff] }
0x12ee   : > { %v3674_v56 = vadd.f32 %v4370_v43, %v3666_v41  ;;  %v3982_v43 = vld [vmem:[#allocation2 + $0x1578] sm:$0xff]  ;;  %7066 = vmatpush3.bf16.msra.mxu1 %v7065_v59 }
0x12ef   : > { %v7068_v41 = vpack.c.bf16 %v3982_v43, %v3981_v40  ;;  %7067 = vmatprep.subr.bf16.mxu1 %v7343_v0  ;;  %v4076_v40 = vld [vmem:[#allocation2 + $0x1638] sm:$0xff]  ;;  %v4077_v43 = vld [vmem:[#allocation2 + $0x1640] sm:$0xff] }
0x12f0   : > { %v3675_v53 = vmax.f32 %v3674_v56, 0.0  ;;  %v3986_v56 = vld [vmem:[#allocation2 + $0x1598] sm:$0xff] }
0x12f2   : > { %6067 = vmatmul.mubr.f32.vlgmr.msra.gmra.mrb[70].mxu0 %v3675_v53  ;;  %7069 = vmatpush3.bf16.msra.mxu1 %v7068_v41  ;;  %v3770_v53 = vrot.slane %v7992_v46, 4  ;;  %v7104_v41 = vpack.c.bf16 %v4077_v43, %v4076_v40 }
0x12f3   : > { %7029 = vmatpush3.bf16.msra.mxu0 %v7028_v51  ;;  %7070 = vmatprep.subr.bf16.mxu1 %v7343_v0  ;;  %v7074_v51 = vpack.c.bf16 %v3986_v56, %v3985_v28  ;;  %v7107_v28 = vpack.c.bf16 %v4151_v44, %v4150_v49  ;;  %v4153_v56 = vld [vmem:[#allocation2 + $0x1668] sm:$0xff] }
0x12f4   : > { %7031 = vmatprep.subr.bf16.mxu0 %v7030_v54  ;;  %v3771_v54 = vadd.f32 %v3770_v53, %v7992_v46  ;;  %v3987_v46 = vld [vmem:[#allocation2 + $0x15a0] sm:$0xff]  ;;  %v4155_v53 = vld [vmem:[#allocation2 + $0x1678] sm:$0xff] }
0x12f5   : > { %v7077_v19 = vpack.c.bf16 %v3988_v10, %v3987_v46  ;;  %v4165_v46 = vld [vmem:[#allocation2 + $0x16c8] sm:$0xff] }
0x12f6   : > { %7072 = vmatpush3.bf16.msra.mxu1 %v7071_v45  ;;  %v3772_v47 = vrot.slane %v3771_v54, 2  ;;  %v4152_v45 = vld [vmem:[#allocation2 + $0x1660] sm:$0xff] }
0x12f7   : > { %7033 = vmatpush3.bf16.msra.mxu0 %v7032_v48  ;;  %7073 = vmatprep.subr.bf16.mxu1 %v7343_v0 }
0x12f8   : > { %7035 = vmatprep.subr.bf16.mxu0 %v7034_v15  ;;  %v3773_v30 = vadd.f32 %v3772_v47, %v3771_v54 }
0x12fa   : > { %7075 = vmatpush3.bf16.msra.mxu1 %v7074_v51  ;;  %v3774_v2 = vrot.slane %v3773_v30, 1  ;;  %v7110_v51 = vpack.c.bf16 %v4153_v56, %v4152_v45 }
0x12fb   : > { %7037 = vmatpush3.bf16.msra.mxu0 %v7036_v3  ;;  %7076 = vmatprep.subr.bf16.mxu1 %v7343_v0 }
0x12fc   : > { %7039 = vmatprep.subr.bf16.mxu0 %v7038_v4  ;;  %v3775_v52 = vadd.f32 %v3774_v2, %v3773_v30  ;;  %v4161_v30 = vld [vmem:[#allocation2 + $0x16a8] sm:$0xff]  ;;  %v4163_v2 = vld [vmem:[#allocation2 + $0x16b8] sm:$0xff] }
0x12fe   : > { %7078 = vmatpush3.bf16.msra.mxu1 %v7077_v19  ;;  %v4078_v19 = vld [vmem:[#allocation2 + $0x1648] sm:$0x1] }
0x12ff   : > { %7041 = vmatpush3.bf16.msra.mxu0 %v7040_v7  ;;  %7079 = vmatprep.subr.bf16.mxu1 %v7343_v0 }
0x1300   : > { %7043 = vmatprep.subr.bf16.mxu0 %v7042_v11  ;;  %v3989_v11 = vld [vmem:[#allocation2 + $0x15b0] sm:$0xff] }
0x1301   : > { %v7080_v37 = vpack.c.bf16 %v3990_v58, %v3989_v11 }
0x1303   : > { %7045 = vmatpush3.bf16.msra.mxu0 %v7044_v6  ;;  %7081 = vmatpush3.bf16.msra.mxu1 %v7080_v37  ;;  %v4062_v6 = vld [vmem:[#allocation2 + $0x15c8] sm:$0xff] }
0x1304   : > { %7047 = vmatprep.subr.bf16.mxu0 %v7046_v16  ;;  %7106 = vmatprep.subr.bf16.mxu1 %v7343_v0  ;;  %v7083_v16 = vpack.c.bf16 %v4063_v13, %v4062_v6 }
0x1307   : > { %7049 = vmatpush3.bf16.msra.mxu0 %v7048_v17  ;;  %v4066_v17 = vld [vmem:[#allocation2 + $0x15e8] sm:$0xff] }
0x1308   : > { %v8022_v8 = vpop.f32.mrb[52].mxu1  ;;  %7051 = vmatprep.subr.bf16.mxu0 %v7050_v21  ;;  %v7089_v20 = vpack.c.bf16 %v4067_v18, %v4066_v17  ;;  %v4068_v21 = vld [vmem:[#allocation2 + $0x15f8] sm:$0xff] }
0x1309   : > { %v6103_v9 = vpop.f32.mrb[53].mxu1  ;;  %v7092_v24 = vpack.c.bf16 %v4069_v23, %v4068_v21 }
0x130a   : > { %v3776_v9 = vmul.f32 0.055555556, %v3775_v52 }
0x130b   : > { %7053 = vmatpush3.bf16.msra.mxu0 %v7052_v12  ;;  %v4071_v12 = vld [vmem:[#allocation2 + $0x1610] sm:$0xff] }
0x130c   : > { %7055 = vmatprep.subr.bf16.mxu0 %v7054_v22  ;;  %v7095_v42 = vpack.c.bf16 %v4071_v12, %v4070_v27  ;;  %v7098_v22 = vpack.c.bf16 %v4073_v33, %v4072_v31 }
0x130f   : > { %7057 = vmatpush3.bf16.msra.mxu0 %v7056_v34  ;;  %v4074_v34 = vld [vmem:[#allocation2 + $0x1628] sm:$0xff] }
0x1310   : > { %7082 = vmatprep.subr.bf16.mxu0 %v7343_v0  ;;  %v7101_v29 = vpack.c.bf16 %v4075_v35, %v4074_v34 }
0x13c5   : > { %v3763_v63 = vpop.f32.mrb[70].mxu0 }
0x13c6   : > { %v3764_v60 = vadd.f32 %v4371_v55, %v3763_v63  ;;  %v6068_v48 = vpop.f32.mrb[71].mxu0  ;;  %v4157_v55 = vld [vmem:[#allocation2 + $0x1688] sm:$0xff]  ;;  %v4158_v63 = vld [vmem:[#allocation2 + $0x1690] sm:$0xff] }
0x13c8   : > { %v3777_v15 = vrot.slane %v3764_v60, 4 }
0x13ca   : > { %v3778_v61 = vadd.f32 %v3777_v15, %v3764_v60  ;;  %v4159_v60 = vld [vmem:[#allocation2 + $0x1698] sm:$0xff]  ;;  %v4160_v15 = vld [vmem:[#allocation2 + $0x16a0] sm:$0xff] }
0x13cb   : > { %v7119_v48 = vpack.c.bf16 %v4159_v60, %v4158_v63 }
0x13cc   : > { %v3779_v62 = vrot.slane %v3778_v61, 2 }
0x13ce   : > { %v3780_v3 = vadd.f32 %v3779_v62, %v3778_v61  ;;  %v7122_v61 = vpack.c.bf16 %v4161_v30, %v4160_v15  ;;  %v4162_v62 = vld [vmem:[#allocation2 + $0x16b0] sm:$0xff] }
0x13d0   : > { %v3781_v4 = vrot.slane %v3780_v3, 1 }
0x13d2   : > { %v3782_v5 = vadd.f32 %v3781_v4, %v3780_v3  ;;  %v7125_v3 = vpack.c.bf16 %v4163_v2, %v4162_v62  ;;  %v3991_v4 = vld [vmem:[#allocation2 + $0x15c0] sm:$0x1] }
0x13d4   : > { %v3783_v7 = vmul.f32 0.125, %v3782_v5 }
0x13d6   : > { %3966 = vmatprep.mubr.f32.mxu0 %v3783_v7 }
0x13d7   : > { %3967 = vmatmul.mubr.f32.vlgmr.msra.gmra.mrb[72].mxu0 %v3776_v9  ;;  %v4164_v9 = vld [vmem:[#allocation2 + $0x16c0] sm:$0xff] }
0x13d8   : > { %6171 = vmatprep.mubr.msk.f32.mxu0 %vm7344_vm0, %v7345_v1  ;;  %7084 = vmatpush3.bf16.msra.mxu0 %v7083_v16  ;;  %v7128_v10 = vpack.c.bf16 %v4165_v46, %v4164_v9 }
0x13d9   : > { %7085 = vmatprep.subr.bf16.mxu0 %v7343_v0 }
0x13dc   : > { %7087 = vmatpush3.bf16.msra.mxu0 %v7086_v57 }
0x13dd   : > { %7088 = vmatprep.subr.bf16.mxu0 %v7343_v0 }
0x13e0   : > { %7090 = vmatpush3.bf16.msra.mxu0 %v7089_v20 }
0x13e1   : > { %7091 = vmatprep.subr.bf16.mxu0 %v7343_v0 }
0x13e4   : > { %7093 = vmatpush3.bf16.msra.mxu0 %v7092_v24 }
0x13e5   : > { %7094 = vmatprep.subr.bf16.mxu0 %v7343_v0 }
0x13e8   : > { %7096 = vmatpush3.bf16.msra.mxu0 %v7095_v42 }
0x13e9   : > { %7097 = vmatprep.subr.bf16.mxu0 %v7343_v0 }
0x13ec   : > { %7099 = vmatpush3.bf16.msra.mxu0 %v7098_v22 }
0x13ed   : > { %7100 = vmatprep.subr.bf16.mxu0 %v7343_v0 }
0x13f0   : > { %7102 = vmatpush3.bf16.msra.mxu0 %v7101_v29 }
0x13f1   : > { %7103 = vmatprep.subr.bf16.mxu0 %v7343_v0 }
0x13f4   : > { %7105 = vmatpush3.bf16.msra.mxu0 %v7104_v41 }
0x14aa   : > { %v5143_v36 = vpop.f32.mrb[72].mxu0 }
0x14ab   : > { %v5144_v32 = vpop.f32.mrb[73].mxu0 }
0x14ac   : > { %v5145_v38 = vadd.f32 %v5144_v32, %v5143_v36 }
0x14ae   : > { %v3969_v25 = vadd.f32 %v5145_v38, %v8022_v8  ;;  %v4154_v8 = vld [vmem:[#allocation2 + $0x1670] sm:$0xff] }
0x14af   : > { %v7113_v54 = vpack.c.bf16 %v4155_v53, %v4154_v8 }
0x14b0   : > { %v3973_v26 = vadd.f32 %v3972_v39, %v3969_v25 }
0x14b2   : > { %v3974_v59 = vmax.f32 %v3973_v26, 0.0 }
0x14b4   : > { %6137 = vmatmul.mubr.f32.vlgmr.msra.gmra.mrb[54].mxu1 %v3974_v59 }
0x14b5   : > { %6206 = vmatprep.mubr.msk.f32.mxu1 %vm7344_vm0, %v7345_v1  ;;  %7108 = vmatpush3.bf16.msra.mxu1 %v7107_v28  ;;  %v4156_v1 = vld [vmem:[#allocation2 + $0x1680] sm:$0xff] }
0x14b6   : > { %7109 = vmatprep.subr.bf16.mxu1 %v7343_v0  ;;  %v7116_v47 = vpack.c.bf16 %v4157_v55, %v4156_v1 }
0x14b9   : > { %7111 = vmatpush3.bf16.msra.mxu1 %v7110_v51 }
0x14ba   : > { %7112 = vmatprep.subr.bf16.mxu1 %v7343_v0 }
0x14bd   : > { %7114 = vmatpush3.bf16.msra.mxu1 %v7113_v54 }
0x14be   : > { %7115 = vmatprep.subr.bf16.mxu1 %v7343_v0 }
0x14c1   : > { %7117 = vmatpush3.bf16.msra.mxu1 %v7116_v47 }
0x14c2   : > { %7118 = vmatprep.subr.bf16.mxu1 %v7343_v0 }
0x14c5   : > { %7120 = vmatpush3.bf16.msra.mxu1 %v7119_v48 }
0x14c6   : > { %7121 = vmatprep.subr.bf16.mxu1 %v7343_v0 }
0x14c9   : > { %7123 = vmatpush3.bf16.msra.mxu1 %v7122_v61 }
0x14ca   : > { %7124 = vmatprep.subr.bf16.mxu1 %v7343_v0 }
0x14cd   : > { %7126 = vmatpush3.bf16.msra.mxu1 %v7125_v3 }
0x14ce   : > { %7127 = vmatprep.subr.bf16.mxu1 %v7343_v0  ;;  %v4166_v0 = vld [vmem:[#allocation2 + $0x16d0] sm:$0x1] }
0x14d1   : > { %7129 = vmatpush3.bf16.msra.mxu1 %v7128_v10 }
0x1587   : > { %v4058_v52 = vpop.f32.mrb[54].mxu1 }
0x1588   : > { %v4059_v5 = vadd.f32 %v4058_v52, %v3991_v4  ;;  %v6138_v7 = vpop.f32.mrb[55].mxu1 }
0x158a   : > { %6172 = vmatmul.mubr.f32.vlgmr.msra.gmra.mrb[74].mxu0 %v4059_v5 }
0x165d   : > { %v4145_v11 = vpop.f32.mrb[74].mxu0 }
0x165e   : > { %v4146_v58 = vadd.f32 %v4145_v11, %v4078_v19  ;;  %v6173_v37 = vpop.f32.mrb[75].mxu0 }
0x1660   : > { %v4149_v6 = vmax.f32 %v4146_v58, 0.0 }
0x1662   : > { %6207 = vmatmul.mubr.f32.vlgmr.msra.gmra.mrb[56].mxu1 %v4149_v6 }
0x1735   : > { %v4233_v13 = vpop.f32.mrb[56].mxu1 }
0x1736   : > { %v4234_v14 = vadd.f32 %v4233_v13, %v4166_v0  ;;  %v6208_v16 = vpop.f32.mrb[57].mxu1 }
0x1738   : > { %4237 = vst [vmem:[%s202_s9] sm:$0x1] %v4234_v14 }
0x1739   : > { %7280 = shalt.err (!%p7277_p7)
}
0x173a   : > { %s7281_s6 = scalar_lea.hbm %s8059_s11, 16  ;;  %s7285_s29 = scalar_lea.hbm %s8106_s3, 32 }
0x173b   : > { %p7282_p9 = scmp.ne.s32.totalorder %s8059_s11, %s7281_s6  ;;  %p7286_p5 = scmp.lt.u32.totalorder %s8059_s11, %s8106_s3 }
0x173c   : > { %p7287_p2 = scmp.lt.u32.totalorder %s7285_s29, %s7281_s6  ;;  %p7289_p4 = scmp.lt.u32.totalorder %s7281_s6, %s8059_s11 }
0x173d   : > { %p7283_p1 = pnand %p7282_p9, %p7461_p12 }
0x173e   : > { %p7288_p13 = por %p7287_p2, %p7286_p5 }
0x173f   : > { %p7284_p0 = pneg %p7283_p1 }
0x1740   : > { %p7290_p6 = por %p7289_p4, %p7288_p13 }
0x1742   : > { %p7291_p8 = pnand %p7290_p6, %p7284_p0 }
0x1744   : > { %7294 = shalt.err (!%p7291_p8)
}
0x1745   : > { %7139 = dma.vmem_to_hbm [thread:$0]  (%p7461_p12), %s8061_s25, 16, %s8059_s11, %s4239_s27  }
0x1746 PF: > { %s4263_s18 = sand.u32 1, %s7325_s12   ;;  %p8121_p10 = scmp.ne.s32.totalorder %s8111_s19, 0 }
0x1747   : > { %p8122_p11 = scmp.ge.s32.totalorder %s7337_s15, 2  ;;  %s4264_s20 = scalar_lea.sflag [#allocation4], %s4263_s18 }
0x1749   : > { %p7150_p3 = pnand %p8122_p11, %p8121_p10 }
0x174b   : > { %7320 = dma.done.wait (!%p7150_p3), %s4264_s20, 16  }
0x174c   : > { %7322 = vsyncadd (!%p7150_p3), %s4264_s20, 4294967280  ;;  %p17_p7 = scmp.ge.s32.totalorder %s7423_s24, 4   ;;  %s8123_s12 = smov %s7329_s13 }
0x174d   : > { %s8124_s13 = smov %s7333_s14  ;;  %s8125_s14 = smov %s7457_s17 }
0x174e   : > { %s8126_s15 = smov %s7423_s24  ;;  %19 = sbr.rel (!%p17_p7) target bundleno = 6 (0x6), region = 82 }
0x1755   :  { %4268 = vsyncpa [#allocation3], 1 }
0x1756   :  { %4270 = vsyncpa [#allocation3 + $0x1], 1 }
0x1757   :  { %4271 = vsyncpa [#allocation6], 1 }
0x1758   :  { %4273 = vsyncpa [#allocation6 + $0x1], 1 }
0x1759   :  { %4274 = vsyncpa [#allocation4], 1 }
0x175a   :  { %4276 = vsyncpa [#allocation4 + $0x1], 1 }

</bundles_post_ra>
